<compile_context>
chip_gen: v7x
topology: tpu7x:2x2x1
jax: 0.10.0
libtpu: 0.0.40
codegen_flags: <defaults>
</compile_context>

<pallas_src>
import functools
import math

import jax
import jax.numpy as jnp
from jax.experimental import pallas as pl
from jax.experimental.pallas import tpu as pltpu


# ----------------------------- small helpers --------------------------------

def _round_up(n, m):
    return ((n + m - 1) // m) * m


def _vmem_footprint(shape, dtype, buffers=1):
    """Approximate padded VMEM bytes of `buffers` copies of a block of `shape`."""
    item = jnp.dtype(dtype).itemsize
    dims = list(shape)
    dims[-1] = _round_up(dims[-1], 128)
    if len(dims) >= 2:
        dims[-2] = _round_up(dims[-2], max(8, 32 // item))
    n = item
    for d in dims:
        n *= d
    return buffers * n


def _tpu_vmem_capacity():
    # Per-core VMEM capacity; conservative fallback (v7x = 64 MiB) if unavailable.
    try:
        cap = int(pltpu.get_tpu_info().vmem_capacity_bytes)
        if cap > 0:
            return cap
    except Exception:
        pass
    return 64 * 1024 * 1024


def _vmem_limit(need_bytes, capacity):
    # Computed budget + headroom, capped well below the physical per-core ceiling.
    return int(min(max(int(need_bytes * 1.5) + (4 << 20), 16 << 20),
                   int(0.8 * capacity)))


# ----------------------------- Pallas kernels --------------------------------

def _tanh_proj_kernel(x_ref, w_ref, b_ref, o_ref):
    # Fuses nn.Tanh() with the LSTM input projection:
    #   gates_x = tanh(x) @ W_ih^T + (b_ih + b_hh)
    # tanh output is bounded in [-1, 1] -> bf16 MXU operands, f32 accumulation.
    xt = jnp.tanh(x_ref[...].astype(jnp.float32)).astype(jnp.bfloat16)
    acc = jnp.dot(xt, w_ref[...], preferred_element_type=jnp.float32)
    o_ref[...] = (acc + b_ref[...]).astype(o_ref.dtype)


def _lstm_chunk_kernel(xg_ref, whh_ref, len_ref, h0_ref, c0_ref,
                       hn_ref, cn_ref, *, H, Tc):
    # Tc timesteps of the LSTM recurrence per grid step.
    #   xg : (B, Tc, 4H) bf16 precomputed  tanh(x_t) @ W_ih^T + b   (pipelined chunk)
    #   whh: (H, 4H)     bf16 W_hh^T, whole-array VMEM resident
    #   len: (B, 1)      int32 sequence lengths (PackedSequence masking)
    #   h0/c0: (B, H)    f32 initial cache
    # h/c state is carried directly in the resident hn/cn output blocks.
    chunk = pl.program_id(0)

    @pl.when(chunk == 0)
    def _():
        hn_ref[...] = h0_ref[...]
        cn_ref[...] = c0_ref[...]

    h = hn_ref[...]
    c = cn_ref[...]
    whh = whh_ref[...]
    lens = len_ref[...]
    t0 = chunk * Tc

    # Statically unrolled inner time loop: amortizes per-grid-step overhead and
    # keeps all xg slices static.
    for tau in range(Tc):
        gx = xg_ref[:, tau, :].astype(jnp.float32)                    # (B, 4H)
        gates = gx + jnp.dot(h.astype(jnp.bfloat16), whh,
                             preferred_element_type=jnp.float32)
        i_g = jax.nn.sigmoid(gates[:, 0 * H:1 * H])
        f_g = jax.nn.sigmoid(gates[:, 1 * H:2 * H])
        g_g = jnp.tanh(gates[:, 2 * H:3 * H])
        o_g = jax.nn.sigmoid(gates[:, 3 * H:4 * H])
        c_new = f_g * c + i_g * g_g
        h_new = o_g * jnp.tanh(c_new)
        # PackedSequence semantics: only sequences with t < length advance their state.
        mask = (t0 + tau) < lens
        h = jnp.where(mask, h_new, h)
        c = jnp.where(mask, c_new, c)

    hn_ref[...] = h
    cn_ref[...] = c


# ----------------------- cached pallas_call builders --------------------------

@functools.lru_cache(maxsize=None)
def _build_tanh_proj(M, K, N, tm, vmem_limit):
    cost = pl.CostEstimate(flops=2 * M * K * N,
                           transcendentals=M * K,
                           bytes_accessed=4 * M * K + 2 * (K * N + M * N))
    return pl.pallas_call(
        _tanh_proj_kernel,
        out_shape=jax.ShapeDtypeStruct((M, N), jnp.bfloat16),
        grid=(pl.cdiv(M, tm),),
        in_specs=[pl.BlockSpec((tm, K), lambda i: (i, 0)),
                  # Constant operands: whole-array VMEM residents (single copy,
                  # no double-buffering).
                  pl.BlockSpec(memory_space=pltpu.MemorySpace.VMEM),   # W_ih^T (bf16)
                  pl.BlockSpec(memory_space=pltpu.MemorySpace.VMEM)],  # bias (f32)
        out_specs=pl.BlockSpec((tm, N), lambda i: (i, 0)),
        compiler_params=pltpu.CompilerParams(
            dimension_semantics=("parallel",),
            vmem_limit_bytes=vmem_limit),
        cost_estimate=cost,
    )


@functools.lru_cache(maxsize=None)
def _build_lstm_recurrence(T_pad, B, H, Tc, vmem_limit):
    kernel = functools.partial(_lstm_chunk_kernel, H=H, Tc=Tc)
    return pl.pallas_call(
        kernel,
        out_shape=(jax.ShapeDtypeStruct((B, H), jnp.float32),
                   jax.ShapeDtypeStruct((B, H), jnp.float32)),
        grid=(T_pad // Tc,),
        in_specs=[pl.BlockSpec((B, Tc, 4 * H), lambda t: (0, t, 0)),   # gate chunk (pipelined)
                  pl.BlockSpec(memory_space=pltpu.MemorySpace.VMEM),   # W_hh^T, resident
                  pl.BlockSpec(memory_space=pltpu.MemorySpace.VMEM),   # lengths
                  pl.BlockSpec(memory_space=pltpu.MemorySpace.VMEM),   # h0
                  pl.BlockSpec(memory_space=pltpu.MemorySpace.VMEM)],  # c0
        out_specs=(pl.BlockSpec((B, H), lambda t: (0, 0)),             # hn: resident state
                   pl.BlockSpec((B, H), lambda t: (0, 0))),            # cn: resident state
        compiler_params=pltpu.CompilerParams(
            dimension_semantics=("arbitrary",),                        # sequential recurrence
            vmem_limit_bytes=vmem_limit),
    )


# ------------------------------- forward pass ----------------------------------

def init_params(key, input_size, hidden):
    # nn.LSTM default init: U(-1/sqrt(H), 1/sqrt(H)) for all weights/biases.
    k1, k2, k3, k4 = jax.random.split(key, 4)
    s = 1.0 / math.sqrt(hidden)
    w_ih = jax.random.uniform(k1, (4 * hidden, input_size), jnp.float32, -s, s)
    w_hh = jax.random.uniform(k2, (4 * hidden, hidden), jnp.float32, -s, s)
    b_ih = jax.random.uniform(k3, (4 * hidden,), jnp.float32, -s, s)
    b_hh = jax.random.uniform(k4, (4 * hidden,), jnp.float32, -s, s)
    return {"wih_t": w_ih.T.astype(jnp.bfloat16),    # (I, 4H) bf16 MXU operand
            "whh_t": w_hh.T.astype(jnp.bfloat16),    # (H, 4H) bf16 MXU operand
            "bias": (b_ih + b_hh).astype(jnp.float32)}


def qns_embedding_forward(x_bti, lengths, params, h0=None, c0=None, *, time_chunk=16):
    """QnsEmbedding.forward.

    x_bti:   (B, T, I) padded batch-first sequences (the pre-packing tensor).
    lengths: (B,) valid lengths (PackedSequence batch_sizes equivalent).
    h0/c0:   optional cache (num_layers=1, B, H); defaults to zeros (the module
             zeroes / re-inits its cache when no explicit cache is supplied).
    Returns (hn, cn), each (1, B, H).
    """
    B, T, I = x_bti.shape
    H = params["whh_t"].shape[0]
    N4H = 4 * H

    if h0 is None:
        h0 = jnp.zeros((1, B, H), jnp.float32)
    if c0 is None:
        c0 = jnp.zeros((1, B, H), jnp.float32)

    # Pad the time axis once so the recurrence consumes fixed-size chunks; the
    # length mask freezes the state over padded steps, so results are unchanged.
    Tc = time_chunk
    T_pad = _round_up(T, Tc)
    if T_pad != T:
        x_bti = jnp.pad(x_bti, ((0, 0), (0, T_pad - T), (0, 0)))

    capacity = _tpu_vmem_capacity()

    # --- fused tanh + input projection over all timesteps (one big MXU matmul) ---
    # No (B,T)->(T,B) HBM transpose: project directly from the batch-first layout
    # (free reshape); the recurrence then reads (B, Tc, 4H) chunks.
    M = B * T_pad
    tm = 256
    for cand in (512, 1024, 2048):
        need = (_vmem_footprint((cand, I), jnp.float32, 2)
                + _vmem_footprint((I, N4H), jnp.bfloat16, 1)
                + _vmem_footprint((1, N4H), jnp.float32, 1)
                + _vmem_footprint((cand, N4H), jnp.bfloat16, 2))
        if int(need * 1.5) + (4 << 20) <= int(0.45 * capacity):
            tm = cand
    tm = min(tm, _round_up(M, 8))
    proj_need = (_vmem_footprint((tm, I), jnp.float32, 2)
                 + _vmem_footprint((I, N4H), jnp.bfloat16, 1)
                 + _vmem_footprint((1, N4H), jnp.float32, 1)
                 + _vmem_footprint((tm, N4H), jnp.bfloat16, 2))
    xg = _build_tanh_proj(M, I, N4H, tm, _vmem_limit(proj_need, capacity))(
        x_bti.reshape(M, I),
        params["wih_t"],
        params["bias"].reshape(1, N4H))
    xg = xg.reshape(B, T_pad, N4H)

    # --- sequential recurrence: Tc steps per grid invocation, state in output refs ---
    rec_need = (_vmem_footprint((B, Tc, N4H), jnp.bfloat16, 2)
                + _vmem_footprint((H, N4H), jnp.bfloat16, 1)
                + _vmem_footprint((B, 1), jnp.int32, 1)
                + 2 * _vmem_footprint((B, H), jnp.float32, 1)
                + 2 * _vmem_footprint((B, H), jnp.float32, 2))
    hn, cn = _build_lstm_recurrence(T_pad, B, H, Tc, _vmem_limit(rec_need, capacity))(
        xg,
        params["whh_t"],
        lengths.reshape(B, 1).astype(jnp.int32),
        h0[0].astype(jnp.float32),
        c0[0].astype(jnp.float32))
    return hn[None], cn[None]


# ------------------------------- pure-JAX reference -----------------------------

def _reference(x_bti, lengths, params, h0, c0):
    # f32 math on the same (bf16-stored) weights; isolates kernel numerics.
    B, T, I = x_bti.shape
    H = params["whh_t"].shape[0]
    wih = params["wih_t"].astype(jnp.float32)
    whh = params["whh_t"].astype(jnp.float32)
    bias = params["bias"]
    h, c = h0[0], c0[0]
    xt = jnp.tanh(x_bti.astype(jnp.float32))
    for t in range(T):
        gates = xt[:, t, :] @ wih + bias + h @ whh
        i_g = jax.nn.sigmoid(gates[:, 0 * H:1 * H])
        f_g = jax.nn.sigmoid(gates[:, 1 * H:2 * H])
        g_g = jnp.tanh(gates[:, 2 * H:3 * H])
        o_g = jax.nn.sigmoid(gates[:, 3 * H:4 * H])
        c_new = f_g * c + i_g * g_g
        h_new = o_g * jnp.tanh(c_new)
        mask = (t < lengths)[:, None]
        h = jnp.where(mask, h_new, h)
        c = jnp.where(mask, c_new, c)
    return h[None], c[None]


# ----------------------------------- main --------------------------------------

if __name__ == "__main__":
    key = jax.random.PRNGKey(0)
    k_x, k_p = jax.random.split(key)

    # Small demo shapes consistent with the module (real sizes: I=300, H=1024).
    B, T, I, H = 2, 8, 32, 128
    x = jax.random.normal(k_x, (B, T, I), jnp.float32)
    lengths = jnp.array([T, 5], jnp.int32)          # sorted-decreasing, like pack_padded_sequence
    params = init_params(k_p, I, H)

    fwd = jax.jit(qns_embedding_forward)
    hn, cn = fwd(x, lengths, params)
    jax.block_until_ready((hn, cn))

    assert hn.shape == (1, B, H), hn.shape
    assert cn.shape == (1, B, H), cn.shape
    assert bool(jnp.all(jnp.isfinite(hn))) and bool(jnp.all(jnp.isfinite(cn)))

    # Correctness vs. pure-JAX f32 reference (bf16 MXU operands / bf16 gate storage
    # in the kernel -> looser absolute tolerance on the tanh-bounded outputs).
    h0 = jnp.zeros((1, B, H), jnp.float32)
    c0 = jnp.zeros((1, B, H), jnp.float32)
    ref_hn, ref_cn = _reference(x, lengths, params, h0, c0)
    assert bool(jnp.max(jnp.abs(hn - ref_hn)) < 3e-2), float(jnp.max(jnp.abs(hn - ref_hn)))
    assert bool(jnp.max(jnp.abs(cn - ref_cn)) < 5e-2), float(jnp.max(jnp.abs(cn - ref_cn)))

    # Explicit cache path (the `if cache:` branch of forward).
    h0b = 0.1 * jax.random.normal(k_x, (1, B, H), jnp.float32)
    c0b = 0.1 * jax.random.normal(k_p, (1, B, H), jnp.float32)
    hn2, cn2 = fwd(x, lengths, params, h0b, c0b)
    jax.block_until_ready((hn2, cn2))
    ref_hn2, ref_cn2 = _reference(x, lengths, params, h0b, c0b)
    assert bool(jnp.max(jnp.abs(hn2 - ref_hn2)) < 3e-2), float(jnp.max(jnp.abs(hn2 - ref_hn2)))
    assert bool(jnp.max(jnp.abs(cn2 - ref_cn2)) < 5e-2), float(jnp.max(jnp.abs(cn2 - ref_cn2)))

    print("KERNEL_OK")
</pallas_src>

<mosaic_0001>
module attributes {stable_mosaic.version = 11 : i64} {
  func.func @_tanh_proj_kernel(%arg0: i32, %arg1: memref<32x32xf32, #tpu.memory_space<vmem>>, %arg2: memref<32x512xbf16, #tpu.memory_space<vmem>>, %arg3: memref<1x512xf32, #tpu.memory_space<vmem>>, %arg4: memref<32x512xbf16, #tpu.memory_space<vmem>>) attributes {dimension_semantics = [#tpu.dimension_semantics<parallel>], iteration_bounds = array<i64: 1>, scalar_prefetch = 0 : i64, scratch_operands = 0 : i64, tpu.core_type = #tpu.core_type<tc>, window_params = [{transform_indices = @transform_0, window_bounds = array<i64: 32, 32>}, {pipeline_mode = #tpu.pipeline_mode<synchronous>, transform_indices = @transform_1, window_bounds = array<i64: 32, 512>}, {pipeline_mode = #tpu.pipeline_mode<synchronous>, transform_indices = @transform_2, window_bounds = array<i64: 1, 512>}, {transform_indices = @transform_3, window_bounds = array<i64: 32, 512>}]} {
    %c0 = arith.constant 0 : index
    %c0_0 = arith.constant 0 : index
    %0 = vector.load %arg1[%c0, %c0_0] : memref<32x32xf32, #tpu.memory_space<vmem>>, vector<32x32xf32>
    %1 = math.tanh %0 : vector<32x32xf32>
    %2 = arith.truncf %1 : vector<32x32xf32> to vector<32x32xbf16>
    %c0_1 = arith.constant 0 : index
    %c0_2 = arith.constant 0 : index
    %3 = vector.load %arg2[%c0_1, %c0_2] : memref<32x512xbf16, #tpu.memory_space<vmem>>, vector<32x512xbf16>
    %cst = arith.constant dense<0.000000e+00> : vector<32x512xf32>
    %4 = tpu.matmul %2, %3, %cst {dimension_numbers = #tpu.dot_dimension_numbers<[1], [0], [0], [1], [0, 0, 1, 1], [], []>} : vector<32x32xbf16>, vector<32x512xbf16>, vector<32x512xf32> -> vector<32x512xf32>
    %c0_3 = arith.constant 0 : index
    %c0_4 = arith.constant 0 : index
    %5 = vector.load %arg3[%c0_3, %c0_4] : memref<1x512xf32, #tpu.memory_space<vmem>>, vector<1x512xf32>
    %6 = vector.broadcast %5 : vector<1x512xf32> to vector<32x512xf32>
    %7 = arith.addf %4, %6 : vector<32x512xf32>
    %8 = arith.truncf %7 : vector<32x512xf32> to vector<32x512xbf16>
    %c0_5 = arith.constant 0 : index
    %c0_6 = arith.constant 0 : index
    %9 = vector.load %arg4[%c0_5, %c0_6] : memref<32x512xbf16, #tpu.memory_space<vmem>>, vector<32x512xbf16>
    tpu.vector_store %arg4[%c0_5, %c0_6], %8 {strides = array<i32>} : memref<32x512xbf16, #tpu.memory_space<vmem>>, vector<32x512xbf16>,
    return
  }
  func.func @transform_0(%arg0: i32) -> (i32, i32) {
    %c0_i32 = arith.constant 0 : i32
    %c0_i32_0 = arith.constant 0 : i32
    return %arg0, %c0_i32 : i32, i32
  }
  func.func @transform_1(%arg0: i32) -> (i32, i32) {
    %c0_i32 = arith.constant 0 : i32
    %c0_i32_0 = arith.constant 0 : i32
    %c0_i32_1 = arith.constant 0 : i32
    return %c0_i32, %c0_i32_0 : i32, i32
  }
  func.func @transform_2(%arg0: i32) -> (i32, i32) {
    %c0_i32 = arith.constant 0 : i32
    %c0_i32_0 = arith.constant 0 : i32
    %c0_i32_1 = arith.constant 0 : i32
    return %c0_i32, %c0_i32_0 : i32, i32
  }
  func.func @transform_3(%arg0: i32) -> (i32, i32) {
    %c0_i32 = arith.constant 0 : i32
    %c0_i32_0 = arith.constant 0 : i32
    return %arg0, %c0_i32 : i32, i32
  }
}

module attributes {stable_mosaic.version = 11 : i64} {
  func.func @_lstm_chunk_kernel(%arg0: i32, %arg1: memref<2x16x512xbf16, #tpu.memory_space<vmem>>, %arg2: memref<128x512xbf16, #tpu.memory_space<vmem>>, %arg3: memref<2x1xi32, #tpu.memory_space<vmem>>, %arg4: memref<2x128xf32, #tpu.memory_space<vmem>>, %arg5: memref<2x128xf32, #tpu.memory_space<vmem>>, %arg6: memref<2x128xf32, #tpu.memory_space<vmem>>, %arg7: memref<2x128xf32, #tpu.memory_space<vmem>>) attributes {dimension_semantics = [#tpu.dimension_semantics<arbitrary>], iteration_bounds = array<i64: 1>, scalar_prefetch = 0 : i64, scratch_operands = 0 : i64, tpu.core_type = #tpu.core_type<tc>, window_params = [{transform_indices = @transform_0, window_bounds = array<i64: 2, 16, 512>}, {pipeline_mode = #tpu.pipeline_mode<synchronous>, transform_indices = @transform_1, window_bounds = array<i64: 128, 512>}, {pipeline_mode = #tpu.pipeline_mode<synchronous>, transform_indices = @transform_2, window_bounds = array<i64: 2, 1>}, {pipeline_mode = #tpu.pipeline_mode<synchronous>, transform_indices = @transform_3, window_bounds = array<i64: 2, 128>}, {pipeline_mode = #tpu.pipeline_mode<synchronous>, transform_indices = @transform_4, window_bounds = array<i64: 2, 128>}, {pipeline_mode = #tpu.pipeline_mode<synchronous>, transform_indices = @transform_5, window_bounds = array<i64: 2, 128>}, {pipeline_mode = #tpu.pipeline_mode<synchronous>, transform_indices = @transform_6, window_bounds = array<i64: 2, 128>}]} {
    %c0_i32 = arith.constant 0 : i32
    %0 = arith.cmpi eq, %arg0, %c0_i32 : i32
    %1 = arith.extui %0 : i1 to i32
    %c0_i32_0 = arith.constant 0 : i32
    %2 = arith.cmpi ne, %1, %c0_i32_0 : i32
    scf.if %2 {
      %c0_109 = arith.constant 0 : index
      %c0_110 = arith.constant 0 : index
      %650 = vector.load %arg4[%c0_109, %c0_110] : memref<2x128xf32, #tpu.memory_space<vmem>>, vector<2x128xf32>
      %c0_111 = arith.constant 0 : index
      %c0_112 = arith.constant 0 : index
      %651 = vector.load %arg6[%c0_111, %c0_112] : memref<2x128xf32, #tpu.memory_space<vmem>>, vector<2x128xf32>
      tpu.vector_store %arg6[%c0_111, %c0_112], %650 {strides = array<i32>} : memref<2x128xf32, #tpu.memory_space<vmem>>, vector<2x128xf32>,
      %c0_113 = arith.constant 0 : index
      %c0_114 = arith.constant 0 : index
      %652 = vector.load %arg5[%c0_113, %c0_114] : memref<2x128xf32, #tpu.memory_space<vmem>>, vector<2x128xf32>
      %c0_115 = arith.constant 0 : index
      %c0_116 = arith.constant 0 : index
      %653 = vector.load %arg7[%c0_115, %c0_116] : memref<2x128xf32, #tpu.memory_space<vmem>>, vector<2x128xf32>
      tpu.vector_store %arg7[%c0_115, %c0_116], %652 {strides = array<i32>} : memref<2x128xf32, #tpu.memory_space<vmem>>, vector<2x128xf32>,
    } else {
    }
    %c0 = arith.constant 0 : index
    %c0_1 = arith.constant 0 : index
    %3 = vector.load %arg6[%c0, %c0_1] : memref<2x128xf32, #tpu.memory_space<vmem>>, vector<2x128xf32>
    %c0_2 = arith.constant 0 : index
    %c0_3 = arith.constant 0 : index
    %4 = vector.load %arg7[%c0_2, %c0_3] : memref<2x128xf32, #tpu.memory_space<vmem>>, vector<2x128xf32>
    %c0_4 = arith.constant 0 : index
    %c0_5 = arith.constant 0 : index
    %5 = vector.load %arg2[%c0_4, %c0_5] : memref<128x512xbf16, #tpu.memory_space<vmem>>, vector<128x512xbf16>
    %c0_6 = arith.constant 0 : index
    %c0_7 = arith.constant 0 : index
    %6 = vector.load %arg3[%c0_6, %c0_7] : memref<2x1xi32, #tpu.memory_space<vmem>>, vector<2x1xi32>
    %c16_i32 = arith.constant 16 : i32
    %7 = arith.muli %arg0, %c16_i32 : i32
    %c0_8 = arith.constant 0 : index
    %c0_9 = arith.constant 0 : index
    %c0_10 = arith.constant 0 : index
    %8 = vector.load %arg1[%c0_8, %c0_9, %c0_10] : memref<2x16x512xbf16, #tpu.memory_space<vmem>>, vector<2x1x512xbf16>
    %9 = vector.shape_cast %8 : vector<2x1x512xbf16> to vector<2x512xbf16>
    %10 = arith.extf %9 : vector<2x512xbf16> to vector<2x512xf32>
    %11 = arith.truncf %3 : vector<2x128xf32> to vector<2x128xbf16>
    %cst = arith.constant dense<0.000000e+00> : vector<2x512xf32>
    %12 = tpu.matmul %11, %5, %cst {dimension_numbers = #tpu.dot_dimension_numbers<[1], [0], [0], [1], [0, 0, 1, 1], [], []>} : vector<2x128xbf16>, vector<128x512xbf16>, vector<2x512xf32> -> vector<2x512xf32>
    %13 = arith.addf %10, %12 : vector<2x512xf32>
    %14 = vector.extract_strided_slice %13 {offsets = [0, 0], sizes = [2, 128], strides = [1, 1]} : vector<2x512xf32> to vector<2x128xf32>
    %15 = arith.negf %14 : vector<2x128xf32>
    %16 = math.exp %15 : vector<2x128xf32>
    %cst_11 = arith.constant 1.000000e+00 : f32
    %17 = vector.broadcast %cst_11 : f32 to vector<2x128xf32>
    %18 = arith.addf %17, %16 : vector<2x128xf32>
    %19 = arith.divf %17, %18 : vector<2x128xf32>
    %20 = vector.extract_strided_slice %13 {offsets = [0, 128], sizes = [2, 128], strides = [1, 1]} : vector<2x512xf32> to vector<2x128xf32>
    %21 = arith.negf %20 : vector<2x128xf32>
    %22 = math.exp %21 : vector<2x128xf32>
    %cst_12 = arith.constant 1.000000e+00 : f32
    %23 = vector.broadcast %cst_12 : f32 to vector<2x128xf32>
    %24 = arith.addf %23, %22 : vector<2x128xf32>
    %25 = arith.divf %23, %24 : vector<2x128xf32>
    %26 = vector.extract_strided_slice %13 {offsets = [0, 256], sizes = [2, 128], strides = [1, 1]} : vector<2x512xf32> to vector<2x128xf32>
    %27 = math.tanh %26 : vector<2x128xf32>
    %28 = vector.extract_strided_slice %13 {offsets = [0, 384], sizes = [2, 128], strides = [1, 1]} : vector<2x512xf32> to vector<2x128xf32>
    %29 = arith.negf %28 : vector<2x128xf32>
    %30 = math.exp %29 : vector<2x128xf32>
    %cst_13 = arith.constant 1.000000e+00 : f32
    %31 = vector.broadcast %cst_13 : f32 to vector<2x128xf32>
    %32 = arith.addf %31, %30 : vector<2x128xf32>
    %33 = arith.divf %31, %32 : vector<2x128xf32>
    %34 = arith.mulf %25, %4 : vector<2x128xf32>
    %35 = arith.mulf %19, %27 : vector<2x128xf32>
    %36 = arith.addf %34, %35 : vector<2x128xf32>
    %37 = math.tanh %36 : vector<2x128xf32>
    %38 = arith.mulf %33, %37 : vector<2x128xf32>
    %c0_i32_14 = arith.constant 0 : i32
    %39 = arith.addi %7, %c0_i32_14 : i32
    %40 = vector.broadcast %39 : i32 to vector<2x1xi32>
    %41 = arith.cmpi slt, %40, %6 : vector<2x1xi32>
    %42 = vector.shape_cast %41 : vector<2x1xi1> to vector<2x1xi1>
    %43 = vector.broadcast %42 : vector<2x1xi1> to vector<2x128xi1>
    %44 = arith.select %43, %38, %3 : vector<2x128xi1>, vector<2x128xf32>
    %45 = vector.shape_cast %41 : vector<2x1xi1> to vector<2x1xi1>
    %46 = vector.broadcast %45 : vector<2x1xi1> to vector<2x128xi1>
    %47 = arith.select %46, %36, %4 : vector<2x128xi1>, vector<2x128xf32>
    %c0_15 = arith.constant 0 : index
    %c1 = arith.constant 1 : index
    %c0_16 = arith.constant 0 : index
    %48 = vector.load %arg1[%c0_15, %c1, %c0_16] : memref<2x16x512xbf16, #tpu.memory_space<vmem>>, vector<2x1x512xbf16>
    %49 = vector.shape_cast %48 : vector<2x1x512xbf16> to vector<2x512xbf16>
    %50 = arith.extf %49 : vector<2x512xbf16> to vector<2x512xf32>
    %51 = arith.truncf %44 : vector<2x128xf32> to vector<2x128xbf16>
    %cst_17 = arith.constant dense<0.000000e+00> : vector<2x512xf32>
    %52 = tpu.matmul %51, %5, %cst_17 {dimension_numbers = #tpu.dot_dimension_numbers<[1], [0], [0], [1], [0, 0, 1, 1], [], []>} : vector<2x128xbf16>, vector<128x512xbf16>, vector<2x512xf32> -> vector<2x512xf32>
    %53 = arith.addf %50, %52 : vector<2x512xf32>
    %54 = vector.extract_strided_slice %53 {offsets = [0, 0], sizes = [2, 128], strides = [1, 1]} : vector<2x512xf32> to vector<2x128xf32>
    %55 = arith.negf %54 : vector<2x128xf32>
    %56 = math.exp %55 : vector<2x128xf32>
    %cst_18 = arith.constant 1.000000e+00 : f32
    %57 = vector.broadcast %cst_18 : f32 to vector<2x128xf32>
    %58 = arith.addf %57, %56 : vector<2x128xf32>
    %59 = arith.divf %57, %58 : vector<2x128xf32>
    %60 = vector.extract_strided_slice %53 {offsets = [0, 128], sizes = [2, 128], strides = [1, 1]} : vector<2x512xf32> to vector<2x128xf32>
    %61 = arith.negf %60 : vector<2x128xf32>
    %62 = math.exp %61 : vector<2x128xf32>
    %cst_19 = arith.constant 1.000000e+00 : f32
    %63 = vector.broadcast %cst_19 : f32 to vector<2x128xf32>
    %64 = arith.addf %63, %62 : vector<2x128xf32>
    %65 = arith.divf %63, %64 : vector<2x128xf32>
    %66 = vector.extract_strided_slice %53 {offsets = [0, 256], sizes = [2, 128], strides = [1, 1]} : vector<2x512xf32> to vector<2x128xf32>
    %67 = math.tanh %66 : vector<2x128xf32>
    %68 = vector.extract_strided_slice %53 {offsets = [0, 384], sizes = [2, 128], strides = [1, 1]} : vector<2x512xf32> to vector<2x128xf32>
    %69 = arith.negf %68 : vector<2x128xf32>
    %70 = math.exp %69 : vector<2x128xf32>
    %cst_20 = arith.constant 1.000000e+00 : f32
    %71 = vector.broadcast %cst_20 : f32 to vector<2x128xf32>
    %72 = arith.addf %71, %70 : vector<2x128xf32>
    %73 = arith.divf %71, %72 : vector<2x128xf32>
    %74 = arith.mulf %65, %47 : vector<2x128xf32>
    %75 = arith.mulf %59, %67 : vector<2x128xf32>
    %76 = arith.addf %74, %75 : vector<2x128xf32>
    %77 = math.tanh %76 : vector<2x128xf32>
    %78 = arith.mulf %73, %77 : vector<2x128xf32>
    %c1_i32 = arith.constant 1 : i32
    %79 = arith.addi %7, %c1_i32 : i32
    %80 = vector.broadcast %79 : i32 to vector<2x1xi32>
    %81 = arith.cmpi slt, %80, %6 : vector<2x1xi32>
    %82 = vector.shape_cast %81 : vector<2x1xi1> to vector<2x1xi1>
    %83 = vector.broadcast %82 : vector<2x1xi1> to vector<2x128xi1>
    %84 = arith.select %83, %78, %44 : vector<2x128xi1>, vector<2x128xf32>
    %85 = vector.shape_cast %81 : vector<2x1xi1> to vector<2x1xi1>
    %86 = vector.broadcast %85 : vector<2x1xi1> to vector<2x128xi1>
    %87 = arith.select %86, %76, %47 : vector<2x128xi1>, vector<2x128xf32>
    %c0_21 = arith.constant 0 : index
    %c2 = arith.constant 2 : index
    %c0_22 = arith.constant 0 : index
    %88 = vector.load %arg1[%c0_21, %c2, %c0_22] : memref<2x16x512xbf16, #tpu.memory_space<vmem>>, vector<2x1x512xbf16>
    %89 = vector.shape_cast %88 : vector<2x1x512xbf16> to vector<2x512xbf16>
    %90 = arith.extf %89 : vector<2x512xbf16> to vector<2x512xf32>
    %91 = arith.truncf %84 : vector<2x128xf32> to vector<2x128xbf16>
    %cst_23 = arith.constant dense<0.000000e+00> : vector<2x512xf32>
    %92 = tpu.matmul %91, %5, %cst_23 {dimension_numbers = #tpu.dot_dimension_numbers<[1], [0], [0], [1], [0, 0, 1, 1], [], []>} : vector<2x128xbf16>, vector<128x512xbf16>, vector<2x512xf32> -> vector<2x512xf32>
    %93 = arith.addf %90, %92 : vector<2x512xf32>
    %94 = vector.extract_strided_slice %93 {offsets = [0, 0], sizes = [2, 128], strides = [1, 1]} : vector<2x512xf32> to vector<2x128xf32>
    %95 = arith.negf %94 : vector<2x128xf32>
    %96 = math.exp %95 : vector<2x128xf32>
    %cst_24 = arith.constant 1.000000e+00 : f32
    %97 = vector.broadcast %cst_24 : f32 to vector<2x128xf32>
    %98 = arith.addf %97, %96 : vector<2x128xf32>
    %99 = arith.divf %97, %98 : vector<2x128xf32>
    %100 = vector.extract_strided_slice %93 {offsets = [0, 128], sizes = [2, 128], strides = [1, 1]} : vector<2x512xf32> to vector<2x128xf32>
    %101 = arith.negf %100 : vector<2x128xf32>
    %102 = math.exp %101 : vector<2x128xf32>
    %cst_25 = arith.constant 1.000000e+00 : f32
    %103 = vector.broadcast %cst_25 : f32 to vector<2x128xf32>
    %104 = arith.addf %103, %102 : vector<2x128xf32>
    %105 = arith.divf %103, %104 : vector<2x128xf32>
    %106 = vector.extract_strided_slice %93 {offsets = [0, 256], sizes = [2, 128], strides = [1, 1]} : vector<2x512xf32> to vector<2x128xf32>
    %107 = math.tanh %106 : vector<2x128xf32>
    %108 = vector.extract_strided_slice %93 {offsets = [0, 384], sizes = [2, 128], strides = [1, 1]} : vector<2x512xf32> to vector<2x128xf32>
    %109 = arith.negf %108 : vector<2x128xf32>
    %110 = math.exp %109 : vector<2x128xf32>
    %cst_26 = arith.constant 1.000000e+00 : f32
    %111 = vector.broadcast %cst_26 : f32 to vector<2x128xf32>
    %112 = arith.addf %111, %110 : vector<2x128xf32>
    %113 = arith.divf %111, %112 : vector<2x128xf32>
    %114 = arith.mulf %105, %87 : vector<2x128xf32>
    %115 = arith.mulf %99, %107 : vector<2x128xf32>
    %116 = arith.addf %114, %115 : vector<2x128xf32>
    %117 = math.tanh %116 : vector<2x128xf32>
    %118 = arith.mulf %113, %117 : vector<2x128xf32>
    %c2_i32 = arith.constant 2 : i32
    %119 = arith.addi %7, %c2_i32 : i32
    %120 = vector.broadcast %119 : i32 to vector<2x1xi32>
    %121 = arith.cmpi slt, %120, %6 : vector<2x1xi32>
    %122 = vector.shape_cast %121 : vector<2x1xi1> to vector<2x1xi1>
    %123 = vector.broadcast %122 : vector<2x1xi1> to vector<2x128xi1>
    %124 = arith.select %123, %118, %84 : vector<2x128xi1>, vector<2x128xf32>
    %125 = vector.shape_cast %121 : vector<2x1xi1> to vector<2x1xi1>
    %126 = vector.broadcast %125 : vector<2x1xi1> to vector<2x128xi1>
    %127 = arith.select %126, %116, %87 : vector<2x128xi1>, vector<2x128xf32>
    %c0_27 = arith.constant 0 : index
    %c3 = arith.constant 3 : index
    %c0_28 = arith.constant 0 : index
    %128 = vector.load %arg1[%c0_27, %c3, %c0_28] : memref<2x16x512xbf16, #tpu.memory_space<vmem>>, vector<2x1x512xbf16>
    %129 = vector.shape_cast %128 : vector<2x1x512xbf16> to vector<2x512xbf16>
    %130 = arith.extf %129 : vector<2x512xbf16> to vector<2x512xf32>
    %131 = arith.truncf %124 : vector<2x128xf32> to vector<2x128xbf16>
    %cst_29 = arith.constant dense<0.000000e+00> : vector<2x512xf32>
    %132 = tpu.matmul %131, %5, %cst_29 {dimension_numbers = #tpu.dot_dimension_numbers<[1], [0], [0], [1], [0, 0, 1, 1], [], []>} : vector<2x128xbf16>, vector<128x512xbf16>, vector<2x512xf32> -> vector<2x512xf32>
    %133 = arith.addf %130, %132 : vector<2x512xf32>
    %134 = vector.extract_strided_slice %133 {offsets = [0, 0], sizes = [2, 128], strides = [1, 1]} : vector<2x512xf32> to vector<2x128xf32>
    %135 = arith.negf %134 : vector<2x128xf32>
    %136 = math.exp %135 : vector<2x128xf32>
    %cst_30 = arith.constant 1.000000e+00 : f32
    %137 = vector.broadcast %cst_30 : f32 to vector<2x128xf32>
    %138 = arith.addf %137, %136 : vector<2x128xf32>
    %139 = arith.divf %137, %138 : vector<2x128xf32>
    %140 = vector.extract_strided_slice %133 {offsets = [0, 128], sizes = [2, 128], strides = [1, 1]} : vector<2x512xf32> to vector<2x128xf32>
    %141 = arith.negf %140 : vector<2x128xf32>
    %142 = math.exp %141 : vector<2x128xf32>
    %cst_31 = arith.constant 1.000000e+00 : f32
    %143 = vector.broadcast %cst_31 : f32 to vector<2x128xf32>
    %144 = arith.addf %143, %142 : vector<2x128xf32>
    %145 = arith.divf %143, %144 : vector<2x128xf32>
    %146 = vector.extract_strided_slice %133 {offsets = [0, 256], sizes = [2, 128], strides = [1, 1]} : vector<2x512xf32> to vector<2x128xf32>
    %147 = math.tanh %146 : vector<2x128xf32>
    %148 = vector.extract_strided_slice %133 {offsets = [0, 384], sizes = [2, 128], strides = [1, 1]} : vector<2x512xf32> to vector<2x128xf32>
    %149 = arith.negf %148 : vector<2x128xf32>
    %150 = math.exp %149 : vector<2x128xf32>
    %cst_32 = arith.constant 1.000000e+00 : f32
    %151 = vector.broadcast %cst_32 : f32 to vector<2x128xf32>
    %152 = arith.addf %151, %150 : vector<2x128xf32>
    %153 = arith.divf %151, %152 : vector<2x128xf32>
    %154 = arith.mulf %145, %127 : vector<2x128xf32>
    %155 = arith.mulf %139, %147 : vector<2x128xf32>
    %156 = arith.addf %154, %155 : vector<2x128xf32>
    %157 = math.tanh %156 : vector<2x128xf32>
    %158 = arith.mulf %153, %157 : vector<2x128xf32>
    %c3_i32 = arith.constant 3 : i32
    %159 = arith.addi %7, %c3_i32 : i32
    %160 = vector.broadcast %159 : i32 to vector<2x1xi32>
    %161 = arith.cmpi slt, %160, %6 : vector<2x1xi32>
    %162 = vector.shape_cast %161 : vector<2x1xi1> to vector<2x1xi1>
    %163 = vector.broadcast %162 : vector<2x1xi1> to vector<2x128xi1>
    %164 = arith.select %163, %158, %124 : vector<2x128xi1>, vector<2x128xf32>
    %165 = vector.shape_cast %161 : vector<2x1xi1> to vector<2x1xi1>
    %166 = vector.broadcast %165 : vector<2x1xi1> to vector<2x128xi1>
    %167 = arith.select %166, %156, %127 : vector<2x128xi1>, vector<2x128xf32>
    %c0_33 = arith.constant 0 : index
    %c4 = arith.constant 4 : index
    %c0_34 = arith.constant 0 : index
    %168 = vector.load %arg1[%c0_33, %c4, %c0_34] : memref<2x16x512xbf16, #tpu.memory_space<vmem>>, vector<2x1x512xbf16>
    %169 = vector.shape_cast %168 : vector<2x1x512xbf16> to vector<2x512xbf16>
    %170 = arith.extf %169 : vector<2x512xbf16> to vector<2x512xf32>
    %171 = arith.truncf %164 : vector<2x128xf32> to vector<2x128xbf16>
    %cst_35 = arith.constant dense<0.000000e+00> : vector<2x512xf32>
    %172 = tpu.matmul %171, %5, %cst_35 {dimension_numbers = #tpu.dot_dimension_numbers<[1], [0], [0], [1], [0, 0, 1, 1], [], []>} : vector<2x128xbf16>, vector<128x512xbf16>, vector<2x512xf32> -> vector<2x512xf32>
    %173 = arith.addf %170, %172 : vector<2x512xf32>
    %174 = vector.extract_strided_slice %173 {offsets = [0, 0], sizes = [2, 128], strides = [1, 1]} : vector<2x512xf32> to vector<2x128xf32>
    %175 = arith.negf %174 : vector<2x128xf32>
    %176 = math.exp %175 : vector<2x128xf32>
    %cst_36 = arith.constant 1.000000e+00 : f32
    %177 = vector.broadcast %cst_36 : f32 to vector<2x128xf32>
    %178 = arith.addf %177, %176 : vector<2x128xf32>
    %179 = arith.divf %177, %178 : vector<2x128xf32>
    %180 = vector.extract_strided_slice %173 {offsets = [0, 128], sizes = [2, 128], strides = [1, 1]} : vector<2x512xf32> to vector<2x128xf32>
    %181 = arith.negf %180 : vector<2x128xf32>
    %182 = math.exp %181 : vector<2x128xf32>
    %cst_37 = arith.constant 1.000000e+00 : f32
    %183 = vector.broadcast %cst_37 : f32 to vector<2x128xf32>
    %184 = arith.addf %183, %182 : vector<2x128xf32>
    %185 = arith.divf %183, %184 : vector<2x128xf32>
    %186 = vector.extract_strided_slice %173 {offsets = [0, 256], sizes = [2, 128], strides = [1, 1]} : vector<2x512xf32> to vector<2x128xf32>
    %187 = math.tanh %186 : vector<2x128xf32>
    %188 = vector.extract_strided_slice %173 {offsets = [0, 384], sizes = [2, 128], strides = [1, 1]} : vector<2x512xf32> to vector<2x128xf32>
    %189 = arith.negf %188 : vector<2x128xf32>
    %190 = math.exp %189 : vector<2x128xf32>
    %cst_38 = arith.constant 1.000000e+00 : f32
    %191 = vector.broadcast %cst_38 : f32 to vector<2x128xf32>
    %192 = arith.addf %191, %190 : vector<2x128xf32>
    %193 = arith.divf %191, %192 : vector<2x128xf32>
    %194 = arith.mulf %185, %167 : vector<2x128xf32>
    %195 = arith.mulf %179, %187 : vector<2x128xf32>
    %196 = arith.addf %194, %195 : vector<2x128xf32>
    %197 = math.tanh %196 : vector<2x128xf32>
    %198 = arith.mulf %193, %197 : vector<2x128xf32>
    %c4_i32 = arith.constant 4 : i32
    %199 = arith.addi %7, %c4_i32 : i32
    %200 = vector.broadcast %199 : i32 to vector<2x1xi32>
    %201 = arith.cmpi slt, %200, %6 : vector<2x1xi32>
    %202 = vector.shape_cast %201 : vector<2x1xi1> to vector<2x1xi1>
    %203 = vector.broadcast %202 : vector<2x1xi1> to vector<2x128xi1>
    %204 = arith.select %203, %198, %164 : vector<2x128xi1>, vector<2x128xf32>
    %205 = vector.shape_cast %201 : vector<2x1xi1> to vector<2x1xi1>
    %206 = vector.broadcast %205 : vector<2x1xi1> to vector<2x128xi1>
    %207 = arith.select %206, %196, %167 : vector<2x128xi1>, vector<2x128xf32>
    %c0_39 = arith.constant 0 : index
    %c5 = arith.constant 5 : index
    %c0_40 = arith.constant 0 : index
    %208 = vector.load %arg1[%c0_39, %c5, %c0_40] : memref<2x16x512xbf16, #tpu.memory_space<vmem>>, vector<2x1x512xbf16>
    %209 = vector.shape_cast %208 : vector<2x1x512xbf16> to vector<2x512xbf16>
    %210 = arith.extf %209 : vector<2x512xbf16> to vector<2x512xf32>
    %211 = arith.truncf %204 : vector<2x128xf32> to vector<2x128xbf16>
    %cst_41 = arith.constant dense<0.000000e+00> : vector<2x512xf32>
    %212 = tpu.matmul %211, %5, %cst_41 {dimension_numbers = #tpu.dot_dimension_numbers<[1], [0], [0], [1], [0, 0, 1, 1], [], []>} : vector<2x128xbf16>, vector<128x512xbf16>, vector<2x512xf32> -> vector<2x512xf32>
    %213 = arith.addf %210, %212 : vector<2x512xf32>
    %214 = vector.extract_strided_slice %213 {offsets = [0, 0], sizes = [2, 128], strides = [1, 1]} : vector<2x512xf32> to vector<2x128xf32>
    %215 = arith.negf %214 : vector<2x128xf32>
    %216 = math.exp %215 : vector<2x128xf32>
    %cst_42 = arith.constant 1.000000e+00 : f32
    %217 = vector.broadcast %cst_42 : f32 to vector<2x128xf32>
    %218 = arith.addf %217, %216 : vector<2x128xf32>
    %219 = arith.divf %217, %218 : vector<2x128xf32>
    %220 = vector.extract_strided_slice %213 {offsets = [0, 128], sizes = [2, 128], strides = [1, 1]} : vector<2x512xf32> to vector<2x128xf32>
    %221 = arith.negf %220 : vector<2x128xf32>
    %222 = math.exp %221 : vector<2x128xf32>
    %cst_43 = arith.constant 1.000000e+00 : f32
    %223 = vector.broadcast %cst_43 : f32 to vector<2x128xf32>
    %224 = arith.addf %223, %222 : vector<2x128xf32>
    %225 = arith.divf %223, %224 : vector<2x128xf32>
    %226 = vector.extract_strided_slice %213 {offsets = [0, 256], sizes = [2, 128], strides = [1, 1]} : vector<2x512xf32> to vector<2x128xf32>
    %227 = math.tanh %226 : vector<2x128xf32>
    %228 = vector.extract_strided_slice %213 {offsets = [0, 384], sizes = [2, 128], strides = [1, 1]} : vector<2x512xf32> to vector<2x128xf32>
    %229 = arith.negf %228 : vector<2x128xf32>
    %230 = math.exp %229 : vector<2x128xf32>
    %cst_44 = arith.constant 1.000000e+00 : f32
    %231 = vector.broadcast %cst_44 : f32 to vector<2x128xf32>
    %232 = arith.addf %231, %230 : vector<2x128xf32>
    %233 = arith.divf %231, %232 : vector<2x128xf32>
    %234 = arith.mulf %225, %207 : vector<2x128xf32>
    %235 = arith.mulf %219, %227 : vector<2x128xf32>
    %236 = arith.addf %234, %235 : vector<2x128xf32>
    %237 = math.tanh %236 : vector<2x128xf32>
    %238 = arith.mulf %233, %237 : vector<2x128xf32>
    %c5_i32 = arith.constant 5 : i32
    %239 = arith.addi %7, %c5_i32 : i32
    %240 = vector.broadcast %239 : i32 to vector<2x1xi32>
    %241 = arith.cmpi slt, %240, %6 : vector<2x1xi32>
    %242 = vector.shape_cast %241 : vector<2x1xi1> to vector<2x1xi1>
    %243 = vector.broadcast %242 : vector<2x1xi1> to vector<2x128xi1>
    %244 = arith.select %243, %238, %204 : vector<2x128xi1>, vector<2x128xf32>
    %245 = vector.shape_cast %241 : vector<2x1xi1> to vector<2x1xi1>
    %246 = vector.broadcast %245 : vector<2x1xi1> to vector<2x128xi1>
    %247 = arith.select %246, %236, %207 : vector<2x128xi1>, vector<2x128xf32>
    %c0_45 = arith.constant 0 : index
    %c6 = arith.constant 6 : index
    %c0_46 = arith.constant 0 : index
    %248 = vector.load %arg1[%c0_45, %c6, %c0_46] : memref<2x16x512xbf16, #tpu.memory_space<vmem>>, vector<2x1x512xbf16>
    %249 = vector.shape_cast %248 : vector<2x1x512xbf16> to vector<2x512xbf16>
    %250 = arith.extf %249 : vector<2x512xbf16> to vector<2x512xf32>
    %251 = arith.truncf %244 : vector<2x128xf32> to vector<2x128xbf16>
    %cst_47 = arith.constant dense<0.000000e+00> : vector<2x512xf32>
    %252 = tpu.matmul %251, %5, %cst_47 {dimension_numbers = #tpu.dot_dimension_numbers<[1], [0], [0], [1], [0, 0, 1, 1], [], []>} : vector<2x128xbf16>, vector<128x512xbf16>, vector<2x512xf32> -> vector<2x512xf32>
    %253 = arith.addf %250, %252 : vector<2x512xf32>
    %254 = vector.extract_strided_slice %253 {offsets = [0, 0], sizes = [2, 128], strides = [1, 1]} : vector<2x512xf32> to vector<2x128xf32>
    %255 = arith.negf %254 : vector<2x128xf32>
    %256 = math.exp %255 : vector<2x128xf32>
    %cst_48 = arith.constant 1.000000e+00 : f32
    %257 = vector.broadcast %cst_48 : f32 to vector<2x128xf32>
    %258 = arith.addf %257, %256 : vector<2x128xf32>
    %259 = arith.divf %257, %258 : vector<2x128xf32>
    %260 = vector.extract_strided_slice %253 {offsets = [0, 128], sizes = [2, 128], strides = [1, 1]} : vector<2x512xf32> to vector<2x128xf32>
    %261 = arith.negf %260 : vector<2x128xf32>
    %262 = math.exp %261 : vector<2x128xf32>
    %cst_49 = arith.constant 1.000000e+00 : f32
    %263 = vector.broadcast %cst_49 : f32 to vector<2x128xf32>
    %264 = arith.addf %263, %262 : vector<2x128xf32>
    %265 = arith.divf %263, %264 : vector<2x128xf32>
    %266 = vector.extract_strided_slice %253 {offsets = [0, 256], sizes = [2, 128], strides = [1, 1]} : vector<2x512xf32> to vector<2x128xf32>
    %267 = math.tanh %266 : vector<2x128xf32>
    %268 = vector.extract_strided_slice %253 {offsets = [0, 384], sizes = [2, 128], strides = [1, 1]} : vector<2x512xf32> to vector<2x128xf32>
    %269 = arith.negf %268 : vector<2x128xf32>
    %270 = math.exp %269 : vector<2x128xf32>
    %cst_50 = arith.constant 1.000000e+00 : f32
    %271 = vector.broadcast %cst_50 : f32 to vector<2x128xf32>
    %272 = arith.addf %271, %270 : vector<2x128xf32>
    %273 = arith.divf %271, %272 : vector<2x128xf32>
    %274 = arith.mulf %265, %247 : vector<2x128xf32>
    %275 = arith.mulf %259, %267 : vector<2x128xf32>
    %276 = arith.addf %274, %275 : vector<2x128xf32>
    %277 = math.tanh %276 : vector<2x128xf32>
    %278 = arith.mulf %273, %277 : vector<2x128xf32>
    %c6_i32 = arith.constant 6 : i32
    %279 = arith.addi %7, %c6_i32 : i32
    %280 = vector.broadcast %279 : i32 to vector<2x1xi32>
    %281 = arith.cmpi slt, %280, %6 : vector<2x1xi32>
    %282 = vector.shape_cast %281 : vector<2x1xi1> to vector<2x1xi1>
    %283 = vector.broadcast %282 : vector<2x1xi1> to vector<2x128xi1>
    %284 = arith.select %283, %278, %244 : vector<2x128xi1>, vector<2x128xf32>
    %285 = vector.shape_cast %281 : vector<2x1xi1> to vector<2x1xi1>
    %286 = vector.broadcast %285 : vector<2x1xi1> to vector<2x128xi1>
    %287 = arith.select %286, %276, %247 : vector<2x128xi1>, vector<2x128xf32>
    %c0_51 = arith.constant 0 : index
    %c7 = arith.constant 7 : index
    %c0_52 = arith.constant 0 : index
    %288 = vector.load %arg1[%c0_51, %c7, %c0_52] : memref<2x16x512xbf16, #tpu.memory_space<vmem>>, vector<2x1x512xbf16>
    %289 = vector.shape_cast %288 : vector<2x1x512xbf16> to vector<2x512xbf16>
    %290 = arith.extf %289 : vector<2x512xbf16> to vector<2x512xf32>
    %291 = arith.truncf %284 : vector<2x128xf32> to vector<2x128xbf16>
    %cst_53 = arith.constant dense<0.000000e+00> : vector<2x512xf32>
    %292 = tpu.matmul %291, %5, %cst_53 {dimension_numbers = #tpu.dot_dimension_numbers<[1], [0], [0], [1], [0, 0, 1, 1], [], []>} : vector<2x128xbf16>, vector<128x512xbf16>, vector<2x512xf32> -> vector<2x512xf32>
    %293 = arith.addf %290, %292 : vector<2x512xf32>
    %294 = vector.extract_strided_slice %293 {offsets = [0, 0], sizes = [2, 128], strides = [1, 1]} : vector<2x512xf32> to vector<2x128xf32>
    %295 = arith.negf %294 : vector<2x128xf32>
    %296 = math.exp %295 : vector<2x128xf32>
    %cst_54 = arith.constant 1.000000e+00 : f32
    %297 = vector.broadcast %cst_54 : f32 to vector<2x128xf32>
    %298 = arith.addf %297, %296 : vector<2x128xf32>
    %299 = arith.divf %297, %298 : vector<2x128xf32>
    %300 = vector.extract_strided_slice %293 {offsets = [0, 128], sizes = [2, 128], strides = [1, 1]} : vector<2x512xf32> to vector<2x128xf32>
    %301 = arith.negf %300 : vector<2x128xf32>
    %302 = math.exp %301 : vector<2x128xf32>
    %cst_55 = arith.constant 1.000000e+00 : f32
    %303 = vector.broadcast %cst_55 : f32 to vector<2x128xf32>
    %304 = arith.addf %303, %302 : vector<2x128xf32>
    %305 = arith.divf %303, %304 : vector<2x128xf32>
    %306 = vector.extract_strided_slice %293 {offsets = [0, 256], sizes = [2, 128], strides = [1, 1]} : vector<2x512xf32> to vector<2x128xf32>
    %307 = math.tanh %306 : vector<2x128xf32>
    %308 = vector.extract_strided_slice %293 {offsets = [0, 384], sizes = [2, 128], strides = [1, 1]} : vector<2x512xf32> to vector<2x128xf32>
    %309 = arith.negf %308 : vector<2x128xf32>
    %310 = math.exp %309 : vector<2x128xf32>
    %cst_56 = arith.constant 1.000000e+00 : f32
    %311 = vector.broadcast %cst_56 : f32 to vector<2x128xf32>
    %312 = arith.addf %311, %310 : vector<2x128xf32>
    %313 = arith.divf %311, %312 : vector<2x128xf32>
    %314 = arith.mulf %305, %287 : vector<2x128xf32>
    %315 = arith.mulf %299, %307 : vector<2x128xf32>
    %316 = arith.addf %314, %315 : vector<2x128xf32>
    %317 = math.tanh %316 : vector<2x128xf32>
    %318 = arith.mulf %313, %317 : vector<2x128xf32>
    %c7_i32 = arith.constant 7 : i32
    %319 = arith.addi %7, %c7_i32 : i32
    %320 = vector.broadcast %319 : i32 to vector<2x1xi32>
    %321 = arith.cmpi slt, %320, %6 : vector<2x1xi32>
    %322 = vector.shape_cast %321 : vector<2x1xi1> to vector<2x1xi1>
    %323 = vector.broadcast %322 : vector<2x1xi1> to vector<2x128xi1>
    %324 = arith.select %323, %318, %284 : vector<2x128xi1>, vector<2x128xf32>
    %325 = vector.shape_cast %321 : vector<2x1xi1> to vector<2x1xi1>
    %326 = vector.broadcast %325 : vector<2x1xi1> to vector<2x128xi1>
    %327 = arith.select %326, %316, %287 : vector<2x128xi1>, vector<2x128xf32>
    %c0_57 = arith.constant 0 : index
    %c8 = arith.constant 8 : index
    %c0_58 = arith.constant 0 : index
    %328 = vector.load %arg1[%c0_57, %c8, %c0_58] : memref<2x16x512xbf16, #tpu.memory_space<vmem>>, vector<2x1x512xbf16>
    %329 = vector.shape_cast %328 : vector<2x1x512xbf16> to vector<2x512xbf16>
    %330 = arith.extf %329 : vector<2x512xbf16> to vector<2x512xf32>
    %331 = arith.truncf %324 : vector<2x128xf32> to vector<2x128xbf16>
    %cst_59 = arith.constant dense<0.000000e+00> : vector<2x512xf32>
    %332 = tpu.matmul %331, %5, %cst_59 {dimension_numbers = #tpu.dot_dimension_numbers<[1], [0], [0], [1], [0, 0, 1, 1], [], []>} : vector<2x128xbf16>, vector<128x512xbf16>, vector<2x512xf32> -> vector<2x512xf32>
    %333 = arith.addf %330, %332 : vector<2x512xf32>
    %334 = vector.extract_strided_slice %333 {offsets = [0, 0], sizes = [2, 128], strides = [1, 1]} : vector<2x512xf32> to vector<2x128xf32>
    %335 = arith.negf %334 : vector<2x128xf32>
    %336 = math.exp %335 : vector<2x128xf32>
    %cst_60 = arith.constant 1.000000e+00 : f32
    %337 = vector.broadcast %cst_60 : f32 to vector<2x128xf32>
    %338 = arith.addf %337, %336 : vector<2x128xf32>
    %339 = arith.divf %337, %338 : vector<2x128xf32>
    %340 = vector.extract_strided_slice %333 {offsets = [0, 128], sizes = [2, 128], strides = [1, 1]} : vector<2x512xf32> to vector<2x128xf32>
    %341 = arith.negf %340 : vector<2x128xf32>
    %342 = math.exp %341 : vector<2x128xf32>
    %cst_61 = arith.constant 1.000000e+00 : f32
    %343 = vector.broadcast %cst_61 : f32 to vector<2x128xf32>
    %344 = arith.addf %343, %342 : vector<2x128xf32>
    %345 = arith.divf %343, %344 : vector<2x128xf32>
    %346 = vector.extract_strided_slice %333 {offsets = [0, 256], sizes = [2, 128], strides = [1, 1]} : vector<2x512xf32> to vector<2x128xf32>
    %347 = math.tanh %346 : vector<2x128xf32>
    %348 = vector.extract_strided_slice %333 {offsets = [0, 384], sizes = [2, 128], strides = [1, 1]} : vector<2x512xf32> to vector<2x128xf32>
    %349 = arith.negf %348 : vector<2x128xf32>
    %350 = math.exp %349 : vector<2x128xf32>
    %cst_62 = arith.constant 1.000000e+00 : f32
    %351 = vector.broadcast %cst_62 : f32 to vector<2x128xf32>
    %352 = arith.addf %351, %350 : vector<2x128xf32>
    %353 = arith.divf %351, %352 : vector<2x128xf32>
    %354 = arith.mulf %345, %327 : vector<2x128xf32>
    %355 = arith.mulf %339, %347 : vector<2x128xf32>
    %356 = arith.addf %354, %355 : vector<2x128xf32>
    %357 = math.tanh %356 : vector<2x128xf32>
    %358 = arith.mulf %353, %357 : vector<2x128xf32>
    %c8_i32 = arith.constant 8 : i32
    %359 = arith.addi %7, %c8_i32 : i32
    %360 = vector.broadcast %359 : i32 to vector<2x1xi32>
    %361 = arith.cmpi slt, %360, %6 : vector<2x1xi32>
    %362 = vector.shape_cast %361 : vector<2x1xi1> to vector<2x1xi1>
    %363 = vector.broadcast %362 : vector<2x1xi1> to vector<2x128xi1>
    %364 = arith.select %363, %358, %324 : vector<2x128xi1>, vector<2x128xf32>
    %365 = vector.shape_cast %361 : vector<2x1xi1> to vector<2x1xi1>
    %366 = vector.broadcast %365 : vector<2x1xi1> to vector<2x128xi1>
    %367 = arith.select %366, %356, %327 : vector<2x128xi1>, vector<2x128xf32>
    %c0_63 = arith.constant 0 : index
    %c9 = arith.constant 9 : index
    %c0_64 = arith.constant 0 : index
    %368 = vector.load %arg1[%c0_63, %c9, %c0_64] : memref<2x16x512xbf16, #tpu.memory_space<vmem>>, vector<2x1x512xbf16>
    %369 = vector.shape_cast %368 : vector<2x1x512xbf16> to vector<2x512xbf16>
    %370 = arith.extf %369 : vector<2x512xbf16> to vector<2x512xf32>
    %371 = arith.truncf %364 : vector<2x128xf32> to vector<2x128xbf16>
    %cst_65 = arith.constant dense<0.000000e+00> : vector<2x512xf32>
    %372 = tpu.matmul %371, %5, %cst_65 {dimension_numbers = #tpu.dot_dimension_numbers<[1], [0], [0], [1], [0, 0, 1, 1], [], []>} : vector<2x128xbf16>, vector<128x512xbf16>, vector<2x512xf32> -> vector<2x512xf32>
    %373 = arith.addf %370, %372 : vector<2x512xf32>
    %374 = vector.extract_strided_slice %373 {offsets = [0, 0], sizes = [2, 128], strides = [1, 1]} : vector<2x512xf32> to vector<2x128xf32>
    %375 = arith.negf %374 : vector<2x128xf32>
    %376 = math.exp %375 : vector<2x128xf32>
    %cst_66 = arith.constant 1.000000e+00 : f32
    %377 = vector.broadcast %cst_66 : f32 to vector<2x128xf32>
    %378 = arith.addf %377, %376 : vector<2x128xf32>
    %379 = arith.divf %377, %378 : vector<2x128xf32>
    %380 = vector.extract_strided_slice %373 {offsets = [0, 128], sizes = [2, 128], strides = [1, 1]} : vector<2x512xf32> to vector<2x128xf32>
    %381 = arith.negf %380 : vector<2x128xf32>
    %382 = math.exp %381 : vector<2x128xf32>
    %cst_67 = arith.constant 1.000000e+00 : f32
    %383 = vector.broadcast %cst_67 : f32 to vector<2x128xf32>
    %384 = arith.addf %383, %382 : vector<2x128xf32>
    %385 = arith.divf %383, %384 : vector<2x128xf32>
    %386 = vector.extract_strided_slice %373 {offsets = [0, 256], sizes = [2, 128], strides = [1, 1]} : vector<2x512xf32> to vector<2x128xf32>
    %387 = math.tanh %386 : vector<2x128xf32>
    %388 = vector.extract_strided_slice %373 {offsets = [0, 384], sizes = [2, 128], strides = [1, 1]} : vector<2x512xf32> to vector<2x128xf32>
    %389 = arith.negf %388 : vector<2x128xf32>
    %390 = math.exp %389 : vector<2x128xf32>
    %cst_68 = arith.constant 1.000000e+00 : f32
    %391 = vector.broadcast %cst_68 : f32 to vector<2x128xf32>
    %392 = arith.addf %391, %390 : vector<2x128xf32>
    %393 = arith.divf %391, %392 : vector<2x128xf32>
    %394 = arith.mulf %385, %367 : vector<2x128xf32>
    %395 = arith.mulf %379, %387 : vector<2x128xf32>
    %396 = arith.addf %394, %395 : vector<2x128xf32>
    %397 = math.tanh %396 : vector<2x128xf32>
    %398 = arith.mulf %393, %397 : vector<2x128xf32>
    %c9_i32 = arith.constant 9 : i32
    %399 = arith.addi %7, %c9_i32 : i32
    %400 = vector.broadcast %399 : i32 to vector<2x1xi32>
    %401 = arith.cmpi slt, %400, %6 : vector<2x1xi32>
    %402 = vector.shape_cast %401 : vector<2x1xi1> to vector<2x1xi1>
    %403 = vector.broadcast %402 : vector<2x1xi1> to vector<2x128xi1>
    %404 = arith.select %403, %398, %364 : vector<2x128xi1>, vector<2x128xf32>
    %405 = vector.shape_cast %401 : vector<2x1xi1> to vector<2x1xi1>
    %406 = vector.broadcast %405 : vector<2x1xi1> to vector<2x128xi1>
    %407 = arith.select %406, %396, %367 : vector<2x128xi1>, vector<2x128xf32>
    %c0_69 = arith.constant 0 : index
    %c10 = arith.constant 10 : index
    %c0_70 = arith.constant 0 : index
    %408 = vector.load %arg1[%c0_69, %c10, %c0_70] : memref<2x16x512xbf16, #tpu.memory_space<vmem>>, vector<2x1x512xbf16>
    %409 = vector.shape_cast %408 : vector<2x1x512xbf16> to vector<2x512xbf16>
    %410 = arith.extf %409 : vector<2x512xbf16> to vector<2x512xf32>
    %411 = arith.truncf %404 : vector<2x128xf32> to vector<2x128xbf16>
    %cst_71 = arith.constant dense<0.000000e+00> : vector<2x512xf32>
    %412 = tpu.matmul %411, %5, %cst_71 {dimension_numbers = #tpu.dot_dimension_numbers<[1], [0], [0], [1], [0, 0, 1, 1], [], []>} : vector<2x128xbf16>, vector<128x512xbf16>, vector<2x512xf32> -> vector<2x512xf32>
    %413 = arith.addf %410, %412 : vector<2x512xf32>
    %414 = vector.extract_strided_slice %413 {offsets = [0, 0], sizes = [2, 128], strides = [1, 1]} : vector<2x512xf32> to vector<2x128xf32>
    %415 = arith.negf %414 : vector<2x128xf32>
    %416 = math.exp %415 : vector<2x128xf32>
    %cst_72 = arith.constant 1.000000e+00 : f32
    %417 = vector.broadcast %cst_72 : f32 to vector<2x128xf32>
    %418 = arith.addf %417, %416 : vector<2x128xf32>
    %419 = arith.divf %417, %418 : vector<2x128xf32>
    %420 = vector.extract_strided_slice %413 {offsets = [0, 128], sizes = [2, 128], strides = [1, 1]} : vector<2x512xf32> to vector<2x128xf32>
    %421 = arith.negf %420 : vector<2x128xf32>
    %422 = math.exp %421 : vector<2x128xf32>
    %cst_73 = arith.constant 1.000000e+00 : f32
    %423 = vector.broadcast %cst_73 : f32 to vector<2x128xf32>
    %424 = arith.addf %423, %422 : vector<2x128xf32>
    %425 = arith.divf %423, %424 : vector<2x128xf32>
    %426 = vector.extract_strided_slice %413 {offsets = [0, 256], sizes = [2, 128], strides = [1, 1]} : vector<2x512xf32> to vector<2x128xf32>
    %427 = math.tanh %426 : vector<2x128xf32>
    %428 = vector.extract_strided_slice %413 {offsets = [0, 384], sizes = [2, 128], strides = [1, 1]} : vector<2x512xf32> to vector<2x128xf32>
    %429 = arith.negf %428 : vector<2x128xf32>
    %430 = math.exp %429 : vector<2x128xf32>
    %cst_74 = arith.constant 1.000000e+00 : f32
    %431 = vector.broadcast %cst_74 : f32 to vector<2x128xf32>
    %432 = arith.addf %431, %430 : vector<2x128xf32>
    %433 = arith.divf %431, %432 : vector<2x128xf32>
    %434 = arith.mulf %425, %407 : vector<2x128xf32>
    %435 = arith.mulf %419, %427 : vector<2x128xf32>
    %436 = arith.addf %434, %435 : vector<2x128xf32>
    %437 = math.tanh %436 : vector<2x128xf32>
    %438 = arith.mulf %433, %437 : vector<2x128xf32>
    %c10_i32 = arith.constant 10 : i32
    %439 = arith.addi %7, %c10_i32 : i32
    %440 = vector.broadcast %439 : i32 to vector<2x1xi32>
    %441 = arith.cmpi slt, %440, %6 : vector<2x1xi32>
    %442 = vector.shape_cast %441 : vector<2x1xi1> to vector<2x1xi1>
    %443 = vector.broadcast %442 : vector<2x1xi1> to vector<2x128xi1>
    %444 = arith.select %443, %438, %404 : vector<2x128xi1>, vector<2x128xf32>
    %445 = vector.shape_cast %441 : vector<2x1xi1> to vector<2x1xi1>
    %446 = vector.broadcast %445 : vector<2x1xi1> to vector<2x128xi1>
    %447 = arith.select %446, %436, %407 : vector<2x128xi1>, vector<2x128xf32>
    %c0_75 = arith.constant 0 : index
    %c11 = arith.constant 11 : index
    %c0_76 = arith.constant 0 : index
    %448 = vector.load %arg1[%c0_75, %c11, %c0_76] : memref<2x16x512xbf16, #tpu.memory_space<vmem>>, vector<2x1x512xbf16>
    %449 = vector.shape_cast %448 : vector<2x1x512xbf16> to vector<2x512xbf16>
    %450 = arith.extf %449 : vector<2x512xbf16> to vector<2x512xf32>
    %451 = arith.truncf %444 : vector<2x128xf32> to vector<2x128xbf16>
    %cst_77 = arith.constant dense<0.000000e+00> : vector<2x512xf32>
    %452 = tpu.matmul %451, %5, %cst_77 {dimension_numbers = #tpu.dot_dimension_numbers<[1], [0], [0], [1], [0, 0, 1, 1], [], []>} : vector<2x128xbf16>, vector<128x512xbf16>, vector<2x512xf32> -> vector<2x512xf32>
    %453 = arith.addf %450, %452 : vector<2x512xf32>
    %454 = vector.extract_strided_slice %453 {offsets = [0, 0], sizes = [2, 128], strides = [1, 1]} : vector<2x512xf32> to vector<2x128xf32>
    %455 = arith.negf %454 : vector<2x128xf32>
    %456 = math.exp %455 : vector<2x128xf32>
    %cst_78 = arith.constant 1.000000e+00 : f32
    %457 = vector.broadcast %cst_78 : f32 to vector<2x128xf32>
    %458 = arith.addf %457, %456 : vector<2x128xf32>
    %459 = arith.divf %457, %458 : vector<2x128xf32>
    %460 = vector.extract_strided_slice %453 {offsets = [0, 128], sizes = [2, 128], strides = [1, 1]} : vector<2x512xf32> to vector<2x128xf32>
    %461 = arith.negf %460 : vector<2x128xf32>
    %462 = math.exp %461 : vector<2x128xf32>
    %cst_79 = arith.constant 1.000000e+00 : f32
    %463 = vector.broadcast %cst_79 : f32 to vector<2x128xf32>
    %464 = arith.addf %463, %462 : vector<2x128xf32>
    %465 = arith.divf %463, %464 : vector<2x128xf32>
    %466 = vector.extract_strided_slice %453 {offsets = [0, 256], sizes = [2, 128], strides = [1, 1]} : vector<2x512xf32> to vector<2x128xf32>
    %467 = math.tanh %466 : vector<2x128xf32>
    %468 = vector.extract_strided_slice %453 {offsets = [0, 384], sizes = [2, 128], strides = [1, 1]} : vector<2x512xf32> to vector<2x128xf32>
    %469 = arith.negf %468 : vector<2x128xf32>
    %470 = math.exp %469 : vector<2x128xf32>
    %cst_80 = arith.constant 1.000000e+00 : f32
    %471 = vector.broadcast %cst_80 : f32 to vector<2x128xf32>
    %472 = arith.addf %471, %470 : vector<2x128xf32>
    %473 = arith.divf %471, %472 : vector<2x128xf32>
    %474 = arith.mulf %465, %447 : vector<2x128xf32>
    %475 = arith.mulf %459, %467 : vector<2x128xf32>
    %476 = arith.addf %474, %475 : vector<2x128xf32>
    %477 = math.tanh %476 : vector<2x128xf32>
    %478 = arith.mulf %473, %477 : vector<2x128xf32>
    %c11_i32 = arith.constant 11 : i32
    %479 = arith.addi %7, %c11_i32 : i32
    %480 = vector.broadcast %479 : i32 to vector<2x1xi32>
    %481 = arith.cmpi slt, %480, %6 : vector<2x1xi32>
    %482 = vector.shape_cast %481 : vector<2x1xi1> to vector<2x1xi1>
    %483 = vector.broadcast %482 : vector<2x1xi1> to vector<2x128xi1>
    %484 = arith.select %483, %478, %444 : vector<2x128xi1>, vector<2x128xf32>
    %485 = vector.shape_cast %481 : vector<2x1xi1> to vector<2x1xi1>
    %486 = vector.broadcast %485 : vector<2x1xi1> to vector<2x128xi1>
    %487 = arith.select %486, %476, %447 : vector<2x128xi1>, vector<2x128xf32>
    %c0_81 = arith.constant 0 : index
    %c12 = arith.constant 12 : index
    %c0_82 = arith.constant 0 : index
    %488 = vector.load %arg1[%c0_81, %c12, %c0_82] : memref<2x16x512xbf16, #tpu.memory_space<vmem>>, vector<2x1x512xbf16>
    %489 = vector.shape_cast %488 : vector<2x1x512xbf16> to vector<2x512xbf16>
    %490 = arith.extf %489 : vector<2x512xbf16> to vector<2x512xf32>
    %491 = arith.truncf %484 : vector<2x128xf32> to vector<2x128xbf16>
    %cst_83 = arith.constant dense<0.000000e+00> : vector<2x512xf32>
    %492 = tpu.matmul %491, %5, %cst_83 {dimension_numbers = #tpu.dot_dimension_numbers<[1], [0], [0], [1], [0, 0, 1, 1], [], []>} : vector<2x128xbf16>, vector<128x512xbf16>, vector<2x512xf32> -> vector<2x512xf32>
    %493 = arith.addf %490, %492 : vector<2x512xf32>
    %494 = vector.extract_strided_slice %493 {offsets = [0, 0], sizes = [2, 128], strides = [1, 1]} : vector<2x512xf32> to vector<2x128xf32>
    %495 = arith.negf %494 : vector<2x128xf32>
    %496 = math.exp %495 : vector<2x128xf32>
    %cst_84 = arith.constant 1.000000e+00 : f32
    %497 = vector.broadcast %cst_84 : f32 to vector<2x128xf32>
    %498 = arith.addf %497, %496 : vector<2x128xf32>
    %499 = arith.divf %497, %498 : vector<2x128xf32>
    %500 = vector.extract_strided_slice %493 {offsets = [0, 128], sizes = [2, 128], strides = [1, 1]} : vector<2x512xf32> to vector<2x128xf32>
    %501 = arith.negf %500 : vector<2x128xf32>
    %502 = math.exp %501 : vector<2x128xf32>
    %cst_85 = arith.constant 1.000000e+00 : f32
    %503 = vector.broadcast %cst_85 : f32 to vector<2x128xf32>
    %504 = arith.addf %503, %502 : vector<2x128xf32>
    %505 = arith.divf %503, %504 : vector<2x128xf32>
    %506 = vector.extract_strided_slice %493 {offsets = [0, 256], sizes = [2, 128], strides = [1, 1]} : vector<2x512xf32> to vector<2x128xf32>
    %507 = math.tanh %506 : vector<2x128xf32>
    %508 = vector.extract_strided_slice %493 {offsets = [0, 384], sizes = [2, 128], strides = [1, 1]} : vector<2x512xf32> to vector<2x128xf32>
    %509 = arith.negf %508 : vector<2x128xf32>
    %510 = math.exp %509 : vector<2x128xf32>
    %cst_86 = arith.constant 1.000000e+00 : f32
    %511 = vector.broadcast %cst_86 : f32 to vector<2x128xf32>
    %512 = arith.addf %511, %510 : vector<2x128xf32>
    %513 = arith.divf %511, %512 : vector<2x128xf32>
    %514 = arith.mulf %505, %487 : vector<2x128xf32>
    %515 = arith.mulf %499, %507 : vector<2x128xf32>
    %516 = arith.addf %514, %515 : vector<2x128xf32>
    %517 = math.tanh %516 : vector<2x128xf32>
    %518 = arith.mulf %513, %517 : vector<2x128xf32>
    %c12_i32 = arith.constant 12 : i32
    %519 = arith.addi %7, %c12_i32 : i32
    %520 = vector.broadcast %519 : i32 to vector<2x1xi32>
    %521 = arith.cmpi slt, %520, %6 : vector<2x1xi32>
    %522 = vector.shape_cast %521 : vector<2x1xi1> to vector<2x1xi1>
    %523 = vector.broadcast %522 : vector<2x1xi1> to vector<2x128xi1>
    %524 = arith.select %523, %518, %484 : vector<2x128xi1>, vector<2x128xf32>
    %525 = vector.shape_cast %521 : vector<2x1xi1> to vector<2x1xi1>
    %526 = vector.broadcast %525 : vector<2x1xi1> to vector<2x128xi1>
    %527 = arith.select %526, %516, %487 : vector<2x128xi1>, vector<2x128xf32>
    %c0_87 = arith.constant 0 : index
    %c13 = arith.constant 13 : index
    %c0_88 = arith.constant 0 : index
    %528 = vector.load %arg1[%c0_87, %c13, %c0_88] : memref<2x16x512xbf16, #tpu.memory_space<vmem>>, vector<2x1x512xbf16>
    %529 = vector.shape_cast %528 : vector<2x1x512xbf16> to vector<2x512xbf16>
    %530 = arith.extf %529 : vector<2x512xbf16> to vector<2x512xf32>
    %531 = arith.truncf %524 : vector<2x128xf32> to vector<2x128xbf16>
    %cst_89 = arith.constant dense<0.000000e+00> : vector<2x512xf32>
    %532 = tpu.matmul %531, %5, %cst_89 {dimension_numbers = #tpu.dot_dimension_numbers<[1], [0], [0], [1], [0, 0, 1, 1], [], []>} : vector<2x128xbf16>, vector<128x512xbf16>, vector<2x512xf32> -> vector<2x512xf32>
    %533 = arith.addf %530, %532 : vector<2x512xf32>
    %534 = vector.extract_strided_slice %533 {offsets = [0, 0], sizes = [2, 128], strides = [1, 1]} : vector<2x512xf32> to vector<2x128xf32>
    %535 = arith.negf %534 : vector<2x128xf32>
    %536 = math.exp %535 : vector<2x128xf32>
    %cst_90 = arith.constant 1.000000e+00 : f32
    %537 = vector.broadcast %cst_90 : f32 to vector<2x128xf32>
    %538 = arith.addf %537, %536 : vector<2x128xf32>
    %539 = arith.divf %537, %538 : vector<2x128xf32>
    %540 = vector.extract_strided_slice %533 {offsets = [0, 128], sizes = [2, 128], strides = [1, 1]} : vector<2x512xf32> to vector<2x128xf32>
    %541 = arith.negf %540 : vector<2x128xf32>
    %542 = math.exp %541 : vector<2x128xf32>
    %cst_91 = arith.constant 1.000000e+00 : f32
    %543 = vector.broadcast %cst_91 : f32 to vector<2x128xf32>
    %544 = arith.addf %543, %542 : vector<2x128xf32>
    %545 = arith.divf %543, %544 : vector<2x128xf32>
    %546 = vector.extract_strided_slice %533 {offsets = [0, 256], sizes = [2, 128], strides = [1, 1]} : vector<2x512xf32> to vector<2x128xf32>
    %547 = math.tanh %546 : vector<2x128xf32>
    %548 = vector.extract_strided_slice %533 {offsets = [0, 384], sizes = [2, 128], strides = [1, 1]} : vector<2x512xf32> to vector<2x128xf32>
    %549 = arith.negf %548 : vector<2x128xf32>
    %550 = math.exp %549 : vector<2x128xf32>
    %cst_92 = arith.constant 1.000000e+00 : f32
    %551 = vector.broadcast %cst_92 : f32 to vector<2x128xf32>
    %552 = arith.addf %551, %550 : vector<2x128xf32>
    %553 = arith.divf %551, %552 : vector<2x128xf32>
    %554 = arith.mulf %545, %527 : vector<2x128xf32>
    %555 = arith.mulf %539, %547 : vector<2x128xf32>
    %556 = arith.addf %554, %555 : vector<2x128xf32>
    %557 = math.tanh %556 : vector<2x128xf32>
    %558 = arith.mulf %553, %557 : vector<2x128xf32>
    %c13_i32 = arith.constant 13 : i32
    %559 = arith.addi %7, %c13_i32 : i32
    %560 = vector.broadcast %559 : i32 to vector<2x1xi32>
    %561 = arith.cmpi slt, %560, %6 : vector<2x1xi32>
    %562 = vector.shape_cast %561 : vector<2x1xi1> to vector<2x1xi1>
    %563 = vector.broadcast %562 : vector<2x1xi1> to vector<2x128xi1>
    %564 = arith.select %563, %558, %524 : vector<2x128xi1>, vector<2x128xf32>
    %565 = vector.shape_cast %561 : vector<2x1xi1> to vector<2x1xi1>
    %566 = vector.broadcast %565 : vector<2x1xi1> to vector<2x128xi1>
    %567 = arith.select %566, %556, %527 : vector<2x128xi1>, vector<2x128xf32>
    %c0_93 = arith.constant 0 : index
    %c14 = arith.constant 14 : index
    %c0_94 = arith.constant 0 : index
    %568 = vector.load %arg1[%c0_93, %c14, %c0_94] : memref<2x16x512xbf16, #tpu.memory_space<vmem>>, vector<2x1x512xbf16>
    %569 = vector.shape_cast %568 : vector<2x1x512xbf16> to vector<2x512xbf16>
    %570 = arith.extf %569 : vector<2x512xbf16> to vector<2x512xf32>
    %571 = arith.truncf %564 : vector<2x128xf32> to vector<2x128xbf16>
    %cst_95 = arith.constant dense<0.000000e+00> : vector<2x512xf32>
    %572 = tpu.matmul %571, %5, %cst_95 {dimension_numbers = #tpu.dot_dimension_numbers<[1], [0], [0], [1], [0, 0, 1, 1], [], []>} : vector<2x128xbf16>, vector<128x512xbf16>, vector<2x512xf32> -> vector<2x512xf32>
    %573 = arith.addf %570, %572 : vector<2x512xf32>
    %574 = vector.extract_strided_slice %573 {offsets = [0, 0], sizes = [2, 128], strides = [1, 1]} : vector<2x512xf32> to vector<2x128xf32>
    %575 = arith.negf %574 : vector<2x128xf32>
    %576 = math.exp %575 : vector<2x128xf32>
    %cst_96 = arith.constant 1.000000e+00 : f32
    %577 = vector.broadcast %cst_96 : f32 to vector<2x128xf32>
    %578 = arith.addf %577, %576 : vector<2x128xf32>
    %579 = arith.divf %577, %578 : vector<2x128xf32>
    %580 = vector.extract_strided_slice %573 {offsets = [0, 128], sizes = [2, 128], strides = [1, 1]} : vector<2x512xf32> to vector<2x128xf32>
    %581 = arith.negf %580 : vector<2x128xf32>
    %582 = math.exp %581 : vector<2x128xf32>
    %cst_97 = arith.constant 1.000000e+00 : f32
    %583 = vector.broadcast %cst_97 : f32 to vector<2x128xf32>
    %584 = arith.addf %583, %582 : vector<2x128xf32>
    %585 = arith.divf %583, %584 : vector<2x128xf32>
    %586 = vector.extract_strided_slice %573 {offsets = [0, 256], sizes = [2, 128], strides = [1, 1]} : vector<2x512xf32> to vector<2x128xf32>
    %587 = math.tanh %586 : vector<2x128xf32>
    %588 = vector.extract_strided_slice %573 {offsets = [0, 384], sizes = [2, 128], strides = [1, 1]} : vector<2x512xf32> to vector<2x128xf32>
    %589 = arith.negf %588 : vector<2x128xf32>
    %590 = math.exp %589 : vector<2x128xf32>
    %cst_98 = arith.constant 1.000000e+00 : f32
    %591 = vector.broadcast %cst_98 : f32 to vector<2x128xf32>
    %592 = arith.addf %591, %590 : vector<2x128xf32>
    %593 = arith.divf %591, %592 : vector<2x128xf32>
    %594 = arith.mulf %585, %567 : vector<2x128xf32>
    %595 = arith.mulf %579, %587 : vector<2x128xf32>
    %596 = arith.addf %594, %595 : vector<2x128xf32>
    %597 = math.tanh %596 : vector<2x128xf32>
    %598 = arith.mulf %593, %597 : vector<2x128xf32>
    %c14_i32 = arith.constant 14 : i32
    %599 = arith.addi %7, %c14_i32 : i32
    %600 = vector.broadcast %599 : i32 to vector<2x1xi32>
    %601 = arith.cmpi slt, %600, %6 : vector<2x1xi32>
    %602 = vector.shape_cast %601 : vector<2x1xi1> to vector<2x1xi1>
    %603 = vector.broadcast %602 : vector<2x1xi1> to vector<2x128xi1>
    %604 = arith.select %603, %598, %564 : vector<2x128xi1>, vector<2x128xf32>
    %605 = vector.shape_cast %601 : vector<2x1xi1> to vector<2x1xi1>
    %606 = vector.broadcast %605 : vector<2x1xi1> to vector<2x128xi1>
    %607 = arith.select %606, %596, %567 : vector<2x128xi1>, vector<2x128xf32>
    %c0_99 = arith.constant 0 : index
    %c15 = arith.constant 15 : index
    %c0_100 = arith.constant 0 : index
    %608 = vector.load %arg1[%c0_99, %c15, %c0_100] : memref<2x16x512xbf16, #tpu.memory_space<vmem>>, vector<2x1x512xbf16>
    %609 = vector.shape_cast %608 : vector<2x1x512xbf16> to vector<2x512xbf16>
    %610 = arith.extf %609 : vector<2x512xbf16> to vector<2x512xf32>
    %611 = arith.truncf %604 : vector<2x128xf32> to vector<2x128xbf16>
    %cst_101 = arith.constant dense<0.000000e+00> : vector<2x512xf32>
    %612 = tpu.matmul %611, %5, %cst_101 {dimension_numbers = #tpu.dot_dimension_numbers<[1], [0], [0], [1], [0, 0, 1, 1], [], []>} : vector<2x128xbf16>, vector<128x512xbf16>, vector<2x512xf32> -> vector<2x512xf32>
    %613 = arith.addf %610, %612 : vector<2x512xf32>
    %614 = vector.extract_strided_slice %613 {offsets = [0, 0], sizes = [2, 128], strides = [1, 1]} : vector<2x512xf32> to vector<2x128xf32>
    %615 = arith.negf %614 : vector<2x128xf32>
    %616 = math.exp %615 : vector<2x128xf32>
    %cst_102 = arith.constant 1.000000e+00 : f32
    %617 = vector.broadcast %cst_102 : f32 to vector<2x128xf32>
    %618 = arith.addf %617, %616 : vector<2x128xf32>
    %619 = arith.divf %617, %618 : vector<2x128xf32>
    %620 = vector.extract_strided_slice %613 {offsets = [0, 128], sizes = [2, 128], strides = [1, 1]} : vector<2x512xf32> to vector<2x128xf32>
    %621 = arith.negf %620 : vector<2x128xf32>
    %622 = math.exp %621 : vector<2x128xf32>
    %cst_103 = arith.constant 1.000000e+00 : f32
    %623 = vector.broadcast %cst_103 : f32 to vector<2x128xf32>
    %624 = arith.addf %623, %622 : vector<2x128xf32>
    %625 = arith.divf %623, %624 : vector<2x128xf32>
    %626 = vector.extract_strided_slice %613 {offsets = [0, 256], sizes = [2, 128], strides = [1, 1]} : vector<2x512xf32> to vector<2x128xf32>
    %627 = math.tanh %626 : vector<2x128xf32>
    %628 = vector.extract_strided_slice %613 {offsets = [0, 384], sizes = [2, 128], strides = [1, 1]} : vector<2x512xf32> to vector<2x128xf32>
    %629 = arith.negf %628 : vector<2x128xf32>
    %630 = math.exp %629 : vector<2x128xf32>
    %cst_104 = arith.constant 1.000000e+00 : f32
    %631 = vector.broadcast %cst_104 : f32 to vector<2x128xf32>
    %632 = arith.addf %631, %630 : vector<2x128xf32>
    %633 = arith.divf %631, %632 : vector<2x128xf32>
    %634 = arith.mulf %625, %607 : vector<2x128xf32>
    %635 = arith.mulf %619, %627 : vector<2x128xf32>
    %636 = arith.addf %634, %635 : vector<2x128xf32>
    %637 = math.tanh %636 : vector<2x128xf32>
    %638 = arith.mulf %633, %637 : vector<2x128xf32>
    %c15_i32 = arith.constant 15 : i32
    %639 = arith.addi %7, %c15_i32 : i32
    %640 = vector.broadcast %639 : i32 to vector<2x1xi32>
    %641 = arith.cmpi slt, %640, %6 : vector<2x1xi32>
    %642 = vector.shape_cast %641 : vector<2x1xi1> to vector<2x1xi1>
    %643 = vector.broadcast %642 : vector<2x1xi1> to vector<2x128xi1>
    %644 = arith.select %643, %638, %604 : vector<2x128xi1>, vector<2x128xf32>
    %645 = vector.shape_cast %641 : vector<2x1xi1> to vector<2x1xi1>
    %646 = vector.broadcast %645 : vector<2x1xi1> to vector<2x128xi1>
    %647 = arith.select %646, %636, %607 : vector<2x128xi1>, vector<2x128xf32>
    %c0_105 = arith.constant 0 : index
    %c0_106 = arith.constant 0 : index
    %648 = vector.load %arg6[%c0_105, %c0_106] : memref<2x128xf32, #tpu.memory_space<vmem>>, vector<2x128xf32>
    tpu.vector_store %arg6[%c0_105, %c0_106], %644 {strides = array<i32>} : memref<2x128xf32, #tpu.memory_space<vmem>>, vector<2x128xf32>,
    %c0_107 = arith.constant 0 : index
    %c0_108 = arith.constant 0 : index
    %649 = vector.load %arg7[%c0_107, %c0_108] : memref<2x128xf32, #tpu.memory_space<vmem>>, vector<2x128xf32>
    tpu.vector_store %arg7[%c0_107, %c0_108], %647 {strides = array<i32>} : memref<2x128xf32, #tpu.memory_space<vmem>>, vector<2x128xf32>,
    return
  }
  func.func @transform_0(%arg0: i32) -> (i32, i32, i32) {
    %c0_i32 = arith.constant 0 : i32
    %c0_i32_0 = arith.constant 0 : i32
    %c0_i32_1 = arith.constant 0 : i32
    return %c0_i32, %arg0, %c0_i32_0 : i32, i32, i32
  }
  func.func @transform_1(%arg0: i32) -> (i32, i32) {
    %c0_i32 = arith.constant 0 : i32
    %c0_i32_0 = arith.constant 0 : i32
    %c0_i32_1 = arith.constant 0 : i32
    return %c0_i32, %c0_i32_0 : i32, i32
  }
  func.func @transform_2(%arg0: i32) -> (i32, i32) {
    %c0_i32 = arith.constant 0 : i32
    %c0_i32_0 = arith.constant 0 : i32
    %c0_i32_1 = arith.constant 0 : i32
    return %c0_i32, %c0_i32_0 : i32, i32
  }
  func.func @transform_3(%arg0: i32) -> (i32, i32) {
    %c0_i32 = arith.constant 0 : i32
    %c0_i32_0 = arith.constant 0 : i32
    %c0_i32_1 = arith.constant 0 : i32
    return %c0_i32, %c0_i32_0 : i32, i32
  }
  func.func @transform_4(%arg0: i32) -> (i32, i32) {
    %c0_i32 = arith.constant 0 : i32
    %c0_i32_0 = arith.constant 0 : i32
    %c0_i32_1 = arith.constant 0 : i32
    return %c0_i32, %c0_i32_0 : i32, i32
  }
  func.func @transform_5(%arg0: i32) -> (i32, i32) {
    %c0_i32 = arith.constant 0 : i32
    %c0_i32_0 = arith.constant 0 : i32
    %c0_i32_1 = arith.constant 0 : i32
    return %c0_i32, %c0_i32_0 : i32, i32
  }
  func.func @transform_6(%arg0: i32) -> (i32, i32) {
    %c0_i32 = arith.constant 0 : i32
    %c0_i32_0 = arith.constant 0 : i32
    %c0_i32_1 = arith.constant 0 : i32
    return %c0_i32, %c0_i32_0 : i32, i32
  }
}

</mosaic_0001>

<bundles_post_ra>
// kernel: qns_embedding_forward.2
= control target key start
LH: loop header
LB: loop body
LE: loop exit
PB: predicated region body
PF: predicated region fallthrough
CT: control target
= control target key end

     0   :  { %8 = vsyncpa [#allocation3], 0  ;;  %s355_s12 = smov [#allocation2]   ;;  %s449_s0 = inlined_call_operand.vmem [shape: f32[32,32], index: 0, kind: input, shape index: {}]   ;;  %s450_s1 = inlined_call_operand.vmem [shape: bf16[32,512], index: 1, kind: input, shape index: {}]   ;;  %s451_s2 = inlined_call_operand.hbm [shape: f32[1,512], index: 2, kind: input, shape index: {}]   ;;  %s452_s3 = inlined_call_operand.vmem [shape: bf16[32,512], index: 3, kind: output, shape index: {}]  }
   0x1   :  { %s19_s13 = sshll.u32 %s355_s12, 4  ;;  %s331_s16 = scalar_lea.hbm %s451_s2, 64  ;;  %s20_s13 = int_to_ptr.vmem [resolvable:$true] %s19_s13 }
   0x2   :  { %p332_p0 = scmp.ne.s32.totalorder %s451_s2, %s331_s16  ;;  %p335_p1 = scmp.lt.u32.totalorder %s331_s16, %s451_s2 }
   0x4   :  { %p337_p2 = pnand %p335_p1, %p332_p0 }
   0x6   :  { %340 = shalt.err (!%p337_p2)
}
   0x7   :  { %s341_s21 = scalar_lea.vmem %s20_s13, 64  ;;  %p346_p4 = scmp.lt.s32.totalorder %s20_s13, %s20_s13 }
   0x8   :  { %p342_p3 = scmp.ne.s32.totalorder %s20_s13, %s341_s21  ;;  %p347_p5 = scmp.lt.s32.totalorder %s341_s21, %s341_s21 }
   0xa   :  { %p348_p6 = por %p347_p5, %p346_p4 }
   0xc   :  { %p349_p7 = pnand %p348_p6, %p342_p3 }
   0xe   :  { %352 = shalt.err (!%p349_p7)
}
   0xf   :  { %22 = dma.hbm_to_vmem [thread:$0]  %s451_s2, 64, %s20_s13, [#allocation3]  }
  0x10   :  { %353 = dma.done.wait [#allocation3], 64  }
  0x11   :  { %354 = vsyncadd [#allocation3], 4294967232  ;;  %v356_v0 = vmov 0   ;;  %v311_v1 = vld [vmem:[%s450_s1 + $0x4] ss:$16 sps:$4 sm:$0xff]   ;;  %v28_v10 = vld [vmem:[%s449_s0 + $0x8] sm:$0xff]  ;;  %v47_v19 = vlaneseq }
  0x12   :  { %146 = vmatprep.mubr.bf16.mxu0 %v356_v0  ;;  %199 = vmatprep.mubr.bf16.mxu1 %v356_v0  ;;  %v313_v2 = vld [vmem:[%s450_s1 + $0xc] ss:$16 sps:$4 sm:$0xff]   ;;  %v315_v3 = vld [vmem:[%s450_s1] ss:$16 sps:$4 sm:$0xff]   ;;  %v316_v4 = vld [vmem:[%s450_s1 + $0x8] ss:$16 sps:$4 sm:$0xff]  }
  0x13   :  { %114 = vmatprep.subr.bf16.mxu0 %v311_v1  ;;  %167 = vmatprep.subr.bf16.mxu1 %v313_v2  ;;  %v317_v5 = vld [vmem:[%s450_s1 + $0x24] ss:$16 sps:$4 sm:$0xff]   ;;  %v319_v6 = vld [vmem:[%s450_s1 + $0x2c] ss:$16 sps:$4 sm:$0xff]   ;;  %v321_v7 = vld [vmem:[%s450_s1 + $0x20] ss:$16 sps:$4 sm:$0xff]  }
  0x14   :  { %115 = vmatpush1.bf16.msra.mxu0 %v315_v3  ;;  %168 = vmatpush1.bf16.msra.mxu1 %v316_v4  ;;  %v322_v8 = vld [vmem:[%s450_s1 + $0x28] ss:$16 sps:$4 sm:$0xff]   ;;  %v27_v9 = vld [vmem:[%s449_s0] sm:$0xff]  ;;  %v29_v11 = vld [vmem:[%s449_s0 + $0x10] sm:$0xff]  ;;  %vm107_vm0 = vcmask 261120   ;;  %v48_v20 = vshrl.u32 %v47_v19, 7 }
  0x15   :  { %116 = vmatprep.subr.bf16.mxu0 %v317_v5  ;;  %169 = vmatprep.subr.bf16.mxu1 %v319_v6  ;;  %323 = vtanh.f32 %v27_v9  ;;  %v30_v12 = vld [vmem:[%s449_s0 + $0x18] sm:$0xff]  ;;  %v45_v23 = vld [vmem:[#allocation2] sm:$0xf] }
  0x16   :  { %325 = vtanh.f32 %v28_v10  ;;  %v49_v21 = vsub.s32 0, %v48_v20  ;;  %v57_v22 = vsub.s32 2, %v48_v20  ;;  %v53_v24 = vsub.s32 1, %v48_v20 }
  0x17   :  { %327 = vtanh.f32 %v29_v11  ;;  %v61_v25 = vsub.s32 3, %v48_v20 }
  0x18   :  { %117 = vmatpush1.bf16.msra.mxu0 %v321_v7  ;;  %170 = vmatpush1.bf16.msra.mxu1 %v322_v8  ;;  %329 = vtanh.f32 %v30_v12  ;;  %v50_v26 = vrot.slane %v45_v23, %v49_v21  ;;  %v58_v27 = vrot.slane %v45_v23, %v57_v22  ;;  %v54_v28 = vrot.slane %v45_v23, %v53_v24 }
  0x19   :  { %v62_v29 = vrot.slane %v45_v23, %v61_v25 }
  0x1f   :  { %v324_v13 = vpop.eup %323 }
  0x20   :  { %v326_v14 = vpop.eup %325 }
  0x21   :  { %v35_v15 = vpack.c.bf16 %v326_v14, %v324_v13  ;;  %v328_v16 = vpop.eup %327 }
  0x22   :  { %v330_v17 = vpop.eup %329 }
  0x23   :  { %289 = vmatmul.mubr.msk.bf16.vlgmr.msra.gmra.mrb[0].mxu0 %vm107_vm0, %v35_v15  ;;  %291 = vmatmul.mubr.msk.bf16.vlgmr.msra.gmra.mrb[0].mxu1 %vm107_vm0, %v35_v15  ;;  %v36_v18 = vpack.c.bf16 %v330_v17, %v328_v16 }
  0x24   :  { %156 = vmatprep.mubr.bf16.mxu0 %v356_v0  ;;  %209 = vmatprep.mubr.bf16.mxu1 %v356_v0 }
  0x2b   :  { %290 = vmatmul.mubr.msk.bf16.gmra.mrb[4].mxu0 %vm107_vm0, %v36_v18  ;;  %292 = vmatmul.mubr.msk.bf16.gmra.mrb[4].mxu1 %vm107_vm0, %v36_v18 }
  0xf6   :  { %v148_v30 = vpop.f32.mrb[0].mxu0  ;;  %v201_v31 = vpop.f32.mrb[0].mxu1 }
  0xf7   :  { %v149_v32 = vadd.f32 %v148_v30, %v50_v26  ;;  %v202_v33 = vadd.f32 %v201_v31, %v58_v27  ;;  %v150_v34 = vpop.f32.mrb[1].mxu0  ;;  %v203_v35 = vpop.f32.mrb[1].mxu1 }
  0xf8   :  { %v151_v36 = vadd.f32 %v150_v34, %v54_v28  ;;  %v204_v37 = vadd.f32 %v203_v35, %v62_v29  ;;  %v152_v38 = vpop.f32.mrb[2].mxu0  ;;  %v205_v39 = vpop.f32.mrb[2].mxu1 }
  0xf9   :  { %v153_v40 = vadd.f32 %v152_v38, %v50_v26  ;;  %v206_v41 = vadd.f32 %v205_v39, %v58_v27  ;;  %v154_v42 = vpop.f32.mrb[3].mxu0  ;;  %v207_v43 = vpop.f32.mrb[3].mxu1 }
  0xfa   :  { %v301_v44 = vpack.c.bf16 %v151_v36, %v149_v32  ;;  %v302_v45 = vpack.c.bf16 %v204_v37, %v202_v33  ;;  %v155_v46 = vadd.f32 %v154_v42, %v54_v28  ;;  %v208_v47 = vadd.f32 %v207_v43, %v62_v29 }
  0xfc   :  { %268 = vst [vmem:[%s452_s3] sm:$0xff] %v301_v44  ;;  %269 = vst [vmem:[%s452_s3 + $0x8] sm:$0xff] %v302_v45  ;;  %v303_v48 = vpack.c.bf16 %v155_v46, %v153_v40  ;;  %v304_v49 = vpack.c.bf16 %v208_v47, %v206_v41 }
  0xfe   :  { %270 = vst [vmem:[%s452_s3 + $0x10] sm:$0xff] %v303_v48  ;;  %271 = vst [vmem:[%s452_s3 + $0x18] sm:$0xff] %v304_v49  ;;  %v158_v50 = vpop.f32.mrb[4].mxu0  ;;  %v211_v51 = vpop.f32.mrb[4].mxu1 }
  0xff   :  { %v159_v52 = vadd.f32 %v158_v50, %v50_v26  ;;  %v212_v53 = vadd.f32 %v211_v51, %v58_v27  ;;  %v160_v54 = vpop.f32.mrb[5].mxu0  ;;  %v213_v55 = vpop.f32.mrb[5].mxu1 }
 0x100   :  { %v161_v56 = vadd.f32 %v160_v54, %v54_v28  ;;  %v214_v57 = vadd.f32 %v213_v55, %v62_v29  ;;  %v162_v58 = vpop.f32.mrb[6].mxu0  ;;  %v215_v59 = vpop.f32.mrb[6].mxu1 }
 0x101   :  { %v163_v60 = vadd.f32 %v162_v58, %v50_v26  ;;  %v216_v61 = vadd.f32 %v215_v59, %v58_v27  ;;  %v164_v62 = vpop.f32.mrb[7].mxu0  ;;  %v217_v63 = vpop.f32.mrb[7].mxu1 }
 0x102   :  { %v305_v0 = vpack.c.bf16 %v161_v56, %v159_v52  ;;  %v306_v1 = vpack.c.bf16 %v214_v57, %v212_v53  ;;  %v165_v2 = vadd.f32 %v164_v62, %v54_v28  ;;  %v218_v3 = vadd.f32 %v217_v63, %v62_v29 }
 0x104   :  { %272 = vst [vmem:[%s452_s3 + $0x20] sm:$0xff] %v305_v0  ;;  %273 = vst [vmem:[%s452_s3 + $0x28] sm:$0xff] %v306_v1  ;;  %v307_v4 = vpack.c.bf16 %v165_v2, %v163_v60  ;;  %v308_v5 = vpack.c.bf16 %v218_v3, %v216_v61 }
 0x106   :  { %274 = vst [vmem:[%s452_s3 + $0x30] sm:$0xff] %v307_v4  ;;  %275 = vst [vmem:[%s452_s3 + $0x38] sm:$0xff] %v308_v5 }
 0x107   :  { %280 = vsyncpa [#allocation3], 1 }

// kernel: qns_embedding_forward.3
= control target key start
LH: loop header
LB: loop body
LE: loop exit
PB: predicated region body
PF: predicated region fallthrough
CT: control target
= control target key end

     0   :  { %12 = vsyncpa [#allocation3], 0  ;;  %s5789_s0 = inlined_call_operand.vmem [shape: bf16[2,16,512], index: 0, kind: input, shape index: {}]   ;;  %s5790_s1 = inlined_call_operand.hbm [shape: bf16[128,512], index: 1, kind: input, shape index: {}]   ;;  %s5791_s2 = inlined_call_operand.vmem [shape: s32[2,1], index: 2, kind: input, shape index: {}]   ;;  %s5792_s3 = inlined_call_operand.vmem [shape: f32[2,128], index: 3, kind: input, shape index: {}, may-alias: {3,4}]   ;;  %s5793_s4 = inlined_call_operand.vmem [shape: f32[2,128], index: 4, kind: input, shape index: {}, may-alias: {3,4}]   ;;  %s5794_s5 = inlined_call_operand.hbm [shape: f32[2,128], index: 5, kind: output, shape index: {0}]   ;;  %s5795_s6 = inlined_call_operand.hbm [shape: f32[2,128], index: 6, kind: output, shape index: {1}]  }
   0x1   :  { %13 = vsyncpa [#allocation4], 0 }
   0x2   :  { %14 = vsyncpa [#allocation7], 0  ;;  %s4198_s21 = smov [#allocation2]   ;;  %s4126_s25 = scalar_lea.hbm %s5790_s1, 4096 }
   0x3   :  { %s22_s22 = sshll.u32 %s4198_s21, 4  ;;  %p4127_p0 = scmp.ne.s32.totalorder %s5790_s1, %s4126_s25  ;;  %s23_s22 = int_to_ptr.vmem [resolvable:$true] %s22_s22 }
   0x4   :  { %p4130_p1 = scmp.lt.u32.totalorder %s4126_s25, %s5790_s1 }
   0x6   :  { %p4132_p2 = pnand %p4130_p1, %p4127_p0 }
   0x8   :  { %4135 = shalt.err (!%p4132_p2)
}
   0x9   :  { %s4136_s30 = scalar_lea.vmem %s23_s22, 4096  ;;  %p4141_p4 = scmp.lt.s32.totalorder %s23_s22, %s23_s22 }
   0xa   :  { %p4137_p3 = scmp.ne.s32.totalorder %s23_s22, %s4136_s30  ;;  %p4142_p5 = scmp.lt.s32.totalorder %s4136_s30, %s4136_s30 }
   0xc   :  { %p4143_p6 = por %p4142_p5, %p4141_p4 }
   0xe   :  { %p4144_p7 = pnand %p4143_p6, %p4137_p3 }
  0x10   :  { %4147 = shalt.err (!%p4144_p7)
}
  0x11   :  { %s4199_s7 = smov 256   ;;  %s4200_s8 = smov 16  }
  0x12   :  { %28 = dma.hbm_to_vmem [thread:$0]  %s5790_s1, 4096, %s23_s22, [#allocation3], %s4199_s7, %s4199_s7, %s4200_s8  }
  0x13   :  { %4192 = dma.done.wait [#allocation3], 4096  }
  0x14   :  { %4193 = vsyncadd [#allocation3], 4294963200  ;;  %v4201_v0 = vmov 0   ;;  %v4255_v1 = vld [vmem:[#allocation2 + $0x4] ss:$16 sps:$4 sm:$0xff]   ;;  %vm424_vm8 = vcmask 1041409  }
  0x15   :  { %288 = vmatprep.mubr.bf16.mxu0 %v4201_v0  ;;  %329 = vmatprep.mubr.bf16.mxu1 %v4201_v0  ;;  %v4257_v2 = vld [vmem:[#allocation2] ss:$16 sps:$4 sm:$0xff]   ;;  %v4260_v3 = vld [vmem:[#allocation2 + $0x24] ss:$16 sps:$4 sm:$0xff]   ;;  %v4268_v6 = vld [vmem:[#allocation2 + $0xc] ss:$16 sps:$4 sm:$0xff]  }
  0x16   :  { %3468 = vset.pattern.permute.xlu0 %v4201_v0  ;;  %3469 = vset.pattern.permute.xlu1 %v4201_v0  ;;  %v4263_v4 = vld [vmem:[#allocation2 + $0x20] ss:$16 sps:$4 sm:$0xff]   ;;  %v4266_v5 = vld [vmem:[#allocation2 + $0x44] ss:$16 sps:$4 sm:$0xff]   ;;  %v4270_v7 = vld [vmem:[#allocation2 + $0x8] ss:$16 sps:$4 sm:$0xff]  }
  0x17   :  { %256 = vmatprep.subr.bf16.mxu0 %v4255_v1  ;;  %v4273_v8 = vld [vmem:[#allocation2 + $0x40] ss:$16 sps:$4 sm:$0xff]   ;;  %297 = vmatprep.subr.bf16.mxu1 %v4268_v6  ;;  %v4277_v9 = vld [vmem:[#allocation2 + $0x64] ss:$16 sps:$4 sm:$0xff]   ;;  %v4280_v10 = vld [vmem:[#allocation2 + $0x2c] ss:$16 sps:$4 sm:$0xff]  }
  0x18   :  { %257 = vmatpush1.bf16.msra.mxu0 %v4257_v2  ;;  %298 = vmatpush1.bf16.msra.mxu1 %v4270_v7  ;;  %v4282_v11 = vld [vmem:[#allocation2 + $0x28] ss:$16 sps:$4 sm:$0xff]   ;;  %v4286_v12 = vld [vmem:[#allocation2 + $0x60] ss:$16 sps:$4 sm:$0xff]   ;;  %v4288_v13 = vld [vmem:[#allocation2 + $0x84] ss:$16 sps:$4 sm:$0xff]  }
  0x19   :  { %258 = vmatprep.subr.bf16.mxu0 %v4260_v3  ;;  %299 = vmatprep.subr.bf16.mxu1 %v4280_v10  ;;  %v4290_v14 = vld [vmem:[#allocation2 + $0x4c] ss:$16 sps:$4 sm:$0xff]   ;;  %v4294_v15 = vld [vmem:[#allocation2 + $0x48] ss:$16 sps:$4 sm:$0xff]   ;;  %v4300_v17 = vld [vmem:[#allocation2 + $0x80] ss:$16 sps:$4 sm:$0xff]  }
  0x1a   :  { %v4297_v16 = vld [vmem:[#allocation2 + $0x6c] ss:$16 sps:$4 sm:$0xff]   ;;  %v4303_v18 = vld [vmem:[#allocation2 + $0xa4] ss:$16 sps:$4 sm:$0xff]   ;;  %v4306_v19 = vld [vmem:[#allocation2 + $0x68] ss:$16 sps:$4 sm:$0xff]  }
  0x1b   :  { %v4309_v20 = vld [vmem:[#allocation2 + $0x8c] ss:$16 sps:$4 sm:$0xff]   ;;  %v43_v21 = vld [vmem:[%s5792_s3] sm:$0x3]  ;;  %v4317_v23 = vld [vmem:[#allocation2 + $0xc4] ss:$16 sps:$4 sm:$0xff]  }
  0x1c   :  { %259 = vmatpush1.bf16.msra.mxu0 %v4263_v4  ;;  %300 = vmatpush1.bf16.msra.mxu1 %v4282_v11  ;;  %v4314_v22 = vld [vmem:[#allocation2 + $0xa0] ss:$16 sps:$4 sm:$0xff]   ;;  %44 = vst [vmem:[#allocation5] sm:$0x3] %v43_v21  ;;  %v4321_v24 = vld [vmem:[#allocation2 + $0x88] ss:$16 sps:$4 sm:$0xff]  }
  0x1d   :  { %260 = vmatprep.subr.bf16.mxu0 %v4266_v5  ;;  %301 = vmatprep.subr.bf16.mxu1 %v4290_v14  ;;  %v4324_v25 = vld [vmem:[#allocation2 + $0xac] ss:$16 sps:$4 sm:$0xff]   ;;  %v4329_v26 = vld [vmem:[%s5791_s2] sm:$0x3]  ;;  %v4338_v29 = vld [vmem:[#allocation2 + $0xe4] ss:$16 sps:$4 sm:$0xff]  }
  0x1e   :  { %vm3356_vm0 = vcmp.gt.s32.totalorder %v4329_v26, 0  ;;  %v4333_v27 = vld [vmem:[#allocation2 + $0xc0] ss:$16 sps:$4 sm:$0xff]   ;;  %vm3363_vm1 = vcmp.gt.s32.totalorder %v4329_v26, 1  ;;  %v4341_v30 = vld [vmem:[#allocation2 + $0xa8] ss:$16 sps:$4 sm:$0xff]  }
  0x1f   :  { %v416_v28 = vsel %vm3356_vm0, 1, %v4201_v0  ;;  %v4344_v31 = vld [vmem:[#allocation2 + $0xcc] ss:$16 sps:$4 sm:$0xff]   ;;  %v596_v32 = vsel %vm3363_vm1, 1, %v4201_v0  ;;  %v4348_v33 = vld [vmem:[#allocation2 + $0xe0] ss:$16 sps:$4 sm:$0xff]  }
  0x20   :  { %261 = vmatpush1.bf16.msra.mxu0 %v4273_v8  ;;  %302 = vmatpush1.bf16.msra.mxu1 %v4294_v15  ;;  %vm3384_vm2 = vcmp.gt.s32.totalorder %v4329_v26, 4  ;;  %v4355_v35 = vld [vmem:[#allocation2 + $0xc8] ss:$16 sps:$4 sm:$0xff]   ;;  %v4358_v36 = vld [vmem:[#allocation2 + $0xec] ss:$16 sps:$4 sm:$0xff]   ;;  %vm3398_vm3 = vcmp.gt.s32.totalorder %v4329_v26, 6 }
  0x21   :  { %262 = vmatprep.subr.bf16.mxu0 %v4277_v9  ;;  %303 = vmatprep.subr.bf16.mxu1 %v4297_v16  ;;  %v1176_v38 = vsel %vm3384_vm2, 1, %v4201_v0  ;;  %v4366_v39 = vld [vmem:[#allocation2 + $0xe8] ss:$16 sps:$4 sm:$0xff]   ;;  %v1560_v40 = vsel %vm3398_vm3, 1, %v4201_v0  ;;  %vm3412_vm4 = vcmp.gt.s32.totalorder %v4329_v26, 8  ;;  %vm3426_vm5 = vcmp.gt.s32.totalorder %v4329_v26, 10 }
  0x22   :  { %418 = vperm.xlu0 %3468, %v416_v28   ;;  %v1939_v41 = vsel %vm3412_vm4, 1, %v4201_v0  ;;  %v2314_v42 = vsel %vm3426_vm5, 1, %v4201_v0  ;;  %vm3440_vm6 = vcmp.gt.s32.totalorder %v4329_v26, 12  ;;  %vm3454_vm7 = vcmp.gt.s32.totalorder %v4329_v26, 14  ;;  %v45_v45 = vld [vmem:[%s5793_s4] sm:$0x3] }
  0x23   :  { %v4350_v34 = vld [vmem:[#allocation5] sm:$0x3]  ;;  %v2698_v43 = vsel %vm3440_vm6, 1, %v4201_v0  ;;  %v3082_v44 = vsel %vm3454_vm7, 1, %v4201_v0  ;;  %46 = vst [vmem:[#allocation6] sm:$0x3] %v45_v45 }
  0x24   :  { %263 = vmatpush1.bf16.msra.mxu0 %v4286_v12  ;;  %304 = vmatpush1.bf16.msra.mxu1 %v4306_v19  ;;  %v95_v37 = vpack.c.bf16 %v4350_v34, %v4350_v34  ;;  %v4421_v46 = vld [vmem:[%s5789_s0] sm:$0x11]  ;;  %v4435_v53 = vld [vmem:[%s5789_s0 + $0x8] sm:$0x11]  ;;  %vm3370_vm10 = vcmp.gt.s32.totalorder %v4329_v26, 2  ;;  %vm3377_vm11 = vcmp.gt.s32.totalorder %v4329_v26, 3 }
  0x25   :  { %264 = vmatprep.subr.bf16.mxu0 %v4288_v13  ;;  %305 = vmatprep.subr.bf16.mxu1 %v4309_v20  ;;  %v4426_v47 = vld [vmem:[%s5789_s0 + $0x20] sm:$0x11]  ;;  %v87_v48 = vunpack.c.l.bf16 %v4421_v46  ;;  %v88_v49 = vunpack.c.h.bf16 %v4421_v46  ;;  %v4444_v60 = vld [vmem:[%s5789_s0 + $0x28] sm:$0x11]  ;;  %v5799_v21 = vunpack.c.h.bf16 %v4435_v53  ;;  %vm3391_vm12 = vcmp.gt.s32.totalorder %v4329_v26, 5 }
  0x26   :  { %598 = vperm.xlu0 %3468, %v596_v32   ;;  %v91_v50 = vunpack.c.l.bf16 %v4426_v47  ;;  %v92_v52 = vunpack.c.h.bf16 %v4426_v47  ;;  %vm3405_vm13 = vcmp.gt.s32.totalorder %v4329_v26, 7  ;;  %vm3419_vm14 = vcmp.gt.s32.totalorder %v4329_v26, 9 }
  0x27   :  { %vm3433_vm15 = vcmp.gt.s32.totalorder %v4329_v26, 11  ;;  %vm3447_vm0 = vcmp.gt.s32.totalorder %v4329_v26, 13  ;;  %vm3461_vm1 = vcmp.gt.s32.totalorder %v4329_v26, 15  ;;  %v5808_v47 = vunpack.c.h.bf16 %v4435_v53 }
  0x28   :  { %265 = vmatpush1.bf16.msra.mxu0 %v4300_v17  ;;  %306 = vmatpush1.bf16.msra.mxu1 %v4321_v24 }
  0x29   :  { %266 = vmatprep.subr.bf16.mxu0 %v4303_v18  ;;  %307 = vmatprep.subr.bf16.mxu1 %v4324_v25 }
  0x2a   :  { %1178 = vperm.xlu0 %3468, %v1176_v38  }
  0x2c   :  { %267 = vmatpush1.bf16.msra.mxu0 %v4314_v22  ;;  %308 = vmatpush1.bf16.msra.mxu1 %v4341_v30 }
  0x2d   :  { %268 = vmatprep.subr.bf16.mxu0 %v4317_v23  ;;  %309 = vmatprep.subr.bf16.mxu1 %v4344_v31 }
  0x2e   :  { %1562 = vperm.xlu0 %3468, %v1560_v40   ;;  %v5798_v40 = vunpack.c.h.bf16 %v4444_v60 }
  0x30   :  { %269 = vmatpush1.bf16.msra.mxu0 %v4333_v27  ;;  %310 = vmatpush1.bf16.msra.mxu1 %v4355_v35 }
  0x31   :  { %270 = vmatprep.subr.bf16.mxu0 %v4338_v29  ;;  %311 = vmatprep.subr.bf16.mxu1 %v4358_v36 }
  0x32   :  { %1941 = vperm.xlu0 %3468, %v1939_v41  }
  0x34   :  { %271 = vmatpush1.bf16.msra.mxu0 %v4348_v33  ;;  %312 = vmatpush1.bf16.msra.mxu1 %v4366_v39 }
  0x35   :  { %435 = vmatprep.subr.bf16.mxu0 %v4255_v1  ;;  %476 = vmatprep.subr.bf16.mxu1 %v4268_v6 }
  0x36   :  { %2316 = vperm.xlu0 %3468, %v2314_v42   ;;  %v5796_v42 = vunpack.c.l.bf16 %v4435_v53 }
  0x37   :  { %289 = vmatmul.mubr.bf16.vlgmr.msra.gmra.mrb[0].mxu0 %v95_v37  ;;  %330 = vmatmul.mubr.bf16.vlgmr.msra.gmra.mrb[0].mxu1 %v95_v37 }
  0x38   :  { %436 = vmatpush1.bf16.msra.mxu0 %v4257_v2  ;;  %467 = vmatprep.mubr.bf16.mxu0 %v4201_v0 }
  0x39   :  { %437 = vmatprep.subr.bf16.mxu0 %v4260_v3  ;;  %477 = vmatpush1.bf16.msra.mxu1 %v4270_v7 }
  0x3a   :  { %478 = vmatprep.subr.bf16.mxu1 %v4280_v10  ;;  %508 = vmatprep.mubr.bf16.mxu1 %v4201_v0 }
  0x3b   :  { %2700 = vperm.xlu0 %3468, %v2698_v43  }
  0x3c   :  { %438 = vmatpush1.bf16.msra.mxu0 %v4263_v4 }
  0x3d   :  { %439 = vmatprep.subr.bf16.mxu0 %v4266_v5  ;;  %479 = vmatpush1.bf16.msra.mxu1 %v4282_v11 }
  0x3e   :  { %480 = vmatprep.subr.bf16.mxu1 %v4290_v14 }
  0x3f   :  { %3084 = vperm.xlu0 %3468, %v3082_v44  }
  0x40   :  { %440 = vmatpush1.bf16.msra.mxu0 %v4273_v8 }
  0x41   :  { %441 = vmatprep.subr.bf16.mxu0 %v4277_v9  ;;  %481 = vmatpush1.bf16.msra.mxu1 %v4294_v15 }
  0x42   :  { %482 = vmatprep.subr.bf16.mxu1 %v4297_v16 }
  0x44   :  { %442 = vmatpush1.bf16.msra.mxu0 %v4286_v12 }
  0x45   :  { %443 = vmatprep.subr.bf16.mxu0 %v4288_v13  ;;  %483 = vmatpush1.bf16.msra.mxu1 %v4306_v19 }
  0x46   :  { %484 = vmatprep.subr.bf16.mxu1 %v4309_v20 }
  0x48   :  { %444 = vmatpush1.bf16.msra.mxu0 %v4300_v17 }
  0x49   :  { %445 = vmatprep.subr.bf16.mxu0 %v4303_v18  ;;  %485 = vmatpush1.bf16.msra.mxu1 %v4321_v24 }
  0x4a   :  { %486 = vmatprep.subr.bf16.mxu1 %v4324_v25 }
  0x4c   :  { %446 = vmatpush1.bf16.msra.mxu0 %v4314_v22 }
  0x4d   :  { %447 = vmatprep.subr.bf16.mxu0 %v4317_v23  ;;  %487 = vmatpush1.bf16.msra.mxu1 %v4341_v30 }
  0x4e   :  { %488 = vmatprep.subr.bf16.mxu1 %v4344_v31 }
  0x50   :  { %448 = vmatpush1.bf16.msra.mxu0 %v4333_v27 }
  0x51   :  { %449 = vmatprep.subr.bf16.mxu0 %v4338_v29  ;;  %489 = vmatpush1.bf16.msra.mxu1 %v4355_v35 }
  0x52   :  { %490 = vmatprep.subr.bf16.mxu1 %v4358_v36 }
  0x54   :  { %450 = vmatpush1.bf16.msra.mxu0 %v4348_v33 }
  0x55   :  { %626 = vmatprep.subr.bf16.mxu0 %v4255_v1  ;;  %491 = vmatpush1.bf16.msra.mxu1 %v4366_v39 }
  0x56   :  { %667 = vmatprep.subr.bf16.mxu1 %v4268_v6 }
 0x10a   :  { %v290_v51 = vpop.f32.mrb[0].mxu0  ;;  %v331_v38 = vpop.f32.mrb[0].mxu1 }
 0x10b   :  { %v342_v54 = vrot.slane %v290_v51, 1  ;;  %v354_v55 = vadd.f32 %v290_v51, %v87_v48  ;;  %v292_v56 = vpop.f32.mrb[1].mxu0  ;;  %v333_v43 = vpop.f32.mrb[1].mxu1 }
 0x10c   :  { %v343_v57 = vrot.slane %v292_v56, 1  ;;  %v355_v58 = vadd.f32 %v292_v56, %v88_v49  ;;  %v294_v59 = vpop.f32.mrb[2].mxu0  ;;  %v345_v44 = vrot.slane %v333_v43, 1  ;;  %v357_v45 = vadd.f32 %v333_v43, %v5799_v21  ;;  %v335_v51 = vpop.f32.mrb[2].mxu1 }
 0x10d   :  { %v358_v61 = vadd.f32 %v342_v54, %v91_v50  ;;  %v3350_v62 = vmul.f32 -1.442695, %v354_v55  ;;  %v295_v63 = vpop.f32.mrb[3].mxu0  ;;  %v336_v54 = vpop.f32.mrb[3].mxu1  ;;  %v5797_v55 = vunpack.c.l.bf16 %v4444_v60  ;;  %v344_v56 = vrot.slane %v331_v38, 1 }
 0x10e   :  { %v359_v28 = vadd.f32 %v343_v57, %v92_v52  ;;  %v3352_v32 = vmul.f32 -1.442695, %v355_v58  ;;  %v361_v57 = vadd.f32 %v345_v44, %v5798_v40  ;;  %v356_v58 = vadd.f32 %v331_v38, %v5796_v42  ;;  %v48_v54 = vld [vmem:[#allocation6] sm:$0x3] }
 0x10f   :  { %3518 = vpow2.f32 %v3350_v62  ;;  %v3351_v37 = vmul.f32 -1.442695, %v358_v61  ;;  %v3354_v59 = vmul.f32 -1.442695, %v357_v45  ;;  %v360_v62 = vadd.f32 %v344_v56, %v5797_v55 }
 0x110   :  { %3520 = vpow2.f32 %v3352_v32  ;;  %v3353_v41 = vmul.f32 -1.442695, %v359_v28  ;;  %v3355_v61 = vmul.f32 -1.442695, %v361_v57  ;;  %v401_v42 = vrot.slane %v48_v54, 1 }
 0x111   :  { %3522 = vpow2.f32 %v3351_v37 }
 0x112   :  { %3524 = vpow2.f32 %v3353_v41 }
 0x113   :  { %3526 = vtanh.f32 %v356_v58 }
 0x114   :  { %3528 = vpow2.f32 %v3354_v59 }
 0x115   :  { %3530 = vpow2.f32 %v3355_v61 }
 0x116   :  { %3532 = vtanh.f32 %v360_v62 }
 0x119   :  { %v3519_v63 = vpop.eup %3518 }
 0x11a   :  { %v3521_v28 = vpop.eup %3520  ;;  %v368_v32 = vadd.f32 1.0, %v3519_v63 }
 0x11b   :  { %v3523_v37 = vpop.eup %3522  ;;  %v380_v41 = vadd.f32 1.0, %v3521_v28 }
 0x11c   :  { %v3525_v43 = vpop.eup %3524  ;;  %v369_v51 = vadd.f32 1.0, %v3523_v37  ;;  %3534 = vrcp.f32 %v368_v32 }
 0x11d   :  { %v381_v44 = vadd.f32 1.0, %v3525_v43  ;;  %3536 = vrcp.f32 %v380_v41  ;;  %v3527_v38 = vpop.eup %3526 }
 0x11e   :  { %3538 = vrcp.f32 %v369_v51  ;;  %v3529_v45 = vpop.eup %3528  ;;  %v419_v51 = vpop.permute.xlu0 %418 }
 0x11f   :  { %3540 = vrcp.f32 %v381_v44  ;;  %v3531_v56 = vpop.eup %3530  ;;  %v394_v59 = vadd.f32 1.0, %v3529_v45  ;;  %vm420_vm9 = vcmp.eq.s32.totalorder %v419_v51, 1 }
 0x120   :  { %v3533_v57 = vpop.eup %3532  ;;  %v395_v61 = vadd.f32 1.0, %v3531_v56 }
 0x121   :  { %3542 = vrcp.f32 %v394_v59 }
 0x122   :  { %3544 = vrcp.f32 %v395_v61 }
 0x126   :  { %v3535_v58 = vpop.eup %3534 }
 0x127   :  { %v3537_v63 = vpop.eup %3536  ;;  %v406_v55 = vmul.f32 %v3535_v58, %v3527_v38 }
 0x128   :  { %v3539_v28 = vpop.eup %3538  ;;  %v404_v62 = vmul.f32 %v3537_v63, %v48_v54 }
 0x129   :  { %v3541_v40 = vpop.eup %3540  ;;  %v407_v37 = vmul.f32 %v3539_v28, %v3533_v57  ;;  %v1362_v28 = vsel %vm3391_vm12, 1, %v4201_v0 }
 0x12a   :  { %v405_v32 = vmul.f32 %v3541_v40, %v401_v42  ;;  %v408_v41 = vadd.f32 %v406_v55, %v404_v62  ;;  %v1746_v62 = vsel %vm3405_vm13, 1, %v4201_v0 }
 0x12b   :  { %v3543_v38 = vpop.eup %3542 }
 0x12c   :  { %v409_v43 = vadd.f32 %v407_v37, %v405_v32  ;;  %3546 = vtanh.f32 %v408_v41  ;;  %v3545_v56 = vpop.eup %3544  ;;  %v2118_v37 = vsel %vm3419_vm14, 1, %v4201_v0  ;;  %v2500_v32 = vsel %vm3433_vm15, 1, %v4201_v0 }
 0x12e   :  { %3548 = vtanh.f32 %v409_v43  ;;  %v430_v44 = vrot.slane %v409_v43, 7  ;;  %v3268_v43 = vsel %vm3461_vm1, 1, %v4201_v0 }
 0x130   :  { %v431_v45 = vsel %vm424_vm8, %v430_v44, %v408_v41  ;;  %v2884_v41 = vsel %vm3447_vm0, 1, %v4201_v0 }
 0x131   :  { %v4463_v21 = vsel %vm420_vm9, %v431_v45, %v48_v54  ;;  %v978_v54 = vsel %vm3377_vm11, 1, %v4201_v0 }
 0x136   :  { %v3547_v58 = vpop.eup %3546 }
 0x137   :  { %v412_v63 = vmul.f32 %v3547_v58, %v3543_v38 }
 0x138   :  { %v3549_v57 = vpop.eup %3548 }
 0x139   :  { %v413_v59 = vmul.f32 %v3549_v57, %v3545_v56 }
 0x13b   :  { %v423_v40 = vrot.slane %v413_v59, 7 }
 0x13d   :  { %v425_v42 = vsel %vm424_vm8, %v423_v40, %v412_v63 }
 0x13e   :  { %v4467_v55 = vsel %vm420_vm9, %v425_v42, %v4350_v34  ;;  %v792_v34 = vsel %vm3370_vm10, 1, %v4201_v0 }
 0x13f   :  { %v434_v61 = vpack.c.bf16 %v4467_v55, %v4467_v55  ;;  %794 = vperm.xlu1 %3469, %v792_v34  }
 0x141   :  { %468 = vmatmul.mubr.bf16.vlgmr.msra.gmra.mrb[4].mxu0 %v434_v61  ;;  %509 = vmatmul.mubr.bf16.vlgmr.msra.gmra.mrb[4].mxu1 %v434_v61 }
 0x142   :  { %627 = vmatpush1.bf16.msra.mxu0 %v4257_v2  ;;  %668 = vmatpush1.bf16.msra.mxu1 %v4270_v7 }
 0x143   :  { %628 = vmatprep.subr.bf16.mxu0 %v4260_v3  ;;  %669 = vmatprep.subr.bf16.mxu1 %v4280_v10 }
 0x144   :  { %658 = vmatprep.mubr.bf16.mxu0 %v4201_v0  ;;  %699 = vmatprep.mubr.bf16.mxu1 %v4201_v0 }
 0x145   :  { %980 = vperm.xlu1 %3469, %v978_v54  }
 0x146   :  { %629 = vmatpush1.bf16.msra.mxu0 %v4263_v4  ;;  %670 = vmatpush1.bf16.msra.mxu1 %v4282_v11 }
 0x147   :  { %630 = vmatprep.subr.bf16.mxu0 %v4266_v5  ;;  %671 = vmatprep.subr.bf16.mxu1 %v4290_v14 }
 0x149   :  { %1364 = vperm.xlu1 %3469, %v1362_v28  }
 0x14a   :  { %631 = vmatpush1.bf16.msra.mxu0 %v4273_v8  ;;  %672 = vmatpush1.bf16.msra.mxu1 %v4294_v15 }
 0x14b   :  { %632 = vmatprep.subr.bf16.mxu0 %v4277_v9  ;;  %673 = vmatprep.subr.bf16.mxu1 %v4297_v16 }
 0x14d   :  { %1748 = vperm.xlu1 %3469, %v1746_v62  }
 0x14e   :  { %633 = vmatpush1.bf16.msra.mxu0 %v4286_v12  ;;  %674 = vmatpush1.bf16.msra.mxu1 %v4306_v19 }
 0x14f   :  { %634 = vmatprep.subr.bf16.mxu0 %v4288_v13  ;;  %675 = vmatprep.subr.bf16.mxu1 %v4309_v20 }
 0x151   :  { %2120 = vperm.xlu1 %3469, %v2118_v37  }
 0x152   :  { %635 = vmatpush1.bf16.msra.mxu0 %v4300_v17  ;;  %676 = vmatpush1.bf16.msra.mxu1 %v4321_v24 }
 0x153   :  { %636 = vmatprep.subr.bf16.mxu0 %v4303_v18  ;;  %677 = vmatprep.subr.bf16.mxu1 %v4324_v25 }
 0x155   :  { %2502 = vperm.xlu1 %3469, %v2500_v32   ;;  %v5809_v32 = vunpack.c.h.bf16 %v4444_v60 }
 0x156   :  { %637 = vmatpush1.bf16.msra.mxu0 %v4314_v22  ;;  %678 = vmatpush1.bf16.msra.mxu1 %v4341_v30 }
 0x157   :  { %638 = vmatprep.subr.bf16.mxu0 %v4317_v23  ;;  %679 = vmatprep.subr.bf16.mxu1 %v4344_v31 }
 0x159   :  { %2886 = vperm.xlu1 %3469, %v2884_v41  }
 0x15a   :  { %639 = vmatpush1.bf16.msra.mxu0 %v4333_v27  ;;  %680 = vmatpush1.bf16.msra.mxu1 %v4355_v35 }
 0x15b   :  { %640 = vmatprep.subr.bf16.mxu0 %v4338_v29  ;;  %681 = vmatprep.subr.bf16.mxu1 %v4358_v36 }
 0x15d   :  { %3270 = vperm.xlu1 %3469, %v3268_v43   ;;  %v5810_v43 = vunpack.c.l.bf16 %v4444_v60 }
 0x15e   :  { %641 = vmatpush1.bf16.msra.mxu0 %v4348_v33  ;;  %682 = vmatpush1.bf16.msra.mxu1 %v4366_v39 }
 0x15f   :  { %812 = vmatprep.subr.bf16.mxu0 %v4255_v1  ;;  %853 = vmatprep.subr.bf16.mxu1 %v4268_v6 }
 0x214   :  { %v469_v51 = vpop.f32.mrb[4].mxu0  ;;  %v510_v44 = vpop.f32.mrb[4].mxu1 }
 0x215   :  { %v521_v45 = vrot.slane %v469_v51, 7  ;;  %v537_v38 = vadd.f32 %v469_v51, %v91_v50  ;;  %v471_v56 = vpop.f32.mrb[5].mxu0  ;;  %v512_v58 = vpop.f32.mrb[5].mxu1  ;;  %v523_v41 = vrot.slane %v510_v44, 7  ;;  %v539_v51 = vadd.f32 %v510_v44, %v5810_v43 }
 0x216   :  { %v522_v63 = vrot.slane %v471_v56, 7  ;;  %v538_v57 = vadd.f32 %v471_v56, %v92_v52  ;;  %v473_v59 = vpop.f32.mrb[6].mxu0  ;;  %v514_v40 = vpop.f32.mrb[6].mxu1  ;;  %v524_v28 = vrot.slane %v512_v58, 7 }
 0x217   :  { %v533_v26 = vadd.f32 %v521_v45, %v87_v48  ;;  %v3358_v42 = vmul.f32 -1.442695, %v537_v38  ;;  %v474_v61 = vpop.f32.mrb[7].mxu0  ;;  %v515_v34 = vpop.f32.mrb[7].mxu1  ;;  %v540_v48 = vadd.f32 %v512_v58, %v5809_v32  ;;  %v5811_v38 = vunpack.c.l.bf16 %v4435_v53 }
 0x218   :  { %v534_v54 = vadd.f32 %v522_v63, %v88_v49  ;;  %v3360_v50 = vmul.f32 -1.442695, %v538_v57  ;;  %v536_v52 = vadd.f32 %v524_v28, %v5808_v47 }
 0x219   :  { %v3357_v62 = vmul.f32 -1.442695, %v533_v26  ;;  %3550 = vpow2.f32 %v3358_v42  ;;  %v3362_v49 = vmul.f32 -1.442695, %v540_v48  ;;  %v535_v56 = vadd.f32 %v523_v41, %v5811_v38 }
 0x21a   :  { %v3359_v37 = vmul.f32 -1.442695, %v534_v54  ;;  %v3361_v46 = vmul.f32 -1.442695, %v536_v52 }
 0x21b   :  { %3552 = vpow2.f32 %v3357_v62  ;;  %v580_v62 = vrot.slane %v4463_v21, 7 }
 0x21c   :  { %3554 = vpow2.f32 %v3359_v37 }
 0x21d   :  { %3556 = vpow2.f32 %v3360_v50 }
 0x21e   :  { %3558 = vtanh.f32 %v539_v51 }
 0x21f   :  { %3560 = vpow2.f32 %v3361_v46 }
 0x220   :  { %3562 = vpow2.f32 %v3362_v49  ;;  %v599_v49 = vpop.permute.xlu0 %598 }
 0x221   :  { %vm600_vm2 = vcmp.eq.s32.totalorder %v599_v49, 1 }
 0x223   :  { %v3551_v45 = vpop.eup %3550 }
 0x224   :  { %v548_v63 = vadd.f32 1.0, %v3551_v45 }
 0x225   :  { %v3553_v57 = vpop.eup %3552 }
 0x226   :  { %v3555_v59 = vpop.eup %3554  ;;  %v547_v40 = vadd.f32 1.0, %v3553_v57  ;;  %3564 = vrcp.f32 %v548_v63 }
 0x227   :  { %v3557_v26 = vpop.eup %3556  ;;  %3566 = vtanh.f32 %v535_v56  ;;  %v559_v58 = vadd.f32 1.0, %v3555_v59 }
 0x228   :  { %3568 = vrcp.f32 %v547_v40  ;;  %v560_v60 = vadd.f32 1.0, %v3557_v26  ;;  %v3559_v44 = vpop.eup %3558 }
 0x229   :  { %3570 = vrcp.f32 %v559_v58  ;;  %v3561_v42 = vpop.eup %3560 }
 0x22a   :  { %3572 = vrcp.f32 %v560_v60  ;;  %v3563_v61 = vpop.eup %3562  ;;  %v573_v50 = vadd.f32 1.0, %v3561_v42 }
 0x22b   :  { %v574_v52 = vadd.f32 1.0, %v3563_v61 }
 0x22c   :  { %3574 = vrcp.f32 %v573_v50  ;;  %v4609_v50 = vld [vmem:[%s5789_s0 + $0x28] sm:$0x22] }
 0x22d   :  { %3576 = vrcp.f32 %v574_v52 }
 0x230   :  { %v3565_v53 = vpop.eup %3564 }
 0x231   :  { %v3567_v34 = vpop.eup %3566  ;;  %v586_v54 = vmul.f32 %v3565_v53, %v3559_v44 }
 0x232   :  { %v3569_v28 = vpop.eup %3568 }
 0x233   :  { %v3571_v37 = vpop.eup %3570  ;;  %v585_v47 = vmul.f32 %v3569_v28, %v3567_v34 }
 0x234   :  { %v3573_v32 = vpop.eup %3572  ;;  %v583_v48 = vmul.f32 %v3571_v37, %v580_v62 }
 0x235   :  { %v584_v41 = vmul.f32 %v3573_v32, %v4463_v21 }
 0x236   :  { %v587_v43 = vadd.f32 %v585_v47, %v583_v48  ;;  %v3575_v56 = vpop.eup %3574 }
 0x237   :  { %v588_v51 = vadd.f32 %v586_v54, %v584_v41  ;;  %v3577_v63 = vpop.eup %3576  ;;  %v4604_v54 = vld [vmem:[%s5789_s0 + $0x8] sm:$0x22] }
 0x238   :  { %3578 = vtanh.f32 %v587_v43  ;;  %v609_v46 = vrot.slane %v587_v43, 1  ;;  %v620_v43 = vunpack.c.h.bf16 %v4604_v54 }
 0x239   :  { %3580 = vtanh.f32 %v588_v51 }
 0x23a   :  { %v610_v45 = vsel %vm424_vm8, %v588_v51, %v609_v46  ;;  %v624_v46 = vunpack.c.h.bf16 %v4609_v50 }
 0x23b   :  { %v4541_v38 = vsel %vm600_vm2, %v610_v45, %v4463_v21  ;;  %v619_v45 = vunpack.c.l.bf16 %v4604_v54 }
 0x242   :  { %v3579_v57 = vpop.eup %3578 }
 0x243   :  { %v3581_v59 = vpop.eup %3580  ;;  %v591_v40 = vmul.f32 %v3579_v57, %v3575_v56 }
 0x244   :  { %v592_v26 = vmul.f32 %v3581_v59, %v3577_v63  ;;  %v623_v63 = vunpack.c.l.bf16 %v4609_v50 }
 0x245   :  { %v603_v58 = vrot.slane %v591_v40, 1 }
 0x247   :  { %v604_v60 = vsel %vm424_vm8, %v592_v26, %v603_v58 }
 0x248   :  { %v4545_v44 = vsel %vm600_vm2, %v604_v60, %v4467_v55 }
 0x249   :  { %v625_v42 = vpack.c.bf16 %v4545_v44, %v4545_v44 }
 0x24b   :  { %659 = vmatmul.mubr.bf16.vlgmr.msra.gmra.mrb[8].mxu0 %v625_v42  ;;  %700 = vmatmul.mubr.bf16.vlgmr.msra.gmra.mrb[8].mxu1 %v625_v42 }
 0x24c   :  { %813 = vmatpush1.bf16.msra.mxu0 %v4257_v2  ;;  %854 = vmatpush1.bf16.msra.mxu1 %v4270_v7  ;;  %v4586_v2 = vld [vmem:[%s5789_s0] sm:$0x22] }
 0x24d   :  { %814 = vmatprep.subr.bf16.mxu0 %v4260_v3  ;;  %855 = vmatprep.subr.bf16.mxu1 %v4280_v10  ;;  %v4591_v3 = vld [vmem:[%s5789_s0 + $0x20] sm:$0x22] }
 0x24e   :  { %844 = vmatprep.mubr.bf16.mxu0 %v4201_v0  ;;  %885 = vmatprep.mubr.bf16.mxu1 %v4201_v0 }
 0x250   :  { %815 = vmatpush1.bf16.msra.mxu0 %v4263_v4  ;;  %856 = vmatpush1.bf16.msra.mxu1 %v4282_v11  ;;  %v617_v4 = vunpack.c.l.bf16 %v4586_v2 }
 0x251   :  { %816 = vmatprep.subr.bf16.mxu0 %v4266_v5  ;;  %857 = vmatprep.subr.bf16.mxu1 %v4290_v14  ;;  %v621_v5 = vunpack.c.l.bf16 %v4591_v3 }
 0x254   :  { %817 = vmatpush1.bf16.msra.mxu0 %v4273_v8  ;;  %858 = vmatpush1.bf16.msra.mxu1 %v4294_v15 }
 0x255   :  { %818 = vmatprep.subr.bf16.mxu0 %v4277_v9  ;;  %859 = vmatprep.subr.bf16.mxu1 %v4297_v16 }
 0x258   :  { %819 = vmatpush1.bf16.msra.mxu0 %v4286_v12  ;;  %860 = vmatpush1.bf16.msra.mxu1 %v4306_v19 }
 0x259   :  { %820 = vmatprep.subr.bf16.mxu0 %v4288_v13  ;;  %861 = vmatprep.subr.bf16.mxu1 %v4309_v20 }
 0x25c   :  { %821 = vmatpush1.bf16.msra.mxu0 %v4300_v17  ;;  %862 = vmatpush1.bf16.msra.mxu1 %v4321_v24 }
 0x25d   :  { %822 = vmatprep.subr.bf16.mxu0 %v4303_v18  ;;  %863 = vmatprep.subr.bf16.mxu1 %v4324_v25 }
 0x260   :  { %823 = vmatpush1.bf16.msra.mxu0 %v4314_v22  ;;  %864 = vmatpush1.bf16.msra.mxu1 %v4341_v30 }
 0x261   :  { %824 = vmatprep.subr.bf16.mxu0 %v4317_v23  ;;  %865 = vmatprep.subr.bf16.mxu1 %v4344_v31 }
 0x264   :  { %825 = vmatpush1.bf16.msra.mxu0 %v4333_v27  ;;  %866 = vmatpush1.bf16.msra.mxu1 %v4355_v35 }
 0x265   :  { %826 = vmatprep.subr.bf16.mxu0 %v4338_v29  ;;  %867 = vmatprep.subr.bf16.mxu1 %v4358_v36 }
 0x268   :  { %827 = vmatpush1.bf16.msra.mxu0 %v4348_v33  ;;  %868 = vmatpush1.bf16.msra.mxu1 %v4366_v39 }
 0x269   :  { %1010 = vmatprep.subr.bf16.mxu0 %v4255_v1  ;;  %1051 = vmatprep.subr.bf16.mxu1 %v4268_v6  ;;  %v618_v1 = vunpack.c.h.bf16 %v4586_v2  ;;  %v622_v6 = vunpack.c.h.bf16 %v4591_v3 }
 0x31e   :  { %v660_v7 = vpop.f32.mrb[8].mxu0  ;;  %v701_v8 = vpop.f32.mrb[8].mxu1 }
 0x31f   :  { %v712_v9 = vrot.slane %v660_v7, 6  ;;  %v716_v10 = vrot.slane %v660_v7, 7  ;;  %v662_v11 = vpop.f32.mrb[9].mxu0  ;;  %v703_v12 = vpop.f32.mrb[9].mxu1  ;;  %v714_v56 = vrot.slane %v701_v8, 6  ;;  %v718_v57 = vrot.slane %v701_v8, 7 }
 0x320   :  { %v713_v13 = vrot.slane %v662_v11, 6  ;;  %v717_v21 = vrot.slane %v662_v11, 7  ;;  %v664_v55 = vpop.f32.mrb[10].mxu0  ;;  %v705_v61 = vpop.f32.mrb[10].mxu1  ;;  %v715_v51 = vrot.slane %v703_v12, 6  ;;  %v719_v49 = vrot.slane %v703_v12, 7 }
 0x321   :  { %v728_v53 = vadd.f32 %v712_v9, %v617_v4  ;;  %v732_v34 = vadd.f32 %v716_v10, %v621_v5  ;;  %v665_v28 = vpop.f32.mrb[11].mxu0  ;;  %v706_v62 = vpop.f32.mrb[11].mxu1  ;;  %v730_v26 = vadd.f32 %v714_v56, %v619_v45  ;;  %v734_v58 = vadd.f32 %v718_v57, %v623_v63 }
 0x322   :  { %v729_v37 = vadd.f32 %v713_v13, %v618_v1  ;;  %v733_v47 = vadd.f32 %v717_v21, %v622_v6  ;;  %v731_v59 = vadd.f32 %v715_v51, %v620_v43  ;;  %v735_v40 = vadd.f32 %v719_v49, %v624_v46 }
 0x323   :  { %v3364_v52 = vmul.f32 -1.442695, %v728_v53  ;;  %v3365_v32 = vmul.f32 -1.442695, %v732_v34 }
 0x324   :  { %v3366_v48 = vmul.f32 -1.442695, %v729_v37  ;;  %v3367_v41 = vmul.f32 -1.442695, %v733_v47  ;;  %v3368_v60 = vmul.f32 -1.442695, %v731_v59 }
 0x325   :  { %3582 = vpow2.f32 %v3364_v52  ;;  %v3369_v42 = vmul.f32 -1.442695, %v735_v40  ;;  %v775_v47 = vrot.slane %v4541_v38, 6 }
 0x326   :  { %3584 = vpow2.f32 %v3365_v32 }
 0x327   :  { %3586 = vpow2.f32 %v3366_v48 }
 0x328   :  { %3588 = vpow2.f32 %v3367_v41  ;;  %v776_v41 = vrot.slane %v4541_v38, 7 }
 0x329   :  { %3590 = vtanh.f32 %v730_v26  ;;  %v795_v26 = vpop.permute.xlu1 %794 }
 0x32a   :  { %3592 = vtanh.f32 %v734_v58  ;;  %vm796_vm3 = vcmp.eq.s32.totalorder %v795_v26, 1 }
 0x32b   :  { %3594 = vpow2.f32 %v3368_v60 }
 0x32c   :  { %3596 = vpow2.f32 %v3369_v42 }
 0x32f   :  { %v3583_v7 = vpop.eup %3582 }
 0x330   :  { %v3585_v8 = vpop.eup %3584  ;;  %v742_v9 = vadd.f32 1.0, %v3583_v7 }
 0x331   :  { %v3587_v10 = vpop.eup %3586  ;;  %v743_v11 = vadd.f32 1.0, %v3585_v8 }
 0x332   :  { %v3589_v12 = vpop.eup %3588  ;;  %3598 = vrcp.f32 %v742_v9  ;;  %v754_v13 = vadd.f32 1.0, %v3587_v10 }
 0x333   :  { %3600 = vrcp.f32 %v743_v11  ;;  %v755_v21 = vadd.f32 1.0, %v3589_v12  ;;  %v3591_v55 = vpop.eup %3590 }
 0x334   :  { %3602 = vrcp.f32 %v754_v13  ;;  %v3593_v61 = vpop.eup %3592 }
 0x335   :  { %3604 = vrcp.f32 %v755_v21  ;;  %v3595_v53 = vpop.eup %3594 }
 0x336   :  { %v3597_v34 = vpop.eup %3596  ;;  %v768_v37 = vadd.f32 1.0, %v3595_v53 }
 0x337   :  { %v769_v48 = vadd.f32 1.0, %v3597_v34 }
 0x338   :  { %3606 = vrcp.f32 %v768_v37  ;;  %v4648_v37 = vld [vmem:[#allocation2 + $0x2c] ss:$16 sps:$4 sm:$0xff]  }
 0x339   :  { %3608 = vrcp.f32 %v769_v48  ;;  %v4667_v48 = vld [vmem:[#allocation2 + $0x64] ss:$16 sps:$4 sm:$0xff]  }
 0x33c   :  { %v3599_v28 = vpop.eup %3598 }
 0x33d   :  { %v3601_v62 = vpop.eup %3600  ;;  %v781_v52 = vmul.f32 %v3599_v28, %v3591_v55  ;;  %v4642_v28 = vld [vmem:[#allocation2 + $0x8] ss:$16 sps:$4 sm:$0xff]  }
 0x33e   :  { %v3603_v32 = vpop.eup %3602  ;;  %v782_v51 = vmul.f32 %v3601_v62, %v3593_v61  ;;  %v4645_v62 = vld [vmem:[#allocation2 + $0x24] ss:$16 sps:$4 sm:$0xff]  }
 0x33f   :  { %v3605_v49 = vpop.eup %3604  ;;  %v779_v56 = vmul.f32 %v3603_v32, %v775_v47  ;;  %v4656_v47 = vld [vmem:[#allocation2 + $0x28] ss:$16 sps:$4 sm:$0xff]   ;;  %v4663_v32 = vld [vmem:[#allocation2 + $0x40] ss:$16 sps:$4 sm:$0xff]  }
 0x340   :  { %v780_v57 = vmul.f32 %v3605_v49, %v776_v41  ;;  %v4671_v41 = vld [vmem:[#allocation2 + $0x60] ss:$16 sps:$4 sm:$0xff]  }
 0x341   :  { %v783_v59 = vadd.f32 %v781_v52, %v779_v56  ;;  %v4659_v52 = vld [vmem:[#allocation2 + $0x44] ss:$16 sps:$4 sm:$0xff]  }
 0x342   :  { %v784_v40 = vadd.f32 %v782_v51, %v780_v57  ;;  %v3607_v8 = vpop.eup %3606  ;;  %v4675_v51 = vld [vmem:[#allocation2 + $0x84] ss:$16 sps:$4 sm:$0xff]  }
 0x343   :  { %3610 = vtanh.f32 %v783_v59  ;;  %v806_v58 = vrot.slane %v783_v59, 2  ;;  %v3609_v9 = vpop.eup %3608 }
 0x344   :  { %3612 = vtanh.f32 %v784_v40  ;;  %v807_v60 = vrot.slane %v784_v40, 1 }
 0x346   :  { %v808_v42 = vsel %vm424_vm8, %v807_v60, %v806_v58 }
 0x347   :  { %v4631_v7 = vsel %vm796_vm3, %v808_v42, %v4541_v38  ;;  %v4639_v38 = vld [vmem:[#allocation2] ss:$16 sps:$4 sm:$0xff]  }
 0x34d   :  { %v3611_v10 = vpop.eup %3610 }
 0x34e   :  { %v3613_v11 = vpop.eup %3612  ;;  %v787_v12 = vmul.f32 %v3611_v10, %v3607_v8 }
 0x34f   :  { %v788_v13 = vmul.f32 %v3613_v11, %v3609_v9 }
 0x350   :  { %v799_v21 = vrot.slane %v787_v12, 2 }
 0x351   :  { %v800_v55 = vrot.slane %v788_v13, 1 }
 0x353   :  { %v801_v61 = vsel %vm424_vm8, %v800_v55, %v799_v21  ;;  %v961_v21 = vrot.slane %v4631_v7, 5 }
 0x354   :  { %v4635_v53 = vsel %vm796_vm3, %v801_v61, %v4545_v44  ;;  %v4653_v44 = vld [vmem:[#allocation2 + $0x20] ss:$16 sps:$4 sm:$0xff]  }
 0x355   :  { %v811_v34 = vpack.c.bf16 %v4635_v53, %v4635_v53 }
 0x357   :  { %845 = vmatmul.mubr.bf16.vlgmr.msra.gmra.mrb[12].mxu0 %v811_v34  ;;  %886 = vmatmul.mubr.bf16.vlgmr.msra.gmra.mrb[12].mxu1 %v811_v34 }
 0x358   :  { %1011 = vmatpush1.bf16.msra.mxu0 %v4639_v38  ;;  %1052 = vmatpush1.bf16.msra.mxu1 %v4642_v28 }
 0x359   :  { %1012 = vmatprep.subr.bf16.mxu0 %v4645_v62  ;;  %1053 = vmatprep.subr.bf16.mxu1 %v4648_v37 }
 0x35a   :  { %1042 = vmatprep.mubr.bf16.mxu0 %v4201_v0  ;;  %1083 = vmatprep.mubr.bf16.mxu1 %v4201_v0 }
 0x35c   :  { %1013 = vmatpush1.bf16.msra.mxu0 %v4653_v44  ;;  %1054 = vmatpush1.bf16.msra.mxu1 %v4656_v47 }
 0x35d   :  { %1014 = vmatprep.subr.bf16.mxu0 %v4659_v52  ;;  %1055 = vmatprep.subr.bf16.mxu1 %v4290_v14  ;;  %v4693_v14 = vld [vmem:[#allocation2 + $0x4] ss:$16 sps:$4 sm:$0xff]  }
 0x360   :  { %1015 = vmatpush1.bf16.msra.mxu0 %v4663_v32  ;;  %1056 = vmatpush1.bf16.msra.mxu1 %v4294_v15  ;;  %v4696_v15 = vld [vmem:[#allocation2 + $0xc] ss:$16 sps:$4 sm:$0xff]  }
 0x361   :  { %1016 = vmatprep.subr.bf16.mxu0 %v4667_v48  ;;  %1057 = vmatprep.subr.bf16.mxu1 %v4297_v16 }
 0x364   :  { %1017 = vmatpush1.bf16.msra.mxu0 %v4671_v41  ;;  %1058 = vmatpush1.bf16.msra.mxu1 %v4306_v19 }
 0x365   :  { %1018 = vmatprep.subr.bf16.mxu0 %v4675_v51  ;;  %1059 = vmatprep.subr.bf16.mxu1 %v4309_v20 }
 0x368   :  { %1019 = vmatpush1.bf16.msra.mxu0 %v4300_v17  ;;  %1060 = vmatpush1.bf16.msra.mxu1 %v4321_v24 }
 0x369   :  { %1020 = vmatprep.subr.bf16.mxu0 %v4303_v18  ;;  %1061 = vmatprep.subr.bf16.mxu1 %v4324_v25 }
 0x36c   :  { %1021 = vmatpush1.bf16.msra.mxu0 %v4314_v22  ;;  %1062 = vmatpush1.bf16.msra.mxu1 %v4341_v30 }
 0x36d   :  { %1022 = vmatprep.subr.bf16.mxu0 %v4317_v23  ;;  %1063 = vmatprep.subr.bf16.mxu1 %v4344_v31 }
 0x370   :  { %1023 = vmatpush1.bf16.msra.mxu0 %v4333_v27  ;;  %1064 = vmatpush1.bf16.msra.mxu1 %v4355_v35 }
 0x371   :  { %1024 = vmatprep.subr.bf16.mxu0 %v4338_v29  ;;  %1065 = vmatprep.subr.bf16.mxu1 %v4358_v36 }
 0x374   :  { %1025 = vmatpush1.bf16.msra.mxu0 %v4348_v33  ;;  %1066 = vmatpush1.bf16.msra.mxu1 %v4366_v39 }
 0x375   :  { %1196 = vmatprep.subr.bf16.mxu0 %v4693_v14  ;;  %1237 = vmatprep.subr.bf16.mxu1 %v4696_v15 }
 0x42a   :  { %v846_v16 = vpop.f32.mrb[12].mxu0  ;;  %v887_v17 = vpop.f32.mrb[12].mxu1 }
 0x42b   :  { %v898_v18 = vrot.slane %v846_v16, 5  ;;  %v902_v19 = vrot.slane %v846_v16, 6  ;;  %v848_v20 = vpop.f32.mrb[13].mxu0  ;;  %v889_v22 = vpop.f32.mrb[13].mxu1  ;;  %v904_v26 = vrot.slane %v887_v17, 6  ;;  %v962_v16 = vrot.slane %v4631_v7, 6 }
 0x42c   :  { %v899_v23 = vrot.slane %v848_v20, 5  ;;  %v903_v24 = vrot.slane %v848_v20, 6  ;;  %v850_v25 = vpop.f32.mrb[14].mxu0  ;;  %v891_v27 = vpop.f32.mrb[14].mxu1  ;;  %v901_v59 = vrot.slane %v889_v22, 5  ;;  %v905_v40 = vrot.slane %v889_v22, 6 }
 0x42d   :  { %v914_v29 = vadd.f32 %v898_v18, %v617_v4  ;;  %v918_v30 = vadd.f32 %v902_v19, %v621_v5  ;;  %v851_v31 = vpop.f32.mrb[15].mxu0  ;;  %v892_v33 = vpop.f32.mrb[15].mxu1  ;;  %v900_v4 = vrot.slane %v887_v17, 5 }
 0x42e   :  { %v915_v35 = vadd.f32 %v899_v23, %v618_v1  ;;  %v919_v36 = vadd.f32 %v903_v24, %v622_v6  ;;  %v917_v5 = vadd.f32 %v901_v59, %v620_v43  ;;  %v921_v2 = vadd.f32 %v905_v40, %v624_v46 }
 0x42f   :  { %v3371_v39 = vmul.f32 -1.442695, %v914_v29  ;;  %v3372_v49 = vmul.f32 -1.442695, %v918_v30  ;;  %v916_v3 = vadd.f32 %v900_v4, %v619_v45  ;;  %v920_v1 = vadd.f32 %v904_v26, %v623_v63  ;;  %v981_v29 = vpop.permute.xlu1 %980 }
 0x430   :  { %v3373_v56 = vmul.f32 -1.442695, %v915_v35  ;;  %v3374_v57 = vmul.f32 -1.442695, %v919_v36  ;;  %v3375_v6 = vmul.f32 -1.442695, %v917_v5 }
 0x431   :  { %3614 = vpow2.f32 %v3371_v39  ;;  %v3376_v58 = vmul.f32 -1.442695, %v921_v2  ;;  %vm982_vm4 = vcmp.eq.s32.totalorder %v981_v29, 1  ;;  %v4744_v5 = vld [vmem:[#allocation2 + $0x6c] ss:$16 sps:$4 sm:$0xff]  }
 0x432   :  { %3616 = vpow2.f32 %v3372_v49  ;;  %v4748_v2 = vld [vmem:[#allocation2 + $0x68] ss:$16 sps:$4 sm:$0xff]  }
 0x433   :  { %3618 = vpow2.f32 %v3373_v56 }
 0x434   :  { %3620 = vpow2.f32 %v3374_v57 }
 0x435   :  { %3622 = vtanh.f32 %v916_v3  ;;  %v4752_v3 = vld [vmem:[#allocation2 + $0x8c] ss:$16 sps:$4 sm:$0xff]  }
 0x436   :  { %3624 = vtanh.f32 %v920_v1  ;;  %v4755_v1 = vld [vmem:[#allocation2 + $0x80] ss:$16 sps:$4 sm:$0xff]  }
 0x437   :  { %3626 = vpow2.f32 %v3375_v6  ;;  %v4758_v6 = vld [vmem:[#allocation2 + $0x88] ss:$16 sps:$4 sm:$0xff]  }
 0x438   :  { %3628 = vpow2.f32 %v3376_v58  ;;  %v4761_v58 = vld [vmem:[#allocation2 + $0xa4] ss:$16 sps:$4 sm:$0xff]  }
 0x43b   :  { %v3615_v60 = vpop.eup %3614 }
 0x43c   :  { %v3617_v42 = vpop.eup %3616  ;;  %v928_v8 = vadd.f32 1.0, %v3615_v60  ;;  %v4764_v60 = vld [vmem:[#allocation2 + $0xac] ss:$16 sps:$4 sm:$0xff]  }
 0x43d   :  { %v3619_v9 = vpop.eup %3618  ;;  %v929_v10 = vadd.f32 1.0, %v3617_v42  ;;  %v4767_v42 = vld [vmem:[#allocation2 + $0xa0] ss:$16 sps:$4 sm:$0xff]  }
 0x43e   :  { %v3621_v43 = vpop.eup %3620  ;;  %3630 = vrcp.f32 %v928_v8  ;;  %v940_v46 = vadd.f32 1.0, %v3619_v9  ;;  %v4770_v8 = vld [vmem:[#allocation2 + $0xa8] ss:$16 sps:$4 sm:$0xff]   ;;  %v4773_v9 = vld [vmem:[#allocation2 + $0xc4] ss:$16 sps:$4 sm:$0xff]  }
 0x43f   :  { %3632 = vrcp.f32 %v929_v10  ;;  %v941_v54 = vadd.f32 1.0, %v3621_v43  ;;  %v3623_v50 = vpop.eup %3622  ;;  %v4776_v10 = vld [vmem:[#allocation2 + $0xcc] ss:$16 sps:$4 sm:$0xff]   ;;  %v4779_v43 = vld [vmem:[#allocation2 + $0xc0] ss:$16 sps:$4 sm:$0xff]  }
 0x440   :  { %3634 = vrcp.f32 %v940_v46  ;;  %v3625_v45 = vpop.eup %3624  ;;  %v4782_v46 = vld [vmem:[#allocation2 + $0xc8] ss:$16 sps:$4 sm:$0xff]  }
 0x441   :  { %3636 = vrcp.f32 %v941_v54  ;;  %v3627_v63 = vpop.eup %3626  ;;  %v4785_v54 = vld [vmem:[#allocation2 + $0xe4] ss:$16 sps:$4 sm:$0xff]  }
 0x442   :  { %v3629_v11 = vpop.eup %3628  ;;  %v954_v61 = vadd.f32 1.0, %v3627_v63  ;;  %v4794_v63 = vld [vmem:[#allocation2 + $0xe8] ss:$16 sps:$4 sm:$0xff]  }
 0x443   :  { %v955_v18 = vadd.f32 1.0, %v3629_v11  ;;  %v4802_v11 = vld [vmem:[%s5789_s0] sm:$0x44] }
 0x444   :  { %3638 = vrcp.f32 %v954_v61 }
 0x445   :  { %3640 = vrcp.f32 %v955_v18 }
 0x448   :  { %v3631_v12 = vpop.eup %3630 }
 0x449   :  { %v3633_v13 = vpop.eup %3632  ;;  %v967_v55 = vmul.f32 %v3631_v12, %v3623_v50  ;;  %v4788_v50 = vld [vmem:[#allocation2 + $0xec] ss:$16 sps:$4 sm:$0xff]   ;;  %v4807_v12 = vld [vmem:[%s5789_s0 + $0x20] sm:$0x44] }
 0x44a   :  { %v3635_v34 = vpop.eup %3634  ;;  %v968_v17 = vmul.f32 %v3633_v13, %v3625_v45  ;;  %v4791_v45 = vld [vmem:[#allocation2 + $0xe0] ss:$16 sps:$4 sm:$0xff]   ;;  %v1001_v13 = vunpack.c.l.bf16 %v4802_v11 }
 0x44b   :  { %v3637_v19 = vpop.eup %3636  ;;  %v965_v20 = vmul.f32 %v3635_v34, %v961_v21  ;;  %v1005_v21 = vunpack.c.l.bf16 %v4807_v12  ;;  %v1002_v34 = vunpack.c.h.bf16 %v4802_v11 }
 0x44c   :  { %v966_v22 = vmul.f32 %v3637_v19, %v962_v16  ;;  %v1006_v16 = vunpack.c.h.bf16 %v4807_v12 }
 0x44d   :  { %v969_v23 = vadd.f32 %v967_v55, %v965_v20 }
 0x44e   :  { %v970_v24 = vadd.f32 %v968_v17, %v966_v22  ;;  %v3639_v33 = vpop.eup %3638 }
 0x44f   :  { %3642 = vtanh.f32 %v969_v23  ;;  %v992_v25 = vrot.slane %v969_v23, 3  ;;  %v3641_v35 = vpop.eup %3640 }
 0x450   :  { %3644 = vtanh.f32 %v970_v24  ;;  %v993_v27 = vrot.slane %v970_v24, 2 }
 0x452   :  { %v994_v30 = vsel %vm424_vm8, %v993_v27, %v992_v25 }
 0x453   :  { %v4719_v31 = vsel %vm982_vm4, %v994_v30, %v4631_v7  ;;  %v4736_v7 = vld [vmem:[#allocation2 + $0x4c] ss:$16 sps:$4 sm:$0xff]  }
 0x454   :  { %v4820_v30 = vld [vmem:[%s5789_s0 + $0x8] sm:$0x44] }
 0x455   :  { %v5813_v12 = vunpack.c.l.bf16 %v4820_v30 }
 0x459   :  { %v3643_v36 = vpop.eup %3642 }
 0x45a   :  { %v3645_v39 = vpop.eup %3644  ;;  %v973_v49 = vmul.f32 %v3643_v36, %v3639_v33  ;;  %v4825_v36 = vld [vmem:[%s5789_s0 + $0x28] sm:$0x44] }
 0x45b   :  { %v974_v56 = vmul.f32 %v3645_v39, %v3641_v35  ;;  %v5812_v11 = vunpack.c.h.bf16 %v4825_v36 }
 0x45c   :  { %v985_v57 = vrot.slane %v973_v49, 3 }
 0x45d   :  { %v986_v59 = vrot.slane %v974_v56, 2 }
 0x45f   :  { %v987_v40 = vsel %vm424_vm8, %v986_v59, %v985_v57 }
 0x460   :  { %v4723_v4 = vsel %vm982_vm4, %v987_v40, %v4635_v53  ;;  %v4740_v53 = vld [vmem:[#allocation2 + $0x48] ss:$16 sps:$4 sm:$0xff]  }
 0x461   :  { %v1009_v26 = vpack.c.bf16 %v4723_v4, %v4723_v4 }
 0x463   :  { %1043 = vmatmul.mubr.bf16.vlgmr.msra.gmra.mrb[16].mxu0 %v1009_v26  ;;  %1084 = vmatmul.mubr.bf16.vlgmr.msra.gmra.mrb[16].mxu1 %v1009_v26  ;;  %v1004_v26 = vunpack.c.h.bf16 %v4820_v30 }
 0x464   :  { %1197 = vmatpush1.bf16.msra.mxu0 %v4639_v38  ;;  %1238 = vmatpush1.bf16.msra.mxu1 %v4642_v28 }
 0x465   :  { %1198 = vmatprep.subr.bf16.mxu0 %v4645_v62  ;;  %1239 = vmatprep.subr.bf16.mxu1 %v4648_v37 }
 0x466   :  { %1228 = vmatprep.mubr.bf16.mxu0 %v4201_v0  ;;  %1269 = vmatprep.mubr.bf16.mxu1 %v4201_v0 }
 0x468   :  { %1199 = vmatpush1.bf16.msra.mxu0 %v4653_v44  ;;  %1240 = vmatpush1.bf16.msra.mxu1 %v4656_v47 }
 0x469   :  { %1200 = vmatprep.subr.bf16.mxu0 %v4659_v52  ;;  %1241 = vmatprep.subr.bf16.mxu1 %v4736_v7 }
 0x46c   :  { %1201 = vmatpush1.bf16.msra.mxu0 %v4663_v32  ;;  %1242 = vmatpush1.bf16.msra.mxu1 %v4740_v53 }
 0x46d   :  { %1202 = vmatprep.subr.bf16.mxu0 %v4667_v48  ;;  %1243 = vmatprep.subr.bf16.mxu1 %v4744_v5 }
 0x470   :  { %1203 = vmatpush1.bf16.msra.mxu0 %v4671_v41  ;;  %1244 = vmatpush1.bf16.msra.mxu1 %v4748_v2 }
 0x471   :  { %1204 = vmatprep.subr.bf16.mxu0 %v4675_v51  ;;  %1245 = vmatprep.subr.bf16.mxu1 %v4752_v3 }
 0x474   :  { %1205 = vmatpush1.bf16.msra.mxu0 %v4755_v1  ;;  %1246 = vmatpush1.bf16.msra.mxu1 %v4758_v6 }
 0x475   :  { %1206 = vmatprep.subr.bf16.mxu0 %v4761_v58  ;;  %1247 = vmatprep.subr.bf16.mxu1 %v4764_v60 }
 0x478   :  { %1207 = vmatpush1.bf16.msra.mxu0 %v4767_v42  ;;  %1248 = vmatpush1.bf16.msra.mxu1 %v4770_v8 }
 0x479   :  { %1208 = vmatprep.subr.bf16.mxu0 %v4773_v9  ;;  %1249 = vmatprep.subr.bf16.mxu1 %v4776_v10 }
 0x47c   :  { %1209 = vmatpush1.bf16.msra.mxu0 %v4779_v43  ;;  %1250 = vmatpush1.bf16.msra.mxu1 %v4782_v46 }
 0x47d   :  { %1210 = vmatprep.subr.bf16.mxu0 %v4785_v54  ;;  %1251 = vmatprep.subr.bf16.mxu1 %v4788_v50 }
 0x480   :  { %1211 = vmatpush1.bf16.msra.mxu0 %v4791_v45  ;;  %1252 = vmatpush1.bf16.msra.mxu1 %v4794_v63 }
 0x481   :  { %1394 = vmatprep.subr.bf16.mxu0 %v4693_v14  ;;  %1435 = vmatprep.subr.bf16.mxu1 %v4696_v15 }
 0x536   :  { %v1044_v55 = vpop.f32.mrb[16].mxu0  ;;  %v1085_v61 = vpop.f32.mrb[16].mxu1 }
 0x537   :  { %v1096_v17 = vrot.slane %v1044_v55, 4  ;;  %v1100_v18 = vrot.slane %v1044_v55, 5  ;;  %v1046_v19 = vpop.f32.mrb[17].mxu0  ;;  %v1087_v20 = vpop.f32.mrb[17].mxu1 }
 0x538   :  { %v1097_v22 = vrot.slane %v1046_v19, 4  ;;  %v1101_v23 = vrot.slane %v1046_v19, 5  ;;  %v1048_v24 = vpop.f32.mrb[18].mxu0  ;;  %v1089_v25 = vpop.f32.mrb[18].mxu1  ;;  %v1099_v55 = vrot.slane %v1087_v20, 4  ;;  %v5801_v19 = vunpack.c.l.bf16 %v4820_v30 }
 0x539   :  { %v1112_v27 = vadd.f32 %v1096_v17, %v1001_v13  ;;  %v1116_v29 = vadd.f32 %v1100_v18, %v1005_v21  ;;  %v1049_v33 = vpop.f32.mrb[19].mxu0  ;;  %v1090_v35 = vpop.f32.mrb[19].mxu1  ;;  %v5802_v17 = vunpack.c.h.bf16 %v4825_v36  ;;  %v1103_v18 = vrot.slane %v1087_v20, 5 }
 0x53a   :  { %v1113_v39 = vadd.f32 %v1097_v22, %v1002_v34  ;;  %v1117_v49 = vadd.f32 %v1101_v23, %v1006_v16  ;;  %v1098_v24 = vrot.slane %v1085_v61, 4  ;;  %v5800_v22 = vunpack.c.l.bf16 %v4825_v36 }
 0x53b   :  { %v3378_v56 = vmul.f32 -1.442695, %v1112_v27  ;;  %v3379_v57 = vmul.f32 -1.442695, %v1116_v29  ;;  %v1102_v25 = vrot.slane %v1085_v61, 5  ;;  %v1115_v23 = vadd.f32 %v1099_v55, %v1004_v26 }
 0x53c   :  { %v3380_v59 = vmul.f32 -1.442695, %v1113_v39  ;;  %v3381_v40 = vmul.f32 -1.442695, %v1117_v49  ;;  %v1119_v27 = vadd.f32 %v1103_v18, %v5802_v17  ;;  %v1114_v29 = vadd.f32 %v1098_v24, %v5801_v19 }
 0x53d   :  { %3646 = vpow2.f32 %v3378_v56  ;;  %v1118_v20 = vadd.f32 %v1102_v25, %v5800_v22  ;;  %v3382_v33 = vmul.f32 -1.442695, %v1115_v23 }
 0x53e   :  { %3648 = vpow2.f32 %v3379_v57  ;;  %v3383_v35 = vmul.f32 -1.442695, %v1119_v27 }
 0x53f   :  { %3650 = vpow2.f32 %v3380_v59 }
 0x540   :  { %3652 = vpow2.f32 %v3381_v40 }
 0x541   :  { %3654 = vtanh.f32 %v1114_v29 }
 0x542   :  { %3656 = vtanh.f32 %v1118_v20 }
 0x543   :  { %3658 = vpow2.f32 %v3382_v33 }
 0x544   :  { %3660 = vpow2.f32 %v3383_v35  ;;  %v1160_v35 = vrot.slane %v4719_v31, 5 }
 0x547   :  { %v3647_v39 = vpop.eup %3646 }
 0x548   :  { %v3649_v61 = vpop.eup %3648  ;;  %v1126_v49 = vadd.f32 1.0, %v3647_v39  ;;  %v1159_v39 = vrot.slane %v4719_v31, 4 }
 0x549   :  { %v3651_v56 = vpop.eup %3650  ;;  %v1127_v57 = vadd.f32 1.0, %v3649_v61 }
 0x54a   :  { %v3653_v59 = vpop.eup %3652  ;;  %3662 = vrcp.f32 %v1126_v49  ;;  %v1138_v40 = vadd.f32 1.0, %v3651_v56 }
 0x54b   :  { %3664 = vrcp.f32 %v1127_v57  ;;  %v1139_v55 = vadd.f32 1.0, %v3653_v59  ;;  %v3655_v18 = vpop.eup %3654 }
 0x54c   :  { %3666 = vrcp.f32 %v1138_v40  ;;  %v3657_v24 = vpop.eup %3656 }
 0x54d   :  { %3668 = vrcp.f32 %v1139_v55  ;;  %v3659_v25 = vpop.eup %3658 }
 0x54e   :  { %v3661_v23 = vpop.eup %3660  ;;  %v1152_v33 = vadd.f32 1.0, %v3659_v25 }
 0x54f   :  { %v1153_v49 = vadd.f32 1.0, %v3661_v23 }
 0x550   :  { %3670 = vrcp.f32 %v1152_v33 }
 0x551   :  { %3672 = vrcp.f32 %v1153_v49 }
 0x554   :  { %v3663_v27 = vpop.eup %3662 }
 0x555   :  { %v3665_v29 = vpop.eup %3664  ;;  %v1165_v20 = vmul.f32 %v3663_v27, %v3655_v18  ;;  %v1179_v18 = vpop.permute.xlu0 %1178 }
 0x556   :  { %v3667_v22 = vpop.eup %3666  ;;  %v1166_v61 = vmul.f32 %v3665_v29, %v3657_v24  ;;  %vm1180_vm5 = vcmp.eq.s32.totalorder %v1179_v18, 1 }
 0x557   :  { %v3669_v56 = vpop.eup %3668  ;;  %v1163_v57 = vmul.f32 %v3667_v22, %v1159_v39 }
 0x558   :  { %v1164_v59 = vmul.f32 %v3669_v56, %v1160_v35 }
 0x559   :  { %v1167_v40 = vadd.f32 %v1165_v20, %v1163_v57 }
 0x55a   :  { %v1168_v55 = vadd.f32 %v1166_v61, %v1164_v59  ;;  %v3671_v27 = vpop.eup %3670 }
 0x55b   :  { %3674 = vtanh.f32 %v1167_v40  ;;  %v1190_v19 = vrot.slane %v1167_v40, 4  ;;  %v3673_v23 = vpop.eup %3672 }
 0x55c   :  { %3676 = vtanh.f32 %v1168_v55  ;;  %v1191_v17 = vrot.slane %v1168_v55, 3 }
 0x55e   :  { %v1192_v25 = vsel %vm424_vm8, %v1191_v17, %v1190_v19 }
 0x55f   :  { %v4847_v24 = vsel %vm1180_vm5, %v1192_v25, %v4719_v31 }
 0x565   :  { %v3675_v29 = vpop.eup %3674 }
 0x566   :  { %v3677_v22 = vpop.eup %3676  ;;  %v1171_v39 = vmul.f32 %v3675_v29, %v3671_v27 }
 0x567   :  { %v1172_v20 = vmul.f32 %v3677_v22, %v3673_v23 }
 0x568   :  { %v1183_v33 = vrot.slane %v1171_v39, 4 }
 0x569   :  { %v1184_v61 = vrot.slane %v1172_v20, 3 }
 0x56b   :  { %v1185_v35 = vsel %vm424_vm8, %v1184_v61, %v1183_v33 }
 0x56c   :  { %v4851_v49 = vsel %vm1180_vm5, %v1185_v35, %v4723_v4 }
 0x56d   :  { %v1195_v56 = vpack.c.bf16 %v4851_v49, %v4851_v49 }
 0x56f   :  { %1229 = vmatmul.mubr.bf16.vlgmr.msra.gmra.mrb[20].mxu0 %v1195_v56  ;;  %1270 = vmatmul.mubr.bf16.vlgmr.msra.gmra.mrb[20].mxu1 %v1195_v56 }
 0x570   :  { %1395 = vmatpush1.bf16.msra.mxu0 %v4639_v38  ;;  %1436 = vmatpush1.bf16.msra.mxu1 %v4642_v28 }
 0x571   :  { %1396 = vmatprep.subr.bf16.mxu0 %v4645_v62  ;;  %1437 = vmatprep.subr.bf16.mxu1 %v4648_v37 }
 0x572   :  { %1426 = vmatprep.mubr.bf16.mxu0 %v4201_v0  ;;  %1467 = vmatprep.mubr.bf16.mxu1 %v4201_v0 }
 0x574   :  { %1397 = vmatpush1.bf16.msra.mxu0 %v4653_v44  ;;  %1438 = vmatpush1.bf16.msra.mxu1 %v4656_v47 }
 0x575   :  { %1398 = vmatprep.subr.bf16.mxu0 %v4659_v52  ;;  %1439 = vmatprep.subr.bf16.mxu1 %v4736_v7 }
 0x578   :  { %1399 = vmatpush1.bf16.msra.mxu0 %v4663_v32  ;;  %1440 = vmatpush1.bf16.msra.mxu1 %v4740_v53 }
 0x579   :  { %1400 = vmatprep.subr.bf16.mxu0 %v4667_v48  ;;  %1441 = vmatprep.subr.bf16.mxu1 %v4744_v5 }
 0x57c   :  { %1401 = vmatpush1.bf16.msra.mxu0 %v4671_v41  ;;  %1442 = vmatpush1.bf16.msra.mxu1 %v4748_v2 }
 0x57d   :  { %1402 = vmatprep.subr.bf16.mxu0 %v4675_v51  ;;  %1443 = vmatprep.subr.bf16.mxu1 %v4752_v3 }
 0x580   :  { %1403 = vmatpush1.bf16.msra.mxu0 %v4755_v1  ;;  %1444 = vmatpush1.bf16.msra.mxu1 %v4758_v6 }
 0x581   :  { %1404 = vmatprep.subr.bf16.mxu0 %v4761_v58  ;;  %1445 = vmatprep.subr.bf16.mxu1 %v4764_v60 }
 0x584   :  { %1405 = vmatpush1.bf16.msra.mxu0 %v4767_v42  ;;  %1446 = vmatpush1.bf16.msra.mxu1 %v4770_v8 }
 0x585   :  { %1406 = vmatprep.subr.bf16.mxu0 %v4773_v9  ;;  %1447 = vmatprep.subr.bf16.mxu1 %v4776_v10 }
 0x588   :  { %1407 = vmatpush1.bf16.msra.mxu0 %v4779_v43  ;;  %1448 = vmatpush1.bf16.msra.mxu1 %v4782_v46 }
 0x589   :  { %1408 = vmatprep.subr.bf16.mxu0 %v4785_v54  ;;  %1449 = vmatprep.subr.bf16.mxu1 %v4788_v50 }
 0x58c   :  { %1409 = vmatpush1.bf16.msra.mxu0 %v4791_v45  ;;  %1450 = vmatpush1.bf16.msra.mxu1 %v4794_v63 }
 0x58d   :  { %1580 = vmatprep.subr.bf16.mxu0 %v4693_v14  ;;  %1621 = vmatprep.subr.bf16.mxu1 %v4696_v15 }
 0x642   :  { %v1230_v31 = vpop.f32.mrb[20].mxu0  ;;  %v1271_v4 = vpop.f32.mrb[20].mxu1 }
 0x643   :  { %v1282_v17 = vrot.slane %v1230_v31, 3  ;;  %v1286_v19 = vrot.slane %v1230_v31, 4  ;;  %v1232_v57 = vpop.f32.mrb[21].mxu0  ;;  %v1273_v59 = vpop.f32.mrb[21].mxu1 }
 0x644   :  { %v1283_v40 = vrot.slane %v1232_v57, 3  ;;  %v1287_v55 = vrot.slane %v1232_v57, 4  ;;  %v1234_v18 = vpop.f32.mrb[22].mxu0  ;;  %v1275_v25 = vpop.f32.mrb[22].mxu1  ;;  %v1285_v31 = vrot.slane %v1273_v59, 3  ;;  %v1289_v57 = vrot.slane %v1273_v59, 4 }
 0x645   :  { %v1298_v27 = vadd.f32 %v1282_v17, %v1001_v13  ;;  %v1302_v23 = vadd.f32 %v1286_v19, %v1005_v21  ;;  %v1235_v29 = vpop.f32.mrb[23].mxu0  ;;  %v1276_v22 = vpop.f32.mrb[23].mxu1  ;;  %v1284_v13 = vrot.slane %v1271_v4, 3  ;;  %v1288_v17 = vrot.slane %v1271_v4, 4 }
 0x646   :  { %v1299_v39 = vadd.f32 %v1283_v40, %v1002_v34  ;;  %v1303_v20 = vadd.f32 %v1287_v55, %v1006_v16  ;;  %v1301_v21 = vadd.f32 %v1285_v31, %v1004_v26  ;;  %v1305_v34 = vadd.f32 %v1289_v57, %v5812_v11 }
 0x647   :  { %v3385_v33 = vmul.f32 -1.442695, %v1298_v27  ;;  %v3386_v61 = vmul.f32 -1.442695, %v1302_v23  ;;  %v1300_v16 = vadd.f32 %v1284_v13, %v5813_v12  ;;  %v5814_v19 = vunpack.c.l.bf16 %v4825_v36 }
 0x648   :  { %v3387_v35 = vmul.f32 -1.442695, %v1299_v39  ;;  %v3388_v56 = vmul.f32 -1.442695, %v1303_v20  ;;  %v3389_v55 = vmul.f32 -1.442695, %v1301_v21 }
 0x649   :  { %3678 = vpow2.f32 %v3385_v33  ;;  %v1304_v40 = vadd.f32 %v1288_v17, %v5814_v19  ;;  %v3390_v18 = vmul.f32 -1.442695, %v1305_v34  ;;  %v1346_v17 = vrot.slane %v4847_v24, 4 }
 0x64a   :  { %3680 = vpow2.f32 %v3386_v61 }
 0x64b   :  { %3682 = vpow2.f32 %v3387_v35 }
 0x64c   :  { %3684 = vpow2.f32 %v3388_v56  ;;  %v1345_v56 = vrot.slane %v4847_v24, 3 }
 0x64d   :  { %3686 = vtanh.f32 %v1300_v16 }
 0x64e   :  { %3688 = vtanh.f32 %v1304_v40 }
 0x64f   :  { %3690 = vpow2.f32 %v3389_v55 }
 0x650   :  { %3692 = vpow2.f32 %v3390_v18  ;;  %v1365_v18 = vpop.permute.xlu1 %1364 }
 0x651   :  { %vm1366_vm6 = vcmp.eq.s32.totalorder %v1365_v18, 1 }
 0x653   :  { %v3679_v59 = vpop.eup %3678 }
 0x654   :  { %v3681_v4 = vpop.eup %3680  ;;  %v1312_v25 = vadd.f32 1.0, %v3679_v59 }
 0x655   :  { %v3683_v27 = vpop.eup %3682  ;;  %v1313_v23 = vadd.f32 1.0, %v3681_v4 }
 0x656   :  { %v3685_v26 = vpop.eup %3684  ;;  %3694 = vrcp.f32 %v1312_v25  ;;  %v1324_v29 = vadd.f32 1.0, %v3683_v27 }
 0x657   :  { %3696 = vrcp.f32 %v1313_v23  ;;  %v1325_v30 = vadd.f32 1.0, %v3685_v26  ;;  %v3687_v36 = vpop.eup %3686 }
 0x658   :  { %3698 = vrcp.f32 %v1324_v29  ;;  %v3689_v22 = vpop.eup %3688 }
 0x659   :  { %3700 = vrcp.f32 %v1325_v30  ;;  %v3691_v39 = vpop.eup %3690 }
 0x65a   :  { %v3693_v20 = vpop.eup %3692  ;;  %v1338_v31 = vadd.f32 1.0, %v3691_v39 }
 0x65b   :  { %v1339_v21 = vadd.f32 1.0, %v3693_v20 }
 0x65c   :  { %3702 = vrcp.f32 %v1338_v31  ;;  %v4972_v31 = vld [vmem:[%s5789_s0 + $0x8] sm:$0x88] }
 0x65d   :  { %3704 = vrcp.f32 %v1339_v21 }
 0x660   :  { %v3695_v33 = vpop.eup %3694 }
 0x661   :  { %v3697_v61 = vpop.eup %3696  ;;  %v1351_v35 = vmul.f32 %v3695_v33, %v3687_v36 }
 0x662   :  { %v3699_v57 = vpop.eup %3698  ;;  %v1352_v13 = vmul.f32 %v3697_v61, %v3689_v22 }
 0x663   :  { %v3701_v11 = vpop.eup %3700  ;;  %v1349_v34 = vmul.f32 %v3699_v57, %v1345_v56 }
 0x664   :  { %v1350_v12 = vmul.f32 %v3701_v11, %v1346_v17  ;;  %v4977_v17 = vld [vmem:[%s5789_s0 + $0x28] sm:$0x88] }
 0x665   :  { %v1353_v16 = vadd.f32 %v1351_v35, %v1349_v34  ;;  %v1392_v18 = vunpack.c.h.bf16 %v4977_v17 }
 0x666   :  { %v1354_v19 = vadd.f32 %v1352_v13, %v1350_v12  ;;  %v3703_v25 = vpop.eup %3702 }
 0x667   :  { %3706 = vtanh.f32 %v1353_v16  ;;  %v1376_v40 = vrot.slane %v1353_v16, 5  ;;  %v3705_v27 = vpop.eup %3704 }
 0x668   :  { %3708 = vtanh.f32 %v1354_v19  ;;  %v1377_v55 = vrot.slane %v1354_v19, 4 }
 0x66a   :  { %v1378_v59 = vsel %vm424_vm8, %v1377_v55, %v1376_v40  ;;  %v1388_v40 = vunpack.c.h.bf16 %v4972_v31 }
 0x66b   :  { %v4909_v4 = vsel %vm1366_vm6, %v1378_v59, %v4847_v24 }
 0x671   :  { %v3707_v23 = vpop.eup %3706 }
 0x672   :  { %v3709_v26 = vpop.eup %3708  ;;  %v1357_v29 = vmul.f32 %v3707_v23, %v3703_v25  ;;  %v1387_v25 = vunpack.c.l.bf16 %v4972_v31  ;;  %v1391_v23 = vunpack.c.l.bf16 %v4977_v17 }
 0x673   :  { %v1358_v30 = vmul.f32 %v3709_v26, %v3705_v27 }
 0x674   :  { %v1369_v36 = vrot.slane %v1357_v29, 5 }
 0x675   :  { %v1370_v22 = vrot.slane %v1358_v30, 4 }
 0x677   :  { %v1371_v39 = vsel %vm424_vm8, %v1370_v22, %v1369_v36 }
 0x678   :  { %v4913_v20 = vsel %vm1366_vm6, %v1371_v39, %v4851_v49 }
 0x679   :  { %v1393_v33 = vpack.c.bf16 %v4913_v20, %v4913_v20 }
 0x67b   :  { %1427 = vmatmul.mubr.bf16.vlgmr.msra.gmra.mrb[24].mxu0 %v1393_v33  ;;  %1468 = vmatmul.mubr.bf16.vlgmr.msra.gmra.mrb[24].mxu1 %v1393_v33 }
 0x67c   :  { %1581 = vmatpush1.bf16.msra.mxu0 %v4639_v38  ;;  %1622 = vmatpush1.bf16.msra.mxu1 %v4642_v28  ;;  %v4954_v38 = vld [vmem:[%s5789_s0] sm:$0x88] }
 0x67d   :  { %1582 = vmatprep.subr.bf16.mxu0 %v4645_v62  ;;  %1623 = vmatprep.subr.bf16.mxu1 %v4648_v37  ;;  %v4959_v28 = vld [vmem:[%s5789_s0 + $0x20] sm:$0x88]  ;;  %v1385_v62 = vunpack.c.l.bf16 %v4954_v38 }
 0x67e   :  { %1612 = vmatprep.mubr.bf16.mxu0 %v4201_v0  ;;  %1653 = vmatprep.mubr.bf16.mxu1 %v4201_v0  ;;  %v1389_v37 = vunpack.c.l.bf16 %v4959_v28 }
 0x680   :  { %1583 = vmatpush1.bf16.msra.mxu0 %v4653_v44  ;;  %1624 = vmatpush1.bf16.msra.mxu1 %v4656_v47 }
 0x681   :  { %1584 = vmatprep.subr.bf16.mxu0 %v4659_v52  ;;  %1625 = vmatprep.subr.bf16.mxu1 %v4736_v7  ;;  %v1386_v52 = vunpack.c.h.bf16 %v4954_v38 }
 0x684   :  { %1585 = vmatpush1.bf16.msra.mxu0 %v4663_v32  ;;  %1626 = vmatpush1.bf16.msra.mxu1 %v4740_v53  ;;  %v1390_v32 = vunpack.c.h.bf16 %v4959_v28 }
 0x685   :  { %1586 = vmatprep.subr.bf16.mxu0 %v4667_v48  ;;  %1627 = vmatprep.subr.bf16.mxu1 %v4744_v5 }
 0x688   :  { %1587 = vmatpush1.bf16.msra.mxu0 %v4671_v41  ;;  %1628 = vmatpush1.bf16.msra.mxu1 %v4748_v2 }
 0x689   :  { %1588 = vmatprep.subr.bf16.mxu0 %v4675_v51  ;;  %1629 = vmatprep.subr.bf16.mxu1 %v4752_v3 }
 0x68c   :  { %1589 = vmatpush1.bf16.msra.mxu0 %v4755_v1  ;;  %1630 = vmatpush1.bf16.msra.mxu1 %v4758_v6 }
 0x68d   :  { %1590 = vmatprep.subr.bf16.mxu0 %v4761_v58  ;;  %1631 = vmatprep.subr.bf16.mxu1 %v4764_v60 }
 0x690   :  { %1591 = vmatpush1.bf16.msra.mxu0 %v4767_v42  ;;  %1632 = vmatpush1.bf16.msra.mxu1 %v4770_v8 }
 0x691   :  { %1592 = vmatprep.subr.bf16.mxu0 %v4773_v9  ;;  %1633 = vmatprep.subr.bf16.mxu1 %v4776_v10 }
 0x694   :  { %1593 = vmatpush1.bf16.msra.mxu0 %v4779_v43  ;;  %1634 = vmatpush1.bf16.msra.mxu1 %v4782_v46 }
 0x695   :  { %1594 = vmatprep.subr.bf16.mxu0 %v4785_v54  ;;  %1635 = vmatprep.subr.bf16.mxu1 %v4788_v50 }
 0x698   :  { %1595 = vmatpush1.bf16.msra.mxu0 %v4791_v45  ;;  %1636 = vmatpush1.bf16.msra.mxu1 %v4794_v63 }
 0x699   :  { %1778 = vmatprep.subr.bf16.mxu0 %v4693_v14  ;;  %1819 = vmatprep.subr.bf16.mxu1 %v4696_v15 }
 0x74e   :  { %v1428_v44 = vpop.f32.mrb[24].mxu0  ;;  %v1469_v47 = vpop.f32.mrb[24].mxu1 }
 0x74f   :  { %v1480_v48 = vrot.slane %v1428_v44, 2  ;;  %v1484_v41 = vrot.slane %v1428_v44, 3  ;;  %v1430_v51 = vpop.f32.mrb[25].mxu0  ;;  %v1471_v14 = vpop.f32.mrb[25].mxu1  ;;  %v1482_v27 = vrot.slane %v1469_v47, 2  ;;  %v1486_v26 = vrot.slane %v1469_v47, 3 }
 0x750   :  { %v1481_v15 = vrot.slane %v1430_v51, 2  ;;  %v1485_v24 = vrot.slane %v1430_v51, 3  ;;  %v1432_v49 = vpop.f32.mrb[26].mxu0  ;;  %v1473_v61 = vpop.f32.mrb[26].mxu1  ;;  %v1483_v55 = vrot.slane %v1471_v14, 2  ;;  %v1487_v59 = vrot.slane %v1471_v14, 3 }
 0x751   :  { %v1496_v35 = vadd.f32 %v1480_v48, %v1385_v62  ;;  %v1500_v56 = vadd.f32 %v1484_v41, %v1389_v37  ;;  %v1433_v57 = vpop.f32.mrb[27].mxu0  ;;  %v1474_v13 = vpop.f32.mrb[27].mxu1  ;;  %v1498_v36 = vadd.f32 %v1482_v27, %v1387_v25  ;;  %v1502_v22 = vadd.f32 %v1486_v26, %v1391_v23 }
 0x752   :  { %v1497_v21 = vadd.f32 %v1481_v15, %v1386_v52  ;;  %v1501_v11 = vadd.f32 %v1485_v24, %v1390_v32  ;;  %v1499_v29 = vadd.f32 %v1483_v55, %v1388_v40  ;;  %v1503_v30 = vadd.f32 %v1487_v59, %v1392_v18 }
 0x753   :  { %v3392_v34 = vmul.f32 -1.442695, %v1496_v35  ;;  %v3393_v12 = vmul.f32 -1.442695, %v1500_v56 }
 0x754   :  { %v3394_v16 = vmul.f32 -1.442695, %v1497_v21  ;;  %v3395_v19 = vmul.f32 -1.442695, %v1501_v11  ;;  %v3396_v39 = vmul.f32 -1.442695, %v1499_v29 }
 0x755   :  { %3710 = vpow2.f32 %v3392_v34  ;;  %v3397_v33 = vmul.f32 -1.442695, %v1503_v30  ;;  %v1543_v11 = vrot.slane %v4909_v4, 2 }
 0x756   :  { %3712 = vpow2.f32 %v3393_v12 }
 0x757   :  { %3714 = vpow2.f32 %v3394_v16 }
 0x758   :  { %3716 = vpow2.f32 %v3395_v19  ;;  %v1544_v19 = vrot.slane %v4909_v4, 3 }
 0x759   :  { %3718 = vtanh.f32 %v1498_v36 }
 0x75a   :  { %3720 = vtanh.f32 %v1502_v22 }
 0x75b   :  { %3722 = vpow2.f32 %v3396_v39  ;;  %v1563_v39 = vpop.permute.xlu0 %1562 }
 0x75c   :  { %3724 = vpow2.f32 %v3397_v33  ;;  %vm1564_vm7 = vcmp.eq.s32.totalorder %v1563_v39, 1 }
 0x75f   :  { %v3711_v44 = vpop.eup %3710 }
 0x760   :  { %v3713_v47 = vpop.eup %3712  ;;  %v1510_v48 = vadd.f32 1.0, %v3711_v44 }
 0x761   :  { %v3715_v41 = vpop.eup %3714  ;;  %v1511_v51 = vadd.f32 1.0, %v3713_v47 }
 0x762   :  { %v3717_v14 = vpop.eup %3716  ;;  %3726 = vrcp.f32 %v1510_v48  ;;  %v1522_v15 = vadd.f32 1.0, %v3715_v41 }
 0x763   :  { %3728 = vrcp.f32 %v1511_v51  ;;  %v1523_v24 = vadd.f32 1.0, %v3717_v14  ;;  %v3719_v49 = vpop.eup %3718 }
 0x764   :  { %3730 = vrcp.f32 %v1522_v15  ;;  %v3721_v61 = vpop.eup %3720 }
 0x765   :  { %3732 = vrcp.f32 %v1523_v24  ;;  %v3723_v35 = vpop.eup %3722 }
 0x766   :  { %v3725_v56 = vpop.eup %3724  ;;  %v1536_v34 = vadd.f32 1.0, %v3723_v35 }
 0x767   :  { %v1537_v55 = vadd.f32 1.0, %v3725_v56 }
 0x768   :  { %3734 = vrcp.f32 %v1536_v34  ;;  %v5027_v34 = vld [vmem:[#allocation2 + $0x44] ss:$16 sps:$4 sm:$0xff]  }
 0x769   :  { %3736 = vrcp.f32 %v1537_v55  ;;  %v5043_v55 = vld [vmem:[#allocation2 + $0x84] ss:$16 sps:$4 sm:$0xff]  }
 0x76c   :  { %v3727_v57 = vpop.eup %3726 }
 0x76d   :  { %v3729_v13 = vpop.eup %3728  ;;  %v1549_v21 = vmul.f32 %v3727_v57, %v3719_v49  ;;  %v5010_v57 = vld [vmem:[#allocation2 + $0x8] ss:$16 sps:$4 sm:$0xff]  }
 0x76e   :  { %v3731_v12 = vpop.eup %3730  ;;  %v1550_v16 = vmul.f32 %v3729_v13, %v3721_v61  ;;  %v5013_v13 = vld [vmem:[#allocation2 + $0x24] ss:$16 sps:$4 sm:$0xff]  }
 0x76f   :  { %v3733_v59 = vpop.eup %3732  ;;  %v1547_v27 = vmul.f32 %v3731_v12, %v1543_v11  ;;  %v5024_v11 = vld [vmem:[#allocation2 + $0x28] ss:$16 sps:$4 sm:$0xff]   ;;  %v5031_v12 = vld [vmem:[#allocation2 + $0x40] ss:$16 sps:$4 sm:$0xff]  }
 0x770   :  { %v1548_v26 = vmul.f32 %v3733_v59, %v1544_v19  ;;  %v5039_v19 = vld [vmem:[#allocation2 + $0x60] ss:$16 sps:$4 sm:$0xff]  }
 0x771   :  { %v1551_v29 = vadd.f32 %v1549_v21, %v1547_v27  ;;  %v5016_v21 = vld [vmem:[#allocation2 + $0x2c] ss:$16 sps:$4 sm:$0xff]  }
 0x772   :  { %v1552_v30 = vadd.f32 %v1550_v16, %v1548_v26  ;;  %v3735_v47 = vpop.eup %3734  ;;  %v5035_v16 = vld [vmem:[#allocation2 + $0x64] ss:$16 sps:$4 sm:$0xff]  }
 0x773   :  { %3738 = vtanh.f32 %v1551_v29  ;;  %v1574_v36 = vrot.slane %v1551_v29, 6  ;;  %v3737_v48 = vpop.eup %3736 }
 0x774   :  { %3740 = vtanh.f32 %v1552_v30  ;;  %v1575_v22 = vrot.slane %v1552_v30, 5 }
 0x776   :  { %v1576_v33 = vsel %vm424_vm8, %v1575_v22, %v1574_v36 }
 0x777   :  { %v4999_v44 = vsel %vm1564_vm7, %v1576_v33, %v4909_v4  ;;  %v5007_v4 = vld [vmem:[#allocation2] ss:$16 sps:$4 sm:$0xff]  }
 0x77d   :  { %v3739_v41 = vpop.eup %3738 }
 0x77e   :  { %v3741_v51 = vpop.eup %3740  ;;  %v1555_v14 = vmul.f32 %v3739_v41, %v3735_v47 }
 0x77f   :  { %v1556_v15 = vmul.f32 %v3741_v51, %v3737_v48 }
 0x780   :  { %v1567_v24 = vrot.slane %v1555_v14, 6 }
 0x781   :  { %v1568_v49 = vrot.slane %v1556_v15, 5 }
 0x783   :  { %v1569_v61 = vsel %vm424_vm8, %v1568_v49, %v1567_v24  ;;  %v1729_v49 = vrot.slane %v4999_v44, 1 }
 0x784   :  { %v5003_v35 = vsel %vm1564_vm7, %v1569_v61, %v4913_v20  ;;  %v5021_v20 = vld [vmem:[#allocation2 + $0x20] ss:$16 sps:$4 sm:$0xff]  }
 0x785   :  { %v1579_v56 = vpack.c.bf16 %v5003_v35, %v5003_v35 }
 0x787   :  { %1613 = vmatmul.mubr.bf16.vlgmr.msra.gmra.mrb[28].mxu0 %v1579_v56  ;;  %1654 = vmatmul.mubr.bf16.vlgmr.msra.gmra.mrb[28].mxu1 %v1579_v56 }
 0x788   :  { %1779 = vmatpush1.bf16.msra.mxu0 %v5007_v4  ;;  %1820 = vmatpush1.bf16.msra.mxu1 %v5010_v57 }
 0x789   :  { %1780 = vmatprep.subr.bf16.mxu0 %v5013_v13  ;;  %1821 = vmatprep.subr.bf16.mxu1 %v5016_v21 }
 0x78a   :  { %1810 = vmatprep.mubr.bf16.mxu0 %v4201_v0  ;;  %1851 = vmatprep.mubr.bf16.mxu1 %v4201_v0 }
 0x78c   :  { %1781 = vmatpush1.bf16.msra.mxu0 %v5021_v20  ;;  %1822 = vmatpush1.bf16.msra.mxu1 %v5024_v11 }
 0x78d   :  { %1782 = vmatprep.subr.bf16.mxu0 %v5027_v34  ;;  %1823 = vmatprep.subr.bf16.mxu1 %v4736_v7  ;;  %v5061_v7 = vld [vmem:[#allocation2 + $0x4] ss:$16 sps:$4 sm:$0xff]  }
 0x790   :  { %1783 = vmatpush1.bf16.msra.mxu0 %v5031_v12  ;;  %1824 = vmatpush1.bf16.msra.mxu1 %v4740_v53  ;;  %v5064_v53 = vld [vmem:[#allocation2 + $0xc] ss:$16 sps:$4 sm:$0xff]  }
 0x791   :  { %1784 = vmatprep.subr.bf16.mxu0 %v5035_v16  ;;  %1825 = vmatprep.subr.bf16.mxu1 %v4744_v5 }
 0x794   :  { %1785 = vmatpush1.bf16.msra.mxu0 %v5039_v19  ;;  %1826 = vmatpush1.bf16.msra.mxu1 %v4748_v2 }
 0x795   :  { %1786 = vmatprep.subr.bf16.mxu0 %v5043_v55  ;;  %1827 = vmatprep.subr.bf16.mxu1 %v4752_v3 }
 0x798   :  { %1787 = vmatpush1.bf16.msra.mxu0 %v4755_v1  ;;  %1828 = vmatpush1.bf16.msra.mxu1 %v4758_v6 }
 0x799   :  { %1788 = vmatprep.subr.bf16.mxu0 %v4761_v58  ;;  %1829 = vmatprep.subr.bf16.mxu1 %v4764_v60 }
 0x79c   :  { %1789 = vmatpush1.bf16.msra.mxu0 %v4767_v42  ;;  %1830 = vmatpush1.bf16.msra.mxu1 %v4770_v8 }
 0x79d   :  { %1790 = vmatprep.subr.bf16.mxu0 %v4773_v9  ;;  %1831 = vmatprep.subr.bf16.mxu1 %v4776_v10 }
 0x7a0   :  { %1791 = vmatpush1.bf16.msra.mxu0 %v4779_v43  ;;  %1832 = vmatpush1.bf16.msra.mxu1 %v4782_v46 }
 0x7a1   :  { %1792 = vmatprep.subr.bf16.mxu0 %v4785_v54  ;;  %1833 = vmatprep.subr.bf16.mxu1 %v4788_v50 }
 0x7a4   :  { %1793 = vmatpush1.bf16.msra.mxu0 %v4791_v45  ;;  %1834 = vmatpush1.bf16.msra.mxu1 %v4794_v63 }
 0x7a5   :  { %1957 = vmatprep.subr.bf16.mxu0 %v5061_v7  ;;  %1998 = vmatprep.subr.bf16.mxu1 %v5064_v53 }
 0x85a   :  { %v1614_v5 = vpop.f32.mrb[28].mxu0  ;;  %v1655_v2 = vpop.f32.mrb[28].mxu1 }
 0x85b   :  { %v1666_v3 = vrot.slane %v1614_v5, 1  ;;  %v1670_v1 = vrot.slane %v1614_v5, 2  ;;  %v1616_v6 = vpop.f32.mrb[29].mxu0  ;;  %v1657_v58 = vpop.f32.mrb[29].mxu1  ;;  %v1672_v36 = vrot.slane %v1655_v2, 2 }
 0x85c   :  { %v1667_v60 = vrot.slane %v1616_v6, 1  ;;  %v1671_v42 = vrot.slane %v1616_v6, 2  ;;  %v1618_v8 = vpop.f32.mrb[30].mxu0  ;;  %v1659_v9 = vpop.f32.mrb[30].mxu1  ;;  %v1669_v29 = vrot.slane %v1657_v58, 1  ;;  %v1673_v30 = vrot.slane %v1657_v58, 2 }
 0x85d   :  { %v1682_v10 = vadd.f32 %v1666_v3, %v1385_v62  ;;  %v1686_v43 = vadd.f32 %v1670_v1, %v1389_v37  ;;  %v1619_v46 = vpop.f32.mrb[31].mxu0  ;;  %v1660_v54 = vpop.f32.mrb[31].mxu1  ;;  %v1668_v62 = vrot.slane %v1655_v2, 1  ;;  %v1730_v2 = vrot.slane %v4999_v44, 2 }
 0x85e   :  { %v1683_v50 = vadd.f32 %v1667_v60, %v1386_v52  ;;  %v1687_v45 = vadd.f32 %v1671_v42, %v1390_v32  ;;  %v1685_v37 = vadd.f32 %v1669_v29, %v1388_v40  ;;  %v1689_v38 = vadd.f32 %v1673_v30, %v1392_v18 }
 0x85f   :  { %v3399_v63 = vmul.f32 -1.442695, %v1682_v10  ;;  %v3400_v59 = vmul.f32 -1.442695, %v1686_v43  ;;  %v1684_v28 = vadd.f32 %v1668_v62, %v1387_v25  ;;  %v1688_v52 = vadd.f32 %v1672_v36, %v1391_v23  ;;  %v1749_v10 = vpop.permute.xlu1 %1748 }
 0x860   :  { %v3401_v27 = vmul.f32 -1.442695, %v1683_v50  ;;  %v3402_v26 = vmul.f32 -1.442695, %v1687_v45  ;;  %v3403_v32 = vmul.f32 -1.442695, %v1685_v37 }
 0x861   :  { %3742 = vpow2.f32 %v3399_v63  ;;  %v3404_v22 = vmul.f32 -1.442695, %v1689_v38  ;;  %vm1750_vm9 = vcmp.eq.s32.totalorder %v1749_v10, 1  ;;  %v5112_v37 = vld [vmem:[#allocation2 + $0x6c] ss:$16 sps:$4 sm:$0xff]  }
 0x862   :  { %3744 = vpow2.f32 %v3400_v59  ;;  %v5116_v38 = vld [vmem:[#allocation2 + $0x68] ss:$16 sps:$4 sm:$0xff]  }
 0x863   :  { %3746 = vpow2.f32 %v3401_v27 }
 0x864   :  { %3748 = vpow2.f32 %v3402_v26 }
 0x865   :  { %3750 = vtanh.f32 %v1684_v28  ;;  %v5120_v28 = vld [vmem:[#allocation2 + $0x8c] ss:$16 sps:$4 sm:$0xff]  }
 0x866   :  { %3752 = vtanh.f32 %v1688_v52  ;;  %v5123_v52 = vld [vmem:[#allocation2 + $0x80] ss:$16 sps:$4 sm:$0xff]  }
 0x867   :  { %3754 = vpow2.f32 %v3403_v32  ;;  %v5126_v32 = vld [vmem:[#allocation2 + $0x88] ss:$16 sps:$4 sm:$0xff]  }
 0x868   :  { %3756 = vpow2.f32 %v3404_v22  ;;  %v5129_v22 = vld [vmem:[#allocation2 + $0xa4] ss:$16 sps:$4 sm:$0xff]  }
 0x86b   :  { %v3743_v39 = vpop.eup %3742 }
 0x86c   :  { %v3745_v33 = vpop.eup %3744  ;;  %v1696_v47 = vadd.f32 1.0, %v3743_v39  ;;  %v5132_v39 = vld [vmem:[#allocation2 + $0xac] ss:$16 sps:$4 sm:$0xff]  }
 0x86d   :  { %v3747_v48 = vpop.eup %3746  ;;  %v1697_v41 = vadd.f32 1.0, %v3745_v33  ;;  %v5135_v33 = vld [vmem:[#allocation2 + $0xa0] ss:$16 sps:$4 sm:$0xff]  }
 0x86e   :  { %v3749_v40 = vpop.eup %3748  ;;  %3758 = vrcp.f32 %v1696_v47  ;;  %v1708_v18 = vadd.f32 1.0, %v3747_v48  ;;  %v5138_v47 = vld [vmem:[#allocation2 + $0xa8] ss:$16 sps:$4 sm:$0xff]   ;;  %v5141_v48 = vld [vmem:[#allocation2 + $0xc4] ss:$16 sps:$4 sm:$0xff]  }
 0x86f   :  { %3760 = vrcp.f32 %v1697_v41  ;;  %v1709_v31 = vadd.f32 1.0, %v3749_v40  ;;  %v3751_v17 = vpop.eup %3750  ;;  %v5144_v41 = vld [vmem:[#allocation2 + $0xcc] ss:$16 sps:$4 sm:$0xff]   ;;  %v5147_v40 = vld [vmem:[#allocation2 + $0xc0] ss:$16 sps:$4 sm:$0xff]  }
 0x870   :  { %3762 = vrcp.f32 %v1708_v18  ;;  %v3753_v25 = vpop.eup %3752  ;;  %v5150_v18 = vld [vmem:[#allocation2 + $0xc8] ss:$16 sps:$4 sm:$0xff]  }
 0x871   :  { %3764 = vrcp.f32 %v1709_v31  ;;  %v3755_v23 = vpop.eup %3754  ;;  %v5153_v31 = vld [vmem:[#allocation2 + $0xe4] ss:$16 sps:$4 sm:$0xff]  }
 0x872   :  { %v3757_v51 = vpop.eup %3756  ;;  %v1722_v61 = vadd.f32 1.0, %v3755_v23  ;;  %v5162_v23 = vld [vmem:[#allocation2 + $0xe8] ss:$16 sps:$4 sm:$0xff]  }
 0x873   :  { %v1723_v3 = vadd.f32 1.0, %v3757_v51  ;;  %v5170_v51 = vld [vmem:[%s5789_s0 + $0x10] sm:$0x11] }
 0x874   :  { %3766 = vrcp.f32 %v1722_v61 }
 0x875   :  { %3768 = vrcp.f32 %v1723_v3 }
 0x878   :  { %v3759_v14 = vpop.eup %3758 }
 0x879   :  { %v3761_v15 = vpop.eup %3760  ;;  %v1735_v24 = vmul.f32 %v3759_v14, %v3751_v17  ;;  %v5156_v17 = vld [vmem:[#allocation2 + $0xec] ss:$16 sps:$4 sm:$0xff]   ;;  %v5175_v14 = vld [vmem:[%s5789_s0 + $0x30] sm:$0x11] }
 0x87a   :  { %v3763_v56 = vpop.eup %3762  ;;  %v1736_v5 = vmul.f32 %v3761_v15, %v3753_v25  ;;  %v5159_v25 = vld [vmem:[#allocation2 + $0xe0] ss:$16 sps:$4 sm:$0xff]   ;;  %v1769_v15 = vunpack.c.l.bf16 %v5170_v51 }
 0x87b   :  { %v3765_v1 = vpop.eup %3764  ;;  %v1733_v6 = vmul.f32 %v3763_v56, %v1729_v49  ;;  %v1773_v49 = vunpack.c.l.bf16 %v5175_v14 }
 0x87c   :  { %v1734_v58 = vmul.f32 %v3765_v1, %v1730_v2  ;;  %v5186_v1 = vld [vmem:[%s5789_s0 + $0x18] sm:$0x11] }
 0x87d   :  { %v1737_v60 = vadd.f32 %v1735_v24, %v1733_v6  ;;  %v1770_v24 = vunpack.c.h.bf16 %v5170_v51 }
 0x87e   :  { %v1738_v42 = vadd.f32 %v1736_v5, %v1734_v58  ;;  %v3767_v54 = vpop.eup %3766  ;;  %v1774_v5 = vunpack.c.h.bf16 %v5175_v14 }
 0x87f   :  { %3770 = vtanh.f32 %v1737_v60  ;;  %v1760_v8 = vrot.slane %v1737_v60, 7  ;;  %v3769_v50 = vpop.eup %3768  ;;  %v5191_v60 = vld [vmem:[%s5789_s0 + $0x38] sm:$0x11] }
 0x880   :  { %3772 = vtanh.f32 %v1738_v42  ;;  %v1761_v9 = vrot.slane %v1738_v42, 6 }
 0x882   :  { %v1762_v43 = vsel %vm424_vm8, %v1761_v9, %v1760_v8 }
 0x883   :  { %v5087_v46 = vsel %vm1750_vm9, %v1762_v43, %v4999_v44  ;;  %v5104_v44 = vld [vmem:[#allocation2 + $0x4c] ss:$16 sps:$4 sm:$0xff]  }
 0x889   :  { %v3771_v45 = vpop.eup %3770 }
 0x88a   :  { %v3773_v63 = vpop.eup %3772  ;;  %v1741_v59 = vmul.f32 %v3771_v45, %v3767_v54 }
 0x88b   :  { %v1742_v27 = vmul.f32 %v3773_v63, %v3769_v50 }
 0x88c   :  { %v1753_v26 = vrot.slane %v1741_v59, 7 }
 0x88d   :  { %v1754_v29 = vrot.slane %v1742_v27, 6  ;;  %v1772_v27 = vunpack.c.h.bf16 %v5186_v1 }
 0x88f   :  { %v1755_v30 = vsel %vm424_vm8, %v1754_v29, %v1753_v26  ;;  %v1776_v29 = vunpack.c.h.bf16 %v5191_v60 }
 0x890   :  { %v5091_v62 = vsel %vm1750_vm9, %v1755_v30, %v5003_v35  ;;  %v5108_v35 = vld [vmem:[#allocation2 + $0x48] ss:$16 sps:$4 sm:$0xff]  }
 0x891   :  { %v1777_v36 = vpack.c.bf16 %v5091_v62, %v5091_v62 }
 0x893   :  { %1811 = vmatmul.mubr.bf16.vlgmr.msra.gmra.mrb[32].mxu0 %v1777_v36  ;;  %1852 = vmatmul.mubr.bf16.vlgmr.msra.gmra.mrb[32].mxu1 %v1777_v36 }
 0x894   :  { %1958 = vmatpush1.bf16.msra.mxu0 %v5007_v4  ;;  %1999 = vmatpush1.bf16.msra.mxu1 %v5010_v57 }
 0x895   :  { %1959 = vmatprep.subr.bf16.mxu0 %v5013_v13  ;;  %2000 = vmatprep.subr.bf16.mxu1 %v5016_v21 }
 0x896   :  { %1989 = vmatprep.mubr.bf16.mxu0 %v4201_v0  ;;  %2030 = vmatprep.mubr.bf16.mxu1 %v4201_v0 }
 0x898   :  { %1960 = vmatpush1.bf16.msra.mxu0 %v5021_v20  ;;  %2001 = vmatpush1.bf16.msra.mxu1 %v5024_v11 }
 0x899   :  { %1961 = vmatprep.subr.bf16.mxu0 %v5027_v34  ;;  %2002 = vmatprep.subr.bf16.mxu1 %v5104_v44 }
 0x89c   :  { %1962 = vmatpush1.bf16.msra.mxu0 %v5031_v12  ;;  %2003 = vmatpush1.bf16.msra.mxu1 %v5108_v35 }
 0x89d   :  { %1963 = vmatprep.subr.bf16.mxu0 %v5035_v16  ;;  %2004 = vmatprep.subr.bf16.mxu1 %v5112_v37 }
 0x8a0   :  { %1964 = vmatpush1.bf16.msra.mxu0 %v5039_v19  ;;  %2005 = vmatpush1.bf16.msra.mxu1 %v5116_v38 }
 0x8a1   :  { %1965 = vmatprep.subr.bf16.mxu0 %v5043_v55  ;;  %2006 = vmatprep.subr.bf16.mxu1 %v5120_v28 }
 0x8a4   :  { %1966 = vmatpush1.bf16.msra.mxu0 %v5123_v52  ;;  %2007 = vmatpush1.bf16.msra.mxu1 %v5126_v32 }
 0x8a5   :  { %1967 = vmatprep.subr.bf16.mxu0 %v5129_v22  ;;  %2008 = vmatprep.subr.bf16.mxu1 %v5132_v39 }
 0x8a8   :  { %1968 = vmatpush1.bf16.msra.mxu0 %v5135_v33  ;;  %2009 = vmatpush1.bf16.msra.mxu1 %v5138_v47 }
 0x8a9   :  { %1969 = vmatprep.subr.bf16.mxu0 %v5141_v48  ;;  %2010 = vmatprep.subr.bf16.mxu1 %v5144_v41 }
 0x8ac   :  { %1970 = vmatpush1.bf16.msra.mxu0 %v5147_v40  ;;  %2011 = vmatpush1.bf16.msra.mxu1 %v5150_v18 }
 0x8ad   :  { %1971 = vmatprep.subr.bf16.mxu0 %v5153_v31  ;;  %2012 = vmatprep.subr.bf16.mxu1 %v5156_v17 }
 0x8b0   :  { %1972 = vmatpush1.bf16.msra.mxu0 %v5159_v25  ;;  %2013 = vmatpush1.bf16.msra.mxu1 %v5162_v23 }
 0x8b1   :  { %2148 = vmatprep.subr.bf16.mxu0 %v5061_v7  ;;  %2189 = vmatprep.subr.bf16.mxu1 %v5064_v53 }
 0x966   :  { %v1812_v61 = vpop.f32.mrb[32].mxu0  ;;  %v1853_v56 = vpop.f32.mrb[32].mxu1 }
 0x967   :  { %v1864_v2 = vrot.slane %v1812_v61, 1  ;;  %v1876_v3 = vadd.f32 %v1812_v61, %v1769_v15  ;;  %v1814_v6 = vpop.f32.mrb[33].mxu0  ;;  %v1855_v58 = vpop.f32.mrb[33].mxu1  ;;  %v5803_v61 = vunpack.c.l.bf16 %v5186_v1 }
 0x968   :  { %v1865_v42 = vrot.slane %v1814_v6, 1  ;;  %v1877_v8 = vadd.f32 %v1814_v6, %v1770_v24  ;;  %v1816_v9 = vpop.f32.mrb[34].mxu0  ;;  %v1857_v10 = vpop.f32.mrb[34].mxu1  ;;  %v1867_v30 = vrot.slane %v1855_v58, 1  ;;  %v5804_v6 = vunpack.c.l.bf16 %v5191_v60 }
 0x969   :  { %v1880_v43 = vadd.f32 %v1864_v2, %v1773_v49  ;;  %v3406_v54 = vmul.f32 -1.442695, %v1876_v3  ;;  %v1817_v50 = vpop.f32.mrb[35].mxu0  ;;  %v1858_v45 = vpop.f32.mrb[35].mxu1  ;;  %v1879_v2 = vadd.f32 %v1855_v58, %v1772_v27 }
 0x96a   :  { %v1881_v63 = vadd.f32 %v1865_v42, %v1774_v5  ;;  %v3408_v59 = vmul.f32 -1.442695, %v1877_v8  ;;  %v1883_v3 = vadd.f32 %v1867_v30, %v1776_v29  ;;  %v1866_v42 = vrot.slane %v1853_v56, 1 }
 0x96b   :  { %3774 = vpow2.f32 %v3406_v54  ;;  %v3407_v26 = vmul.f32 -1.442695, %v1880_v43  ;;  %v1878_v8 = vadd.f32 %v1853_v56, %v5803_v61  ;;  %v3410_v9 = vmul.f32 -1.442695, %v1879_v2 }
 0x96c   :  { %v3409_v36 = vmul.f32 -1.442695, %v1881_v63  ;;  %v3411_v10 = vmul.f32 -1.442695, %v1883_v3  ;;  %v1882_v54 = vadd.f32 %v1866_v42, %v5804_v6 }
 0x96d   :  { %3776 = vpow2.f32 %v3407_v26 }
 0x96e   :  { %3778 = vpow2.f32 %v3408_v59 }
 0x96f   :  { %3780 = vpow2.f32 %v3409_v36 }
 0x970   :  { %3782 = vtanh.f32 %v1878_v8 }
 0x971   :  { %3784 = vpow2.f32 %v3410_v9 }
 0x972   :  { %3786 = vpow2.f32 %v3411_v10 }
 0x975   :  { %v3775_v43 = vpop.eup %3774 }
 0x976   :  { %v1890_v50 = vadd.f32 1.0, %v3775_v43 }
 0x977   :  { %v3777_v58 = vpop.eup %3776 }
 0x978   :  { %v3779_v45 = vpop.eup %3778  ;;  %v1891_v63 = vadd.f32 1.0, %v3777_v58  ;;  %3788 = vrcp.f32 %v1890_v50  ;;  %v1923_v58 = vrot.slane %v5087_v46, 1 }
 0x979   :  { %v3781_v59 = vpop.eup %3780  ;;  %3790 = vtanh.f32 %v1882_v54  ;;  %v1902_v26 = vadd.f32 1.0, %v3779_v45 }
 0x97a   :  { %3792 = vrcp.f32 %v1891_v63  ;;  %v1903_v30 = vadd.f32 1.0, %v3781_v59  ;;  %v3783_v56 = vpop.eup %3782 }
 0x97b   :  { %3794 = vrcp.f32 %v1902_v26  ;;  %v3785_v36 = vpop.eup %3784 }
 0x97c   :  { %3796 = vrcp.f32 %v1903_v30  ;;  %v3787_v2 = vpop.eup %3786  ;;  %v1916_v9 = vadd.f32 1.0, %v3785_v36  ;;  %v1942_v30 = vpop.permute.xlu0 %1941 }
 0x97d   :  { %v1917_v50 = vadd.f32 1.0, %v3787_v2  ;;  %vm1943_vm10 = vcmp.eq.s32.totalorder %v1942_v30, 1 }
 0x97e   :  { %3798 = vrcp.f32 %v1916_v9 }
 0x97f   :  { %3800 = vrcp.f32 %v1917_v50 }
 0x982   :  { %v3789_v3 = vpop.eup %3788 }
 0x983   :  { %v3791_v42 = vpop.eup %3790  ;;  %v1928_v8 = vmul.f32 %v3789_v3, %v3783_v56 }
 0x984   :  { %v3793_v43 = vpop.eup %3792 }
 0x985   :  { %v3795_v61 = vpop.eup %3794  ;;  %v1929_v10 = vmul.f32 %v3793_v43, %v3791_v42 }
 0x986   :  { %v3797_v6 = vpop.eup %3796  ;;  %v1926_v54 = vmul.f32 %v3795_v61, %v5087_v46 }
 0x987   :  { %v1927_v45 = vmul.f32 %v3797_v6, %v1923_v58 }
 0x988   :  { %v1930_v63 = vadd.f32 %v1928_v8, %v1926_v54  ;;  %v3799_v3 = vpop.eup %3798 }
 0x989   :  { %v1931_v59 = vadd.f32 %v1929_v10, %v1927_v45  ;;  %v3801_v2 = vpop.eup %3800 }
 0x98a   :  { %3802 = vtanh.f32 %v1930_v63 }
 0x98b   :  { %3804 = vtanh.f32 %v1931_v59  ;;  %v1952_v26 = vrot.slane %v1931_v59, 7 }
 0x98d   :  { %v1953_v56 = vsel %vm424_vm8, %v1952_v26, %v1930_v63 }
 0x98e   :  { %v5215_v36 = vsel %vm1943_vm10, %v1953_v56, %v5087_v46 }
 0x994   :  { %v3803_v42 = vpop.eup %3802 }
 0x995   :  { %v3805_v43 = vpop.eup %3804  ;;  %v1934_v61 = vmul.f32 %v3803_v42, %v3799_v3 }
 0x996   :  { %v1935_v6 = vmul.f32 %v3805_v43, %v3801_v2 }
 0x998   :  { %v1946_v8 = vrot.slane %v1935_v6, 7 }
 0x99a   :  { %v1947_v9 = vsel %vm424_vm8, %v1946_v8, %v1934_v61 }
 0x99b   :  { %v5219_v10 = vsel %vm1943_vm10, %v1947_v9, %v5091_v62 }
 0x99c   :  { %v1956_v58 = vpack.c.bf16 %v5219_v10, %v5219_v10 }
 0x99e   :  { %1990 = vmatmul.mubr.bf16.vlgmr.msra.gmra.mrb[36].mxu0 %v1956_v58  ;;  %2031 = vmatmul.mubr.bf16.vlgmr.msra.gmra.mrb[36].mxu1 %v1956_v58  ;;  %v5815_v58 = vunpack.c.l.bf16 %v5191_v60 }
 0x99f   :  { %2149 = vmatpush1.bf16.msra.mxu0 %v5007_v4  ;;  %2190 = vmatpush1.bf16.msra.mxu1 %v5010_v57 }
 0x9a0   :  { %2150 = vmatprep.subr.bf16.mxu0 %v5013_v13  ;;  %2191 = vmatprep.subr.bf16.mxu1 %v5016_v21 }
 0x9a1   :  { %2180 = vmatprep.mubr.bf16.mxu0 %v4201_v0  ;;  %2221 = vmatprep.mubr.bf16.mxu1 %v4201_v0 }
 0x9a3   :  { %2151 = vmatpush1.bf16.msra.mxu0 %v5021_v20  ;;  %2192 = vmatpush1.bf16.msra.mxu1 %v5024_v11 }
 0x9a4   :  { %2152 = vmatprep.subr.bf16.mxu0 %v5027_v34  ;;  %2193 = vmatprep.subr.bf16.mxu1 %v5104_v44 }
 0x9a7   :  { %2153 = vmatpush1.bf16.msra.mxu0 %v5031_v12  ;;  %2194 = vmatpush1.bf16.msra.mxu1 %v5108_v35 }
 0x9a8   :  { %2154 = vmatprep.subr.bf16.mxu0 %v5035_v16  ;;  %2195 = vmatprep.subr.bf16.mxu1 %v5112_v37 }
 0x9ab   :  { %2155 = vmatpush1.bf16.msra.mxu0 %v5039_v19  ;;  %2196 = vmatpush1.bf16.msra.mxu1 %v5116_v38 }
 0x9ac   :  { %2156 = vmatprep.subr.bf16.mxu0 %v5043_v55  ;;  %2197 = vmatprep.subr.bf16.mxu1 %v5120_v28 }
 0x9af   :  { %2157 = vmatpush1.bf16.msra.mxu0 %v5123_v52  ;;  %2198 = vmatpush1.bf16.msra.mxu1 %v5126_v32 }
 0x9b0   :  { %2158 = vmatprep.subr.bf16.mxu0 %v5129_v22  ;;  %2199 = vmatprep.subr.bf16.mxu1 %v5132_v39 }
 0x9b3   :  { %2159 = vmatpush1.bf16.msra.mxu0 %v5135_v33  ;;  %2200 = vmatpush1.bf16.msra.mxu1 %v5138_v47 }
 0x9b4   :  { %2160 = vmatprep.subr.bf16.mxu0 %v5141_v48  ;;  %2201 = vmatprep.subr.bf16.mxu1 %v5144_v41 }
 0x9b7   :  { %2161 = vmatpush1.bf16.msra.mxu0 %v5147_v40  ;;  %2202 = vmatpush1.bf16.msra.mxu1 %v5150_v18 }
 0x9b8   :  { %2162 = vmatprep.subr.bf16.mxu0 %v5153_v31  ;;  %2203 = vmatprep.subr.bf16.mxu1 %v5156_v17 }
 0x9bb   :  { %2163 = vmatpush1.bf16.msra.mxu0 %v5159_v25  ;;  %2204 = vmatpush1.bf16.msra.mxu1 %v5162_v23 }
 0x9bc   :  { %2334 = vmatprep.subr.bf16.mxu0 %v5061_v7  ;;  %2375 = vmatprep.subr.bf16.mxu1 %v5064_v53 }
 0xa71   :  { %v1991_v46 = vpop.f32.mrb[36].mxu0  ;;  %v2032_v62 = vpop.f32.mrb[36].mxu1 }
 0xa72   :  { %v2043_v50 = vrot.slane %v1991_v46, 7  ;;  %v2059_v54 = vadd.f32 %v1991_v46, %v1773_v49  ;;  %v1993_v45 = vpop.f32.mrb[37].mxu0  ;;  %v2034_v63 = vpop.f32.mrb[37].mxu1  ;;  %v2061_v46 = vadd.f32 %v2032_v62, %v5815_v58 }
 0xa73   :  { %v2044_v59 = vrot.slane %v1993_v45, 7  ;;  %v2060_v26 = vadd.f32 %v1993_v45, %v1774_v5  ;;  %v1995_v30 = vpop.f32.mrb[38].mxu0  ;;  %v2036_v56 = vpop.f32.mrb[38].mxu1  ;;  %v2046_v6 = vrot.slane %v2034_v63, 7  ;;  %v2045_v5 = vrot.slane %v2032_v62, 7 }
 0xa74   :  { %v2055_v3 = vadd.f32 %v2043_v50, %v1769_v15  ;;  %v3414_v2 = vmul.f32 -1.442695, %v2059_v54  ;;  %v1996_v42 = vpop.f32.mrb[39].mxu0  ;;  %v2037_v43 = vpop.f32.mrb[39].mxu1  ;;  %v2062_v15 = vadd.f32 %v2034_v63, %v1776_v29  ;;  %v5816_v54 = vunpack.c.l.bf16 %v5186_v1 }
 0xa75   :  { %v2056_v61 = vadd.f32 %v2044_v59, %v1770_v24  ;;  %v3416_v49 = vmul.f32 -1.442695, %v2060_v26  ;;  %v2058_v14 = vadd.f32 %v2046_v6, %v1772_v27 }
 0xa76   :  { %v3413_v8 = vmul.f32 -1.442695, %v2055_v3  ;;  %3806 = vpow2.f32 %v3414_v2  ;;  %v3418_v24 = vmul.f32 -1.442695, %v2062_v15  ;;  %v2057_v45 = vadd.f32 %v2045_v5, %v5816_v54 }
 0xa77   :  { %v3415_v9 = vmul.f32 -1.442695, %v2056_v61  ;;  %v3417_v51 = vmul.f32 -1.442695, %v2058_v14  ;;  %v2102_v61 = vrot.slane %v5215_v36, 7 }
 0xa78   :  { %3808 = vpow2.f32 %v3413_v8 }
 0xa79   :  { %3810 = vpow2.f32 %v3415_v9 }
 0xa7a   :  { %3812 = vpow2.f32 %v3416_v49 }
 0xa7b   :  { %3814 = vtanh.f32 %v2061_v46 }
 0xa7c   :  { %3816 = vpow2.f32 %v3417_v51 }
 0xa7d   :  { %3818 = vpow2.f32 %v3418_v24  ;;  %v2121_v24 = vpop.permute.xlu1 %2120 }
 0xa7e   :  { %vm2122_vm11 = vcmp.eq.s32.totalorder %v2121_v24, 1  ;;  %v5340_v24 = vld [vmem:[%s5789_s0 + $0x18] sm:$0x22] }
 0xa80   :  { %v3807_v50 = vpop.eup %3806 }
 0xa81   :  { %v2070_v59 = vadd.f32 1.0, %v3807_v50 }
 0xa82   :  { %v3809_v26 = vpop.eup %3808 }
 0xa83   :  { %v3811_v27 = vpop.eup %3810  ;;  %v2069_v30 = vadd.f32 1.0, %v3809_v26  ;;  %3820 = vrcp.f32 %v2070_v59 }
 0xa84   :  { %v3813_v56 = vpop.eup %3812  ;;  %3822 = vtanh.f32 %v2057_v45  ;;  %v2081_v29 = vadd.f32 1.0, %v3811_v27 }
 0xa85   :  { %3824 = vrcp.f32 %v2069_v30  ;;  %v2082_v60 = vadd.f32 1.0, %v3813_v56  ;;  %v3815_v62 = vpop.eup %3814 }
 0xa86   :  { %3826 = vrcp.f32 %v2081_v29  ;;  %v3817_v63 = vpop.eup %3816 }
 0xa87   :  { %3828 = vrcp.f32 %v2082_v60  ;;  %v3819_v3 = vpop.eup %3818  ;;  %v2095_v6 = vadd.f32 1.0, %v3817_v63 }
 0xa88   :  { %v2096_v9 = vadd.f32 1.0, %v3819_v3 }
 0xa89   :  { %3830 = vrcp.f32 %v2095_v6 }
 0xa8a   :  { %3832 = vrcp.f32 %v2096_v9 }
 0xa8d   :  { %v3821_v1 = vpop.eup %3820 }
 0xa8e   :  { %v3823_v2 = vpop.eup %3822  ;;  %v2108_v42 = vmul.f32 %v3821_v1, %v3815_v62 }
 0xa8f   :  { %v3825_v43 = vpop.eup %3824 }
 0xa90   :  { %v3827_v8 = vpop.eup %3826  ;;  %v2107_v49 = vmul.f32 %v3825_v43, %v3823_v2 }
 0xa91   :  { %v3829_v14 = vpop.eup %3828  ;;  %v2105_v15 = vmul.f32 %v3827_v8, %v2102_v61 }
 0xa92   :  { %v2106_v5 = vmul.f32 %v3829_v14, %v5215_v36 }
 0xa93   :  { %v2109_v58 = vadd.f32 %v2107_v49, %v2105_v15  ;;  %v3831_v45 = vpop.eup %3830 }
 0xa94   :  { %v2110_v46 = vadd.f32 %v2108_v42, %v2106_v5  ;;  %v3833_v59 = vpop.eup %3832 }
 0xa95   :  { %3834 = vtanh.f32 %v2109_v58  ;;  %v2131_v51 = vrot.slane %v2109_v58, 1 }
 0xa96   :  { %3836 = vtanh.f32 %v2110_v46 }
 0xa97   :  { %v2132_v50 = vsel %vm424_vm8, %v2110_v46, %v2131_v51 }
 0xa98   :  { %v5277_v54 = vsel %vm2122_vm11, %v2132_v50, %v5215_v36  ;;  %v5322_v36 = vld [vmem:[%s5789_s0 + $0x10] sm:$0x22] }
 0xa99   :  { %v2139_v3 = vunpack.c.l.bf16 %v5322_v36  ;;  %v2140_v43 = vunpack.c.h.bf16 %v5322_v36 }
 0xa9f   :  { %v3835_v26 = vpop.eup %3834 }
 0xaa0   :  { %v3837_v27 = vpop.eup %3836  ;;  %v2113_v30 = vmul.f32 %v3835_v26, %v3831_v45 }
 0xaa1   :  { %v2114_v56 = vmul.f32 %v3837_v27, %v3833_v59  ;;  %v5345_v59 = vld [vmem:[%s5789_s0 + $0x38] sm:$0x22] }
 0xaa2   :  { %v2125_v29 = vrot.slane %v2113_v30, 1  ;;  %v5817_v36 = vunpack.c.h.bf16 %v5345_v59 }
 0xaa4   :  { %v2126_v60 = vsel %vm424_vm8, %v2114_v56, %v2125_v29 }
 0xaa5   :  { %v5281_v62 = vsel %vm2122_vm11, %v2126_v60, %v5219_v10  ;;  %v5327_v10 = vld [vmem:[%s5789_s0 + $0x30] sm:$0x22] }
 0xaa6   :  { %v2147_v63 = vpack.c.bf16 %v5281_v62, %v5281_v62  ;;  %v2143_v1 = vunpack.c.l.bf16 %v5327_v10  ;;  %v2144_v61 = vunpack.c.h.bf16 %v5327_v10  ;;  %v5818_v10 = vunpack.c.l.bf16 %v5340_v24 }
 0xaa8   :  { %2181 = vmatmul.mubr.bf16.vlgmr.msra.gmra.mrb[40].mxu0 %v2147_v63  ;;  %2222 = vmatmul.mubr.bf16.vlgmr.msra.gmra.mrb[40].mxu1 %v2147_v63  ;;  %v2142_v63 = vunpack.c.h.bf16 %v5340_v24 }
 0xaa9   :  { %2335 = vmatpush1.bf16.msra.mxu0 %v5007_v4  ;;  %2376 = vmatpush1.bf16.msra.mxu1 %v5010_v57 }
 0xaaa   :  { %2336 = vmatprep.subr.bf16.mxu0 %v5013_v13  ;;  %2377 = vmatprep.subr.bf16.mxu1 %v5016_v21 }
 0xaab   :  { %2366 = vmatprep.mubr.bf16.mxu0 %v4201_v0  ;;  %2407 = vmatprep.mubr.bf16.mxu1 %v4201_v0 }
 0xaad   :  { %2337 = vmatpush1.bf16.msra.mxu0 %v5021_v20  ;;  %2378 = vmatpush1.bf16.msra.mxu1 %v5024_v11 }
 0xaae   :  { %2338 = vmatprep.subr.bf16.mxu0 %v5027_v34  ;;  %2379 = vmatprep.subr.bf16.mxu1 %v5104_v44 }
 0xab1   :  { %2339 = vmatpush1.bf16.msra.mxu0 %v5031_v12  ;;  %2380 = vmatpush1.bf16.msra.mxu1 %v5108_v35 }
 0xab2   :  { %2340 = vmatprep.subr.bf16.mxu0 %v5035_v16  ;;  %2381 = vmatprep.subr.bf16.mxu1 %v5112_v37 }
 0xab5   :  { %2341 = vmatpush1.bf16.msra.mxu0 %v5039_v19  ;;  %2382 = vmatpush1.bf16.msra.mxu1 %v5116_v38 }
 0xab6   :  { %2342 = vmatprep.subr.bf16.mxu0 %v5043_v55  ;;  %2383 = vmatprep.subr.bf16.mxu1 %v5120_v28 }
 0xab9   :  { %2343 = vmatpush1.bf16.msra.mxu0 %v5123_v52  ;;  %2384 = vmatpush1.bf16.msra.mxu1 %v5126_v32 }
 0xaba   :  { %2344 = vmatprep.subr.bf16.mxu0 %v5129_v22  ;;  %2385 = vmatprep.subr.bf16.mxu1 %v5132_v39 }
 0xabd   :  { %2345 = vmatpush1.bf16.msra.mxu0 %v5135_v33  ;;  %2386 = vmatpush1.bf16.msra.mxu1 %v5138_v47 }
 0xabe   :  { %2346 = vmatprep.subr.bf16.mxu0 %v5141_v48  ;;  %2387 = vmatprep.subr.bf16.mxu1 %v5144_v41 }
 0xac1   :  { %2347 = vmatpush1.bf16.msra.mxu0 %v5147_v40  ;;  %2388 = vmatpush1.bf16.msra.mxu1 %v5150_v18 }
 0xac2   :  { %2348 = vmatprep.subr.bf16.mxu0 %v5153_v31  ;;  %2389 = vmatprep.subr.bf16.mxu1 %v5156_v17 }
 0xac5   :  { %2349 = vmatpush1.bf16.msra.mxu0 %v5159_v25  ;;  %2390 = vmatpush1.bf16.msra.mxu1 %v5162_v23 }
 0xac6   :  { %2532 = vmatprep.subr.bf16.mxu0 %v5061_v7  ;;  %2573 = vmatprep.subr.bf16.mxu1 %v5064_v53 }
 0xb7b   :  { %v2182_v2 = vpop.f32.mrb[40].mxu0  ;;  %v2223_v42 = vpop.f32.mrb[40].mxu1 }
 0xb7c   :  { %v2234_v6 = vrot.slane %v2182_v2, 6  ;;  %v2238_v8 = vrot.slane %v2182_v2, 7  ;;  %v2184_v49 = vpop.f32.mrb[41].mxu0  ;;  %v2225_v9 = vpop.f32.mrb[41].mxu1 }
 0xb7d   :  { %v2235_v14 = vrot.slane %v2184_v49, 6  ;;  %v2239_v15 = vrot.slane %v2184_v49, 7  ;;  %v2186_v5 = vpop.f32.mrb[42].mxu0  ;;  %v2227_v58 = vpop.f32.mrb[42].mxu1  ;;  %v2237_v2 = vrot.slane %v2225_v9, 6  ;;  %v5806_v49 = vunpack.c.l.bf16 %v5340_v24 }
 0xb7e   :  { %v2250_v46 = vadd.f32 %v2234_v6, %v2139_v3  ;;  %v2254_v51 = vadd.f32 %v2238_v8, %v2143_v1  ;;  %v2187_v50 = vpop.f32.mrb[43].mxu0  ;;  %v2228_v45 = vpop.f32.mrb[43].mxu1  ;;  %v5807_v6 = vunpack.c.h.bf16 %v5345_v59  ;;  %v2241_v8 = vrot.slane %v2225_v9, 7 }
 0xb7f   :  { %v2251_v26 = vadd.f32 %v2235_v14, %v2140_v43  ;;  %v2255_v27 = vadd.f32 %v2239_v15, %v2144_v61  ;;  %v2236_v5 = vrot.slane %v2223_v42, 6  ;;  %v5805_v14 = vunpack.c.l.bf16 %v5345_v59 }
 0xb80   :  { %v3420_v30 = vmul.f32 -1.442695, %v2250_v46  ;;  %v3421_v56 = vmul.f32 -1.442695, %v2254_v51  ;;  %v2240_v58 = vrot.slane %v2223_v42, 7  ;;  %v2253_v15 = vadd.f32 %v2237_v2, %v2142_v63 }
 0xb81   :  { %v3422_v29 = vmul.f32 -1.442695, %v2251_v26  ;;  %v3423_v60 = vmul.f32 -1.442695, %v2255_v27  ;;  %v2257_v46 = vadd.f32 %v2241_v8, %v5807_v6  ;;  %v2252_v51 = vadd.f32 %v2236_v5, %v5806_v49 }
 0xb82   :  { %3838 = vpow2.f32 %v3420_v30  ;;  %v2256_v9 = vadd.f32 %v2240_v58, %v5805_v14  ;;  %v3424_v50 = vmul.f32 -1.442695, %v2253_v15 }
 0xb83   :  { %3840 = vpow2.f32 %v3421_v56  ;;  %v3425_v45 = vmul.f32 -1.442695, %v2257_v46 }
 0xb84   :  { %3842 = vpow2.f32 %v3422_v29 }
 0xb85   :  { %3844 = vpow2.f32 %v3423_v60 }
 0xb86   :  { %3846 = vtanh.f32 %v2252_v51 }
 0xb87   :  { %3848 = vtanh.f32 %v2256_v9 }
 0xb88   :  { %3850 = vpow2.f32 %v3424_v50 }
 0xb89   :  { %3852 = vpow2.f32 %v3425_v45  ;;  %v2298_v45 = vrot.slane %v5277_v54, 7 }
 0xb8c   :  { %v3839_v26 = vpop.eup %3838 }
 0xb8d   :  { %v3841_v42 = vpop.eup %3840  ;;  %v2264_v27 = vadd.f32 1.0, %v3839_v26  ;;  %v2297_v26 = vrot.slane %v5277_v54, 6 }
 0xb8e   :  { %v3843_v30 = vpop.eup %3842  ;;  %v2265_v56 = vadd.f32 1.0, %v3841_v42 }
 0xb8f   :  { %v3845_v29 = vpop.eup %3844  ;;  %3854 = vrcp.f32 %v2264_v27  ;;  %v2276_v60 = vadd.f32 1.0, %v3843_v30 }
 0xb90   :  { %3856 = vrcp.f32 %v2265_v56  ;;  %v2277_v2 = vadd.f32 1.0, %v3845_v29  ;;  %v3847_v8 = vpop.eup %3846 }
 0xb91   :  { %3858 = vrcp.f32 %v2276_v60  ;;  %v3849_v5 = vpop.eup %3848 }
 0xb92   :  { %3860 = vrcp.f32 %v2277_v2  ;;  %v3851_v58 = vpop.eup %3850 }
 0xb93   :  { %v3853_v15 = vpop.eup %3852  ;;  %v2290_v50 = vadd.f32 1.0, %v3851_v58 }
 0xb94   :  { %v2291_v27 = vadd.f32 1.0, %v3853_v15 }
 0xb95   :  { %3862 = vrcp.f32 %v2290_v50 }
 0xb96   :  { %3864 = vrcp.f32 %v2291_v27 }
 0xb99   :  { %v3855_v46 = vpop.eup %3854 }
 0xb9a   :  { %v3857_v51 = vpop.eup %3856  ;;  %v2303_v9 = vmul.f32 %v3855_v46, %v3847_v8  ;;  %v2317_v8 = vpop.permute.xlu0 %2316 }
 0xb9b   :  { %v3859_v14 = vpop.eup %3858  ;;  %v2304_v42 = vmul.f32 %v3857_v51, %v3849_v5  ;;  %vm2318_vm12 = vcmp.eq.s32.totalorder %v2317_v8, 1 }
 0xb9c   :  { %v3861_v30 = vpop.eup %3860  ;;  %v2301_v56 = vmul.f32 %v3859_v14, %v2297_v26 }
 0xb9d   :  { %v2302_v29 = vmul.f32 %v3861_v30, %v2298_v45 }
 0xb9e   :  { %v2305_v60 = vadd.f32 %v2303_v9, %v2301_v56 }
 0xb9f   :  { %v2306_v2 = vadd.f32 %v2304_v42, %v2302_v29  ;;  %v3863_v46 = vpop.eup %3862 }
 0xba0   :  { %3866 = vtanh.f32 %v2305_v60  ;;  %v2328_v49 = vrot.slane %v2305_v60, 2  ;;  %v3865_v15 = vpop.eup %3864 }
 0xba1   :  { %3868 = vtanh.f32 %v2306_v2  ;;  %v2329_v6 = vrot.slane %v2306_v2, 1 }
 0xba3   :  { %v2330_v58 = vsel %vm424_vm8, %v2329_v6, %v2328_v49 }
 0xba4   :  { %v5367_v5 = vsel %vm2318_vm12, %v2330_v58, %v5277_v54 }
 0xbaa   :  { %v3867_v51 = vpop.eup %3866 }
 0xbab   :  { %v3869_v14 = vpop.eup %3868  ;;  %v2309_v26 = vmul.f32 %v3867_v51, %v3863_v46  ;;  %v5819_v46 = vunpack.c.l.bf16 %v5345_v59 }
 0xbac   :  { %v2310_v9 = vmul.f32 %v3869_v14, %v3865_v15 }
 0xbad   :  { %v2321_v50 = vrot.slane %v2309_v26, 2 }
 0xbae   :  { %v2322_v42 = vrot.slane %v2310_v9, 1 }
 0xbb0   :  { %v2323_v45 = vsel %vm424_vm8, %v2322_v42, %v2321_v50 }
 0xbb1   :  { %v5371_v27 = vsel %vm2318_vm12, %v2323_v45, %v5281_v62 }
 0xbb2   :  { %v2333_v30 = vpack.c.bf16 %v5371_v27, %v5371_v27 }
 0xbb4   :  { %2367 = vmatmul.mubr.bf16.vlgmr.msra.gmra.mrb[44].mxu0 %v2333_v30  ;;  %2408 = vmatmul.mubr.bf16.vlgmr.msra.gmra.mrb[44].mxu1 %v2333_v30 }
 0xbb5   :  { %2533 = vmatpush1.bf16.msra.mxu0 %v5007_v4  ;;  %2574 = vmatpush1.bf16.msra.mxu1 %v5010_v57 }
 0xbb6   :  { %2534 = vmatprep.subr.bf16.mxu0 %v5013_v13  ;;  %2575 = vmatprep.subr.bf16.mxu1 %v5016_v21 }
 0xbb7   :  { %2564 = vmatprep.mubr.bf16.mxu0 %v4201_v0  ;;  %2605 = vmatprep.mubr.bf16.mxu1 %v4201_v0 }
 0xbb9   :  { %2535 = vmatpush1.bf16.msra.mxu0 %v5021_v20  ;;  %2576 = vmatpush1.bf16.msra.mxu1 %v5024_v11 }
 0xbba   :  { %2536 = vmatprep.subr.bf16.mxu0 %v5027_v34  ;;  %2577 = vmatprep.subr.bf16.mxu1 %v5104_v44 }
 0xbbd   :  { %2537 = vmatpush1.bf16.msra.mxu0 %v5031_v12  ;;  %2578 = vmatpush1.bf16.msra.mxu1 %v5108_v35 }
 0xbbe   :  { %2538 = vmatprep.subr.bf16.mxu0 %v5035_v16  ;;  %2579 = vmatprep.subr.bf16.mxu1 %v5112_v37 }
 0xbc1   :  { %2539 = vmatpush1.bf16.msra.mxu0 %v5039_v19  ;;  %2580 = vmatpush1.bf16.msra.mxu1 %v5116_v38 }
 0xbc2   :  { %2540 = vmatprep.subr.bf16.mxu0 %v5043_v55  ;;  %2581 = vmatprep.subr.bf16.mxu1 %v5120_v28 }
 0xbc5   :  { %2541 = vmatpush1.bf16.msra.mxu0 %v5123_v52  ;;  %2582 = vmatpush1.bf16.msra.mxu1 %v5126_v32 }
 0xbc6   :  { %2542 = vmatprep.subr.bf16.mxu0 %v5129_v22  ;;  %2583 = vmatprep.subr.bf16.mxu1 %v5132_v39 }
 0xbc9   :  { %2543 = vmatpush1.bf16.msra.mxu0 %v5135_v33  ;;  %2584 = vmatpush1.bf16.msra.mxu1 %v5138_v47 }
 0xbca   :  { %2544 = vmatprep.subr.bf16.mxu0 %v5141_v48  ;;  %2585 = vmatprep.subr.bf16.mxu1 %v5144_v41 }
 0xbcd   :  { %2545 = vmatpush1.bf16.msra.mxu0 %v5147_v40  ;;  %2586 = vmatpush1.bf16.msra.mxu1 %v5150_v18 }
 0xbce   :  { %2546 = vmatprep.subr.bf16.mxu0 %v5153_v31  ;;  %2587 = vmatprep.subr.bf16.mxu1 %v5156_v17 }
 0xbd1   :  { %2547 = vmatpush1.bf16.msra.mxu0 %v5159_v25  ;;  %2588 = vmatpush1.bf16.msra.mxu1 %v5162_v23 }
 0xbd2   :  { %2718 = vmatprep.subr.bf16.mxu0 %v5061_v7  ;;  %2759 = vmatprep.subr.bf16.mxu1 %v5064_v53 }
 0xc87   :  { %v2368_v4 = vpop.f32.mrb[44].mxu0  ;;  %v2409_v57 = vpop.f32.mrb[44].mxu1 }
 0xc88   :  { %v2420_v13 = vrot.slane %v2368_v4, 5  ;;  %v2424_v21 = vrot.slane %v2368_v4, 6  ;;  %v2370_v20 = vpop.f32.mrb[45].mxu0  ;;  %v2411_v11 = vpop.f32.mrb[45].mxu1  ;;  %v2426_v58 = vrot.slane %v2409_v57, 6 }
 0xc89   :  { %v2421_v34 = vrot.slane %v2370_v20, 5  ;;  %v2425_v12 = vrot.slane %v2370_v20, 6  ;;  %v2372_v16 = vpop.f32.mrb[46].mxu0  ;;  %v2413_v19 = vpop.f32.mrb[46].mxu1  ;;  %v2423_v2 = vrot.slane %v2411_v11, 5  ;;  %v2427_v8 = vrot.slane %v2411_v11, 6 }
 0xc8a   :  { %v2436_v55 = vadd.f32 %v2420_v13, %v2139_v3  ;;  %v2440_v54 = vadd.f32 %v2424_v21, %v2143_v1  ;;  %v2373_v62 = vpop.f32.mrb[47].mxu0  ;;  %v2414_v7 = vpop.f32.mrb[47].mxu1  ;;  %v2422_v3 = vrot.slane %v2409_v57, 5  ;;  %v2442_v15 = vadd.f32 %v2426_v58, %v5819_v46 }
 0xc8b   :  { %v2437_v53 = vadd.f32 %v2421_v34, %v2140_v43  ;;  %v2441_v6 = vadd.f32 %v2425_v12, %v2144_v61  ;;  %v2439_v1 = vadd.f32 %v2423_v2, %v2142_v63  ;;  %v2443_v43 = vadd.f32 %v2427_v8, %v5817_v36 }
 0xc8c   :  { %v3427_v49 = vmul.f32 -1.442695, %v2436_v55  ;;  %v3428_v56 = vmul.f32 -1.442695, %v2440_v54  ;;  %v2438_v61 = vadd.f32 %v2422_v3, %v5818_v10  ;;  %v2483_v34 = vrot.slane %v5367_v5, 5 }
 0xc8d   :  { %v3429_v29 = vmul.f32 -1.442695, %v2437_v53  ;;  %v3430_v60 = vmul.f32 -1.442695, %v2441_v6  ;;  %v3431_v51 = vmul.f32 -1.442695, %v2439_v1 }
 0xc8e   :  { %3870 = vpow2.f32 %v3427_v49  ;;  %v3432_v14 = vmul.f32 -1.442695, %v2443_v43  ;;  %v2484_v55 = vrot.slane %v5367_v5, 6 }
 0xc8f   :  { %3872 = vpow2.f32 %v3428_v56 }
 0xc90   :  { %3874 = vpow2.f32 %v3429_v29 }
 0xc91   :  { %3876 = vpow2.f32 %v3430_v60  ;;  %v2503_v60 = vpop.permute.xlu1 %2502 }
 0xc92   :  { %3878 = vtanh.f32 %v2438_v61  ;;  %vm2504_vm13 = vcmp.eq.s32.totalorder %v2503_v60, 1 }
 0xc93   :  { %3880 = vtanh.f32 %v2442_v15 }
 0xc94   :  { %3882 = vpow2.f32 %v3431_v51 }
 0xc95   :  { %3884 = vpow2.f32 %v3432_v14 }
 0xc98   :  { %v3871_v26 = vpop.eup %3870 }
 0xc99   :  { %v3873_v9 = vpop.eup %3872  ;;  %v2450_v50 = vadd.f32 1.0, %v3871_v26  ;;  %v5440_v26 = vld [vmem:[#allocation2 + $0x8] ss:$16 sps:$4 sm:$0xff]  }
 0xc9a   :  { %v3875_v42 = vpop.eup %3874  ;;  %v2451_v45 = vadd.f32 1.0, %v3873_v9  ;;  %v5443_v9 = vld [vmem:[#allocation2 + $0x24] ss:$16 sps:$4 sm:$0xff]  }
 0xc9b   :  { %v3877_v63 = vpop.eup %3876  ;;  %3886 = vrcp.f32 %v2450_v50  ;;  %v2462_v30 = vadd.f32 1.0, %v3875_v42  ;;  %v5446_v50 = vld [vmem:[#allocation2 + $0x2c] ss:$16 sps:$4 sm:$0xff]   ;;  %v5454_v42 = vld [vmem:[#allocation2 + $0x28] ss:$16 sps:$4 sm:$0xff]  }
 0xc9c   :  { %3888 = vrcp.f32 %v2451_v45  ;;  %v2463_v24 = vadd.f32 1.0, %v3877_v63  ;;  %v3879_v59 = vpop.eup %3878  ;;  %v5457_v45 = vld [vmem:[#allocation2 + $0x44] ss:$16 sps:$4 sm:$0xff]   ;;  %v5461_v63 = vld [vmem:[#allocation2 + $0x40] ss:$16 sps:$4 sm:$0xff]  }
 0xc9d   :  { %3890 = vrcp.f32 %v2462_v30  ;;  %v3881_v4 = vpop.eup %3880  ;;  %v5465_v30 = vld [vmem:[#allocation2 + $0x64] ss:$16 sps:$4 sm:$0xff]  }
 0xc9e   :  { %3892 = vrcp.f32 %v2463_v24  ;;  %v3883_v57 = vpop.eup %3882  ;;  %v5469_v24 = vld [vmem:[#allocation2 + $0x60] ss:$16 sps:$4 sm:$0xff]  }
 0xc9f   :  { %v3885_v13 = vpop.eup %3884  ;;  %v2476_v12 = vadd.f32 1.0, %v3883_v57  ;;  %v5518_v57 = vld [vmem:[%s5789_s0 + $0x18] sm:$0x44] }
 0xca0   :  { %v2477_v54 = vadd.f32 1.0, %v3885_v13 }
 0xca1   :  { %3894 = vrcp.f32 %v2476_v12 }
 0xca2   :  { %3896 = vrcp.f32 %v2477_v54  ;;  %v2526_v54 = vunpack.c.h.bf16 %v5518_v57 }
 0xca5   :  { %v3887_v21 = vpop.eup %3886 }
 0xca6   :  { %v3889_v20 = vpop.eup %3888  ;;  %v2489_v11 = vmul.f32 %v3887_v21, %v3879_v59  ;;  %v5473_v59 = vld [vmem:[#allocation2 + $0x84] ss:$16 sps:$4 sm:$0xff]  }
 0xca7   :  { %v3891_v16 = vpop.eup %3890  ;;  %v2490_v19 = vmul.f32 %v3889_v20, %v3881_v4  ;;  %v5523_v20 = vld [vmem:[%s5789_s0 + $0x38] sm:$0x44] }
 0xca8   :  { %v3893_v62 = vpop.eup %3892  ;;  %v2487_v7 = vmul.f32 %v3891_v16, %v2483_v34 }
 0xca9   :  { %v2488_v53 = vmul.f32 %v3893_v62, %v2484_v55 }
 0xcaa   :  { %v2491_v6 = vadd.f32 %v2489_v11, %v2487_v7  ;;  %v2530_v7 = vunpack.c.h.bf16 %v5523_v20 }
 0xcab   :  { %v2492_v49 = vadd.f32 %v2490_v19, %v2488_v53  ;;  %v3895_v3 = vpop.eup %3894 }
 0xcac   :  { %3898 = vtanh.f32 %v2491_v6  ;;  %v2514_v56 = vrot.slane %v2491_v6, 3  ;;  %v3897_v58 = vpop.eup %3896  ;;  %v2525_v6 = vunpack.c.l.bf16 %v5518_v57 }
 0xcad   :  { %3900 = vtanh.f32 %v2492_v49  ;;  %v2515_v29 = vrot.slane %v2492_v49, 2 }
 0xcaf   :  { %v2516_v2 = vsel %vm424_vm8, %v2515_v29, %v2514_v56  ;;  %v2529_v56 = vunpack.c.l.bf16 %v5523_v20 }
 0xcb0   :  { %v5429_v8 = vsel %vm2504_vm13, %v2516_v2, %v5367_v5  ;;  %v5437_v5 = vld [vmem:[#allocation2] ss:$16 sps:$4 sm:$0xff]  }
 0xcb6   :  { %v3899_v1 = vpop.eup %3898 }
 0xcb7   :  { %v3901_v36 = vpop.eup %3900  ;;  %v2495_v43 = vmul.f32 %v3899_v1, %v3895_v3 }
 0xcb8   :  { %v2496_v10 = vmul.f32 %v3901_v36, %v3897_v58 }
 0xcb9   :  { %v2507_v61 = vrot.slane %v2495_v43, 3 }
 0xcba   :  { %v2508_v46 = vrot.slane %v2496_v10, 2 }
 0xcbc   :  { %v2509_v15 = vsel %vm424_vm8, %v2508_v46, %v2507_v61 }
 0xcbd   :  { %v5433_v51 = vsel %vm2504_vm13, %v2509_v15, %v5371_v27  ;;  %v5451_v27 = vld [vmem:[#allocation2 + $0x20] ss:$16 sps:$4 sm:$0xff]  }
 0xcbe   :  { %v2531_v14 = vpack.c.bf16 %v5433_v51, %v5433_v51 }
 0xcc0   :  { %2565 = vmatmul.mubr.bf16.vlgmr.msra.gmra.mrb[48].mxu0 %v2531_v14  ;;  %2606 = vmatmul.mubr.bf16.vlgmr.msra.gmra.mrb[48].mxu1 %v2531_v14 }
 0xcc1   :  { %2719 = vmatpush1.bf16.msra.mxu0 %v5437_v5  ;;  %2760 = vmatpush1.bf16.msra.mxu1 %v5440_v26 }
 0xcc2   :  { %2720 = vmatprep.subr.bf16.mxu0 %v5443_v9  ;;  %2761 = vmatprep.subr.bf16.mxu1 %v5446_v50 }
 0xcc3   :  { %2750 = vmatprep.mubr.bf16.mxu0 %v4201_v0  ;;  %2791 = vmatprep.mubr.bf16.mxu1 %v4201_v0 }
 0xcc5   :  { %2721 = vmatpush1.bf16.msra.mxu0 %v5451_v27  ;;  %2762 = vmatpush1.bf16.msra.mxu1 %v5454_v42 }
 0xcc6   :  { %2722 = vmatprep.subr.bf16.mxu0 %v5457_v45  ;;  %2763 = vmatprep.subr.bf16.mxu1 %v5104_v44  ;;  %v5491_v44 = vld [vmem:[#allocation2 + $0x4] ss:$16 sps:$4 sm:$0xff]  }
 0xcc9   :  { %2723 = vmatpush1.bf16.msra.mxu0 %v5461_v63  ;;  %2764 = vmatpush1.bf16.msra.mxu1 %v5108_v35  ;;  %v5494_v35 = vld [vmem:[#allocation2 + $0xc] ss:$16 sps:$4 sm:$0xff]  }
 0xcca   :  { %2724 = vmatprep.subr.bf16.mxu0 %v5465_v30  ;;  %2765 = vmatprep.subr.bf16.mxu1 %v5112_v37  ;;  %v5500_v37 = vld [vmem:[%s5789_s0 + $0x10] sm:$0x44] }
 0xccd   :  { %2725 = vmatpush1.bf16.msra.mxu0 %v5469_v24  ;;  %2766 = vmatpush1.bf16.msra.mxu1 %v5116_v38  ;;  %v5505_v38 = vld [vmem:[%s5789_s0 + $0x30] sm:$0x44] }
 0xcce   :  { %2726 = vmatprep.subr.bf16.mxu0 %v5473_v59  ;;  %2767 = vmatprep.subr.bf16.mxu1 %v5120_v28  ;;  %v2523_v28 = vunpack.c.l.bf16 %v5500_v37 }
 0xcd1   :  { %2727 = vmatpush1.bf16.msra.mxu0 %v5123_v52  ;;  %2768 = vmatpush1.bf16.msra.mxu1 %v5126_v32  ;;  %v2527_v52 = vunpack.c.l.bf16 %v5505_v38 }
 0xcd2   :  { %2728 = vmatprep.subr.bf16.mxu0 %v5129_v22  ;;  %2769 = vmatprep.subr.bf16.mxu1 %v5132_v39  ;;  %v2524_v39 = vunpack.c.h.bf16 %v5500_v37 }
 0xcd5   :  { %2729 = vmatpush1.bf16.msra.mxu0 %v5135_v33  ;;  %2770 = vmatpush1.bf16.msra.mxu1 %v5138_v47  ;;  %v2528_v33 = vunpack.c.h.bf16 %v5505_v38 }
 0xcd6   :  { %2730 = vmatprep.subr.bf16.mxu0 %v5141_v48  ;;  %2771 = vmatprep.subr.bf16.mxu1 %v5144_v41 }
 0xcd9   :  { %2731 = vmatpush1.bf16.msra.mxu0 %v5147_v40  ;;  %2772 = vmatpush1.bf16.msra.mxu1 %v5150_v18 }
 0xcda   :  { %2732 = vmatprep.subr.bf16.mxu0 %v5153_v31  ;;  %2773 = vmatprep.subr.bf16.mxu1 %v5156_v17 }
 0xcdd   :  { %2733 = vmatpush1.bf16.msra.mxu0 %v5159_v25  ;;  %2774 = vmatpush1.bf16.msra.mxu1 %v5162_v23 }
 0xcde   :  { %2916 = vmatprep.subr.bf16.mxu0 %v5491_v44  ;;  %2957 = vmatprep.subr.bf16.mxu1 %v5494_v35 }
 0xd93   :  { %v2566_v32 = vpop.f32.mrb[48].mxu0  ;;  %v2607_v22 = vpop.f32.mrb[48].mxu1 }
 0xd94   :  { %v2618_v47 = vrot.slane %v2566_v32, 4  ;;  %v2622_v48 = vrot.slane %v2566_v32, 5  ;;  %v2568_v41 = vpop.f32.mrb[49].mxu0  ;;  %v2609_v40 = vpop.f32.mrb[49].mxu1  ;;  %v2620_v49 = vrot.slane %v2607_v22, 4  ;;  %v2624_v29 = vrot.slane %v2607_v22, 5 }
 0xd95   :  { %v2619_v18 = vrot.slane %v2568_v41, 4  ;;  %v2623_v31 = vrot.slane %v2568_v41, 5  ;;  %v2570_v17 = vpop.f32.mrb[50].mxu0  ;;  %v2611_v25 = vpop.f32.mrb[50].mxu1  ;;  %v2621_v62 = vrot.slane %v2609_v40, 4  ;;  %v2625_v53 = vrot.slane %v2609_v40, 5 }
 0xd96   :  { %v2634_v23 = vadd.f32 %v2618_v47, %v2523_v28  ;;  %v2638_v4 = vadd.f32 %v2622_v48, %v2527_v52  ;;  %v2571_v13 = vpop.f32.mrb[51].mxu0  ;;  %v2612_v21 = vpop.f32.mrb[51].mxu1  ;;  %v2636_v3 = vadd.f32 %v2620_v49, %v2525_v6  ;;  %v2640_v58 = vadd.f32 %v2624_v29, %v2529_v56 }
 0xd97   :  { %v2635_v11 = vadd.f32 %v2619_v18, %v2524_v39  ;;  %v2639_v34 = vadd.f32 %v2623_v31, %v2528_v33  ;;  %v2637_v60 = vadd.f32 %v2621_v62, %v2526_v54  ;;  %v2641_v2 = vadd.f32 %v2625_v53, %v2530_v7  ;;  %v2701_v49 = vpop.permute.xlu0 %2700 }
 0xd98   :  { %v3434_v12 = vmul.f32 -1.442695, %v2634_v23  ;;  %v3435_v16 = vmul.f32 -1.442695, %v2638_v4  ;;  %v2681_v25 = vrot.slane %v5429_v8, 4  ;;  %v2682_v21 = vrot.slane %v5429_v8, 5 }
 0xd99   :  { %v3436_v19 = vmul.f32 -1.442695, %v2635_v11  ;;  %v3437_v55 = vmul.f32 -1.442695, %v2639_v34  ;;  %v3438_v1 = vmul.f32 -1.442695, %v2637_v60 }
 0xd9a   :  { %3902 = vpow2.f32 %v3434_v12  ;;  %v3439_v36 = vmul.f32 -1.442695, %v2641_v2  ;;  %vm2702_vm14 = vcmp.eq.s32.totalorder %v2701_v49, 1 }
 0xd9b   :  { %3904 = vpow2.f32 %v3435_v16 }
 0xd9c   :  { %3906 = vpow2.f32 %v3436_v19 }
 0xd9d   :  { %3908 = vpow2.f32 %v3437_v55 }
 0xd9e   :  { %3910 = vtanh.f32 %v2636_v3 }
 0xd9f   :  { %3912 = vtanh.f32 %v2640_v58 }
 0xda0   :  { %3914 = vpow2.f32 %v3438_v1 }
 0xda1   :  { %3916 = vpow2.f32 %v3439_v36 }
 0xda4   :  { %v3903_v43 = vpop.eup %3902 }
 0xda5   :  { %v3905_v10 = vpop.eup %3904  ;;  %v2648_v61 = vadd.f32 1.0, %v3903_v43 }
 0xda6   :  { %v3907_v46 = vpop.eup %3906  ;;  %v2649_v15 = vadd.f32 1.0, %v3905_v10 }
 0xda7   :  { %v3909_v14 = vpop.eup %3908  ;;  %3918 = vrcp.f32 %v2648_v61  ;;  %v2660_v32 = vadd.f32 1.0, %v3907_v46 }
 0xda8   :  { %3920 = vrcp.f32 %v2649_v15  ;;  %v2661_v22 = vadd.f32 1.0, %v3909_v14  ;;  %v3911_v47 = vpop.eup %3910 }
 0xda9   :  { %3922 = vrcp.f32 %v2660_v32  ;;  %v3913_v48 = vpop.eup %3912  ;;  %v5570_v32 = vld [vmem:[#allocation2 + $0x6c] ss:$16 sps:$4 sm:$0xff]  }
 0xdaa   :  { %3924 = vrcp.f32 %v2661_v22  ;;  %v3915_v41 = vpop.eup %3914  ;;  %v5574_v22 = vld [vmem:[#allocation2 + $0x68] ss:$16 sps:$4 sm:$0xff]  }
 0xdab   :  { %v3917_v40 = vpop.eup %3916  ;;  %v2674_v23 = vadd.f32 1.0, %v3915_v41  ;;  %v5584_v41 = vld [vmem:[#allocation2 + $0x88] ss:$16 sps:$4 sm:$0xff]  }
 0xdac   :  { %v2675_v11 = vadd.f32 1.0, %v3917_v40  ;;  %v5587_v40 = vld [vmem:[#allocation2 + $0xa4] ss:$16 sps:$4 sm:$0xff]  }
 0xdad   :  { %3926 = vrcp.f32 %v2674_v23  ;;  %v5602_v23 = vld [vmem:[#allocation2 + $0xcc] ss:$16 sps:$4 sm:$0xff]  }
 0xdae   :  { %3928 = vrcp.f32 %v2675_v11  ;;  %v5614_v11 = vld [vmem:[#allocation2 + $0xec] ss:$16 sps:$4 sm:$0xff]  }
 0xdb1   :  { %v3919_v18 = vpop.eup %3918 }
 0xdb2   :  { %v3921_v31 = vpop.eup %3920  ;;  %v2687_v17 = vmul.f32 %v3919_v18, %v3911_v47  ;;  %v5578_v47 = vld [vmem:[#allocation2 + $0x8c] ss:$16 sps:$4 sm:$0xff]  }
 0xdb3   :  { %v3923_v4 = vpop.eup %3922  ;;  %v2688_v13 = vmul.f32 %v3921_v31, %v3913_v48  ;;  %v5581_v48 = vld [vmem:[#allocation2 + $0x80] ss:$16 sps:$4 sm:$0xff]   ;;  %v5590_v18 = vld [vmem:[#allocation2 + $0xac] ss:$16 sps:$4 sm:$0xff]  }
 0xdb4   :  { %v3925_v34 = vpop.eup %3924  ;;  %v2685_v12 = vmul.f32 %v3923_v4, %v2681_v25  ;;  %v5593_v31 = vld [vmem:[#allocation2 + $0xa0] ss:$16 sps:$4 sm:$0xff]   ;;  %v5599_v25 = vld [vmem:[#allocation2 + $0xc4] ss:$16 sps:$4 sm:$0xff]  }
 0xdb5   :  { %v2686_v16 = vmul.f32 %v3925_v34, %v2682_v21  ;;  %v5605_v4 = vld [vmem:[#allocation2 + $0xc0] ss:$16 sps:$4 sm:$0xff]   ;;  %v5611_v21 = vld [vmem:[#allocation2 + $0xe4] ss:$16 sps:$4 sm:$0xff]  }
 0xdb6   :  { %v2689_v19 = vadd.f32 %v2687_v17, %v2685_v12  ;;  %v5596_v17 = vld [vmem:[#allocation2 + $0xa8] ss:$16 sps:$4 sm:$0xff]   ;;  %v5617_v34 = vld [vmem:[#allocation2 + $0xe0] ss:$16 sps:$4 sm:$0xff]  }
 0xdb7   :  { %v2690_v55 = vadd.f32 %v2688_v13, %v2686_v16  ;;  %v3927_v2 = vpop.eup %3926  ;;  %v5608_v13 = vld [vmem:[#allocation2 + $0xc8] ss:$16 sps:$4 sm:$0xff]  }
 0xdb8   :  { %3930 = vtanh.f32 %v2689_v19  ;;  %v2712_v62 = vrot.slane %v2689_v19, 4  ;;  %v3929_v3 = vpop.eup %3928  ;;  %v5620_v12 = vld [vmem:[#allocation2 + $0xe8] ss:$16 sps:$4 sm:$0xff]  }
 0xdb9   :  { %3932 = vtanh.f32 %v2690_v55  ;;  %v2713_v53 = vrot.slane %v2690_v55, 3 }
 0xdbb   :  { %v2714_v29 = vsel %vm424_vm8, %v2713_v53, %v2712_v62 }
 0xdbc   :  { %v5545_v60 = vsel %vm2702_vm14, %v2714_v29, %v5429_v8  ;;  %v5562_v8 = vld [vmem:[#allocation2 + $0x4c] ss:$16 sps:$4 sm:$0xff]  }
 0xdc2   :  { %v3931_v58 = vpop.eup %3930 }
 0xdc3   :  { %v3933_v1 = vpop.eup %3932  ;;  %v2693_v36 = vmul.f32 %v3931_v58, %v3927_v2 }
 0xdc4   :  { %v2694_v43 = vmul.f32 %v3933_v1, %v3929_v3 }
 0xdc5   :  { %v2705_v10 = vrot.slane %v2693_v36, 4 }
 0xdc6   :  { %v2706_v61 = vrot.slane %v2694_v43, 3 }
 0xdc8   :  { %v2707_v46 = vsel %vm424_vm8, %v2706_v61, %v2705_v10 }
 0xdc9   :  { %v5549_v15 = vsel %vm2702_vm14, %v2707_v46, %v5433_v51  ;;  %v5566_v51 = vld [vmem:[#allocation2 + $0x48] ss:$16 sps:$4 sm:$0xff]  }
 0xdca   :  { %v2717_v14 = vpack.c.bf16 %v5549_v15, %v5549_v15 }
 0xdcc   :  { %2751 = vmatmul.mubr.bf16.vlgmr.msra.gmra.mrb[52].mxu0 %v2717_v14  ;;  %2792 = vmatmul.mubr.bf16.vlgmr.msra.gmra.mrb[52].mxu1 %v2717_v14 }
 0xdcd   :  { %2917 = vmatpush1.bf16.msra.mxu0 %v5437_v5  ;;  %2958 = vmatpush1.bf16.msra.mxu1 %v5440_v26 }
 0xdce   :  { %2918 = vmatprep.subr.bf16.mxu0 %v5443_v9  ;;  %2959 = vmatprep.subr.bf16.mxu1 %v5446_v50 }
 0xdcf   :  { %2948 = vmatprep.mubr.bf16.mxu0 %v4201_v0  ;;  %2989 = vmatprep.mubr.bf16.mxu1 %v4201_v0 }
 0xdd1   :  { %2919 = vmatpush1.bf16.msra.mxu0 %v5451_v27  ;;  %2960 = vmatpush1.bf16.msra.mxu1 %v5454_v42 }
 0xdd2   :  { %2920 = vmatprep.subr.bf16.mxu0 %v5457_v45  ;;  %2961 = vmatprep.subr.bf16.mxu1 %v5562_v8 }
 0xdd5   :  { %2921 = vmatpush1.bf16.msra.mxu0 %v5461_v63  ;;  %2962 = vmatpush1.bf16.msra.mxu1 %v5566_v51 }
 0xdd6   :  { %2922 = vmatprep.subr.bf16.mxu0 %v5465_v30  ;;  %2963 = vmatprep.subr.bf16.mxu1 %v5570_v32 }
 0xdd9   :  { %2923 = vmatpush1.bf16.msra.mxu0 %v5469_v24  ;;  %2964 = vmatpush1.bf16.msra.mxu1 %v5574_v22 }
 0xdda   :  { %2924 = vmatprep.subr.bf16.mxu0 %v5473_v59  ;;  %2965 = vmatprep.subr.bf16.mxu1 %v5578_v47 }
 0xddd   :  { %2925 = vmatpush1.bf16.msra.mxu0 %v5581_v48  ;;  %2966 = vmatpush1.bf16.msra.mxu1 %v5584_v41 }
 0xdde   :  { %2926 = vmatprep.subr.bf16.mxu0 %v5587_v40  ;;  %2967 = vmatprep.subr.bf16.mxu1 %v5590_v18 }
 0xde1   :  { %2927 = vmatpush1.bf16.msra.mxu0 %v5593_v31  ;;  %2968 = vmatpush1.bf16.msra.mxu1 %v5596_v17 }
 0xde2   :  { %2928 = vmatprep.subr.bf16.mxu0 %v5599_v25  ;;  %2969 = vmatprep.subr.bf16.mxu1 %v5602_v23 }
 0xde5   :  { %2929 = vmatpush1.bf16.msra.mxu0 %v5605_v4  ;;  %2970 = vmatpush1.bf16.msra.mxu1 %v5608_v13 }
 0xde6   :  { %2930 = vmatprep.subr.bf16.mxu0 %v5611_v21  ;;  %2971 = vmatprep.subr.bf16.mxu1 %v5614_v11 }
 0xde9   :  { %2931 = vmatpush1.bf16.msra.mxu0 %v5617_v34  ;;  %2972 = vmatpush1.bf16.msra.mxu1 %v5620_v12 }
 0xdea   :  { %3102 = vmatprep.subr.bf16.mxu0 %v5491_v44  ;;  %3143 = vmatprep.subr.bf16.mxu1 %v5494_v35 }
 0xe9f   :  { %v2752_v16 = vpop.f32.mrb[52].mxu0  ;;  %v2793_v19 = vpop.f32.mrb[52].mxu1 }
 0xea0   :  { %v2804_v55 = vrot.slane %v2752_v16, 3  ;;  %v2808_v62 = vrot.slane %v2752_v16, 4  ;;  %v2754_v53 = vpop.f32.mrb[53].mxu0  ;;  %v2795_v49 = vpop.f32.mrb[53].mxu1 }
 0xea1   :  { %v2805_v29 = vrot.slane %v2754_v53, 3  ;;  %v2809_v2 = vrot.slane %v2754_v53, 4  ;;  %v2756_v3 = vpop.f32.mrb[54].mxu0  ;;  %v2797_v58 = vpop.f32.mrb[54].mxu1  ;;  %v2807_v53 = vrot.slane %v2795_v49, 3 }
 0xea2   :  { %v2820_v1 = vadd.f32 %v2804_v55, %v2523_v28  ;;  %v2824_v36 = vadd.f32 %v2808_v62, %v2527_v52  ;;  %v2757_v43 = vpop.f32.mrb[55].mxu0  ;;  %v2798_v44 = vpop.f32.mrb[55].mxu1  ;;  %v2811_v3 = vrot.slane %v2795_v49, 4  ;;  %v2806_v28 = vrot.slane %v2793_v19, 3 }
 0xea3   :  { %v2821_v35 = vadd.f32 %v2805_v29, %v2524_v39  ;;  %v2825_v10 = vadd.f32 %v2809_v2, %v2528_v33  ;;  %v2810_v55 = vrot.slane %v2793_v19, 4  ;;  %v2823_v52 = vadd.f32 %v2807_v53, %v2526_v54 }
 0xea4   :  { %v3441_v61 = vmul.f32 -1.442695, %v2820_v1  ;;  %v3442_v46 = vmul.f32 -1.442695, %v2824_v36  ;;  %v2827_v37 = vadd.f32 %v2811_v3, %v2530_v7  ;;  %v2822_v38 = vadd.f32 %v2806_v28, %v2525_v6 }
 0xea5   :  { %v3443_v14 = vmul.f32 -1.442695, %v2821_v35  ;;  %v3444_v16 = vmul.f32 -1.442695, %v2825_v10  ;;  %v2826_v39 = vadd.f32 %v2810_v55, %v2529_v56  ;;  %v3445_v33 = vmul.f32 -1.442695, %v2823_v52 }
 0xea6   :  { %3934 = vpow2.f32 %v3441_v61  ;;  %v3446_v62 = vmul.f32 -1.442695, %v2827_v37  ;;  %v2867_v35 = vrot.slane %v5545_v60, 3 }
 0xea7   :  { %3936 = vpow2.f32 %v3442_v46 }
 0xea8   :  { %3938 = vpow2.f32 %v3443_v14  ;;  %v2868_v14 = vrot.slane %v5545_v60, 4 }
 0xea9   :  { %3940 = vpow2.f32 %v3444_v16 }
 0xeaa   :  { %3942 = vtanh.f32 %v2822_v38 }
 0xeab   :  { %3944 = vtanh.f32 %v2826_v39  ;;  %v2887_v39 = vpop.permute.xlu1 %2886 }
 0xeac   :  { %3946 = vpow2.f32 %v3445_v33  ;;  %vm2888_vm15 = vcmp.eq.s32.totalorder %v2887_v39, 1 }
 0xead   :  { %3948 = vpow2.f32 %v3446_v62 }
 0xeb0   :  { %v3935_v49 = vpop.eup %3934 }
 0xeb1   :  { %v3937_v19 = vpop.eup %3936  ;;  %v2834_v29 = vadd.f32 1.0, %v3935_v49 }
 0xeb2   :  { %v3939_v2 = vpop.eup %3938  ;;  %v2835_v58 = vadd.f32 1.0, %v3937_v19 }
 0xeb3   :  { %v3941_v54 = vpop.eup %3940  ;;  %3950 = vrcp.f32 %v2834_v29  ;;  %v2846_v7 = vadd.f32 1.0, %v3939_v2 }
 0xeb4   :  { %3952 = vrcp.f32 %v2835_v58  ;;  %v2847_v57 = vadd.f32 1.0, %v3941_v54  ;;  %v3943_v20 = vpop.eup %3942 }
 0xeb5   :  { %3954 = vrcp.f32 %v2846_v7  ;;  %v3945_v6 = vpop.eup %3944 }
 0xeb6   :  { %3956 = vrcp.f32 %v2847_v57  ;;  %v3947_v56 = vpop.eup %3946 }
 0xeb7   :  { %v3949_v1 = vpop.eup %3948  ;;  %v2860_v10 = vadd.f32 1.0, %v3947_v56 }
 0xeb8   :  { %v2861_v16 = vadd.f32 1.0, %v3949_v1 }
 0xeb9   :  { %3958 = vrcp.f32 %v2860_v10 }
 0xeba   :  { %3960 = vrcp.f32 %v2861_v16 }
 0xebd   :  { %v3951_v36 = vpop.eup %3950 }
 0xebe   :  { %v3953_v43 = vpop.eup %3952  ;;  %v2873_v44 = vmul.f32 %v3951_v36, %v3943_v20 }
 0xebf   :  { %v3955_v61 = vpop.eup %3954  ;;  %v2874_v46 = vmul.f32 %v3953_v43, %v3945_v6 }
 0xec0   :  { %v3957_v53 = vpop.eup %3956  ;;  %v2871_v3 = vmul.f32 %v3955_v61, %v2867_v35 }
 0xec1   :  { %v2872_v28 = vmul.f32 %v3957_v53, %v2868_v14 }
 0xec2   :  { %v2875_v55 = vadd.f32 %v2873_v44, %v2871_v3 }
 0xec3   :  { %v2876_v52 = vadd.f32 %v2874_v46, %v2872_v28  ;;  %v3959_v49 = vpop.eup %3958 }
 0xec4   :  { %3962 = vtanh.f32 %v2875_v55  ;;  %v2898_v37 = vrot.slane %v2875_v55, 5  ;;  %v3961_v19 = vpop.eup %3960 }
 0xec5   :  { %3964 = vtanh.f32 %v2876_v52  ;;  %v2899_v38 = vrot.slane %v2876_v52, 4 }
 0xec7   :  { %v2900_v33 = vsel %vm424_vm8, %v2899_v38, %v2898_v37 }
 0xec8   :  { %v5645_v62 = vsel %vm2888_vm15, %v2900_v33, %v5545_v60 }
 0xece   :  { %v3963_v29 = vpop.eup %3962 }
 0xecf   :  { %v3965_v2 = vpop.eup %3964  ;;  %v2879_v58 = vmul.f32 %v3963_v29, %v3959_v49 }
 0xed0   :  { %v2880_v54 = vmul.f32 %v3965_v2, %v3961_v19 }
 0xed1   :  { %v2891_v7 = vrot.slane %v2879_v58, 5 }
 0xed2   :  { %v2892_v57 = vrot.slane %v2880_v54, 4  ;;  %v3065_v54 = vrot.slane %v5645_v62, 2 }
 0xed4   :  { %v2893_v20 = vsel %vm424_vm8, %v2892_v57, %v2891_v7 }
 0xed5   :  { %v5649_v6 = vsel %vm2888_vm15, %v2893_v20, %v5549_v15 }
 0xed6   :  { %v2915_v56 = vpack.c.bf16 %v5649_v6, %v5649_v6 }
 0xed8   :  { %2949 = vmatmul.mubr.bf16.vlgmr.msra.gmra.mrb[56].mxu0 %v2915_v56  ;;  %2990 = vmatmul.mubr.bf16.vlgmr.msra.gmra.mrb[56].mxu1 %v2915_v56  ;;  %v3066_v56 = vrot.slane %v5645_v62, 3 }
 0xed9   :  { %3103 = vmatpush1.bf16.msra.mxu0 %v5437_v5  ;;  %3144 = vmatpush1.bf16.msra.mxu1 %v5440_v26  ;;  %v5693_v5 = vld [vmem:[%s5789_s0 + $0x30] sm:$0x88] }
 0xeda   :  { %3104 = vmatprep.subr.bf16.mxu0 %v5443_v9  ;;  %3145 = vmatprep.subr.bf16.mxu1 %v5446_v50  ;;  %v2911_v9 = vunpack.c.l.bf16 %v5693_v5 }
 0xedb   :  { %3134 = vmatprep.mubr.bf16.mxu0 %v4201_v0  ;;  %3175 = vmatprep.mubr.bf16.mxu1 %v4201_v0  ;;  %v5688_v0 = vld [vmem:[%s5789_s0 + $0x10] sm:$0x88] }
 0xedc   :  { %v2907_v26 = vunpack.c.l.bf16 %v5688_v0 }
 0xedd   :  { %3105 = vmatpush1.bf16.msra.mxu0 %v5451_v27  ;;  %3146 = vmatpush1.bf16.msra.mxu1 %v5454_v42  ;;  %v2908_v42 = vunpack.c.h.bf16 %v5688_v0 }
 0xede   :  { %3106 = vmatprep.subr.bf16.mxu0 %v5457_v45  ;;  %3147 = vmatprep.subr.bf16.mxu1 %v5562_v8  ;;  %v2912_v45 = vunpack.c.h.bf16 %v5693_v5 }
 0xee1   :  { %3107 = vmatpush1.bf16.msra.mxu0 %v5461_v63  ;;  %3148 = vmatpush1.bf16.msra.mxu1 %v5566_v51 }
 0xee2   :  { %3108 = vmatprep.subr.bf16.mxu0 %v5465_v30  ;;  %3149 = vmatprep.subr.bf16.mxu1 %v5570_v32 }
 0xee5   :  { %3109 = vmatpush1.bf16.msra.mxu0 %v5469_v24  ;;  %3150 = vmatpush1.bf16.msra.mxu1 %v5574_v22 }
 0xee6   :  { %3110 = vmatprep.subr.bf16.mxu0 %v5473_v59  ;;  %3151 = vmatprep.subr.bf16.mxu1 %v5578_v47  ;;  %v5706_v47 = vld [vmem:[%s5789_s0 + $0x18] sm:$0x88] }
 0xee9   :  { %3111 = vmatpush1.bf16.msra.mxu0 %v5581_v48  ;;  %3152 = vmatpush1.bf16.msra.mxu1 %v5584_v41 }
 0xeea   :  { %3112 = vmatprep.subr.bf16.mxu0 %v5587_v40  ;;  %3153 = vmatprep.subr.bf16.mxu1 %v5590_v18  ;;  %v5711_v40 = vld [vmem:[%s5789_s0 + $0x38] sm:$0x88]  ;;  %s4202_s0 = smov [#allocation6]  }
 0xeeb   :  { %v2913_v36 = vunpack.c.l.bf16 %v5711_v40  ;;  %s3305_s21 = sshll.u32 %s4202_s0, 4  ;;  %s3306_s21 = int_to_ptr.vmem [resolvable:$true] %s3305_s21 }
 0xeec   :  { %s4148_s22 = scalar_lea.vmem %s3306_s21, 32  ;;  %p4153_p9 = scmp.lt.s32.totalorder %s3306_s21, %s3306_s21 }
 0xeed   :  { %3113 = vmatpush1.bf16.msra.mxu0 %v5593_v31  ;;  %3154 = vmatpush1.bf16.msra.mxu1 %v5596_v17  ;;  %p4149_p8 = scmp.ne.s32.totalorder %s3306_s21, %s4148_s22  ;;  %p4154_p10 = scmp.lt.s32.totalorder %s4148_s22, %s4148_s22 }
 0xeee   :  { %3114 = vmatprep.subr.bf16.mxu0 %v5599_v25  ;;  %3155 = vmatprep.subr.bf16.mxu1 %v5602_v23 }
 0xeef   :  { %p4155_p11 = por %p4154_p10, %p4153_p9 }
 0xef1   :  { %3115 = vmatpush1.bf16.msra.mxu0 %v5605_v4  ;;  %3156 = vmatpush1.bf16.msra.mxu1 %v5608_v13  ;;  %v2910_v13 = vunpack.c.h.bf16 %v5706_v47  ;;  %p4156_p12 = pnand %p4155_p11, %p4149_p8 }
 0xef2   :  { %3116 = vmatprep.subr.bf16.mxu0 %v5611_v21  ;;  %3157 = vmatprep.subr.bf16.mxu1 %v5614_v11  ;;  %v2914_v11 = vunpack.c.h.bf16 %v5711_v40 }
 0xef5   :  { %3117 = vmatpush1.bf16.msra.mxu0 %v5617_v34  ;;  %3158 = vmatpush1.bf16.msra.mxu1 %v5620_v12  ;;  %v2909_v12 = vunpack.c.l.bf16 %v5706_v47 }
 0xfab   :  { %v2950_v50 = vpop.f32.mrb[56].mxu0  ;;  %v2991_v27 = vpop.f32.mrb[56].mxu1 }
 0xfac   :  { %v3002_v63 = vrot.slane %v2950_v50, 2  ;;  %v3006_v30 = vrot.slane %v2950_v50, 3  ;;  %v2952_v24 = vpop.f32.mrb[57].mxu0  ;;  %v2993_v59 = vpop.f32.mrb[57].mxu1  ;;  %v3004_v1 = vrot.slane %v2991_v27, 2  ;;  %v3008_v43 = vrot.slane %v2991_v27, 3 }
 0xfad   :  { %v3003_v60 = vrot.slane %v2952_v24, 2  ;;  %v3007_v15 = vrot.slane %v2952_v24, 3  ;;  %v2954_v8 = vpop.f32.mrb[58].mxu0  ;;  %v2995_v51 = vpop.f32.mrb[58].mxu1  ;;  %v3005_v21 = vrot.slane %v2993_v59, 2  ;;  %v3009_v34 = vrot.slane %v2993_v59, 3 }
 0xfae   :  { %v3018_v32 = vadd.f32 %v3002_v63, %v2907_v26  ;;  %v3022_v22 = vadd.f32 %v3006_v30, %v2911_v9  ;;  %v2955_v48 = vpop.f32.mrb[59].mxu0  ;;  %v2996_v41 = vpop.f32.mrb[59].mxu1  ;;  %v3020_v10 = vadd.f32 %v3004_v1, %v2909_v12  ;;  %v3024_v61 = vadd.f32 %v3008_v43, %v2913_v36 }
 0xfaf   :  { %v3019_v18 = vadd.f32 %v3003_v60, %v2908_v42  ;;  %v3023_v31 = vadd.f32 %v3007_v15, %v2912_v45  ;;  %v3021_v44 = vadd.f32 %v3005_v21, %v2910_v13  ;;  %v3025_v35 = vadd.f32 %v3009_v34, %v2914_v11  ;;  %v3085_v60 = vpop.permute.xlu0 %3084 }
 0xfb0   :  { %v3448_v17 = vmul.f32 -1.442695, %v3018_v32  ;;  %v3449_v25 = vmul.f32 -1.442695, %v3022_v22  ;;  %vm3086_vm0 = vcmp.eq.s32.totalorder %v3085_v60, 1 }
 0xfb1   :  { %v3450_v23 = vmul.f32 -1.442695, %v3019_v18  ;;  %v3451_v4 = vmul.f32 -1.442695, %v3023_v31  ;;  %v3452_v46 = vmul.f32 -1.442695, %v3021_v44 }
 0xfb2   :  { %3966 = vpow2.f32 %v3448_v17  ;;  %v3453_v14 = vmul.f32 -1.442695, %v3025_v35 }
 0xfb3   :  { %3968 = vpow2.f32 %v3449_v25 }
 0xfb4   :  { %3970 = vpow2.f32 %v3450_v23 }
 0xfb5   :  { %3972 = vpow2.f32 %v3451_v4 }
 0xfb6   :  { %3974 = vtanh.f32 %v3020_v10 }
 0xfb7   :  { %3976 = vtanh.f32 %v3024_v61 }
 0xfb8   :  { %3978 = vpow2.f32 %v3452_v46 }
 0xfb9   :  { %3980 = vpow2.f32 %v3453_v14 }
 0xfbc   :  { %v3967_v16 = vpop.eup %3966 }
 0xfbd   :  { %v3969_v53 = vpop.eup %3968  ;;  %v3032_v3 = vadd.f32 1.0, %v3967_v16 }
 0xfbe   :  { %v3971_v28 = vpop.eup %3970  ;;  %v3033_v55 = vadd.f32 1.0, %v3969_v53 }
 0xfbf   :  { %v3973_v52 = vpop.eup %3972  ;;  %3982 = vrcp.f32 %v3032_v3  ;;  %v3044_v37 = vadd.f32 1.0, %v3971_v28 }
 0xfc0   :  { %3984 = vrcp.f32 %v3033_v55  ;;  %v3045_v38 = vadd.f32 1.0, %v3973_v52  ;;  %v3975_v39 = vpop.eup %3974 }
 0xfc1   :  { %3986 = vrcp.f32 %v3044_v37  ;;  %v3977_v33 = vpop.eup %3976 }
 0xfc2   :  { %3988 = vrcp.f32 %v3045_v38  ;;  %v3979_v49 = vpop.eup %3978 }
 0xfc3   :  { %v3981_v19 = vpop.eup %3980  ;;  %v3058_v7 = vadd.f32 1.0, %v3979_v49 }
 0xfc4   :  { %v3059_v50 = vadd.f32 1.0, %v3981_v19 }
 0xfc5   :  { %3990 = vrcp.f32 %v3058_v7 }
 0xfc6   :  { %3992 = vrcp.f32 %v3059_v50 }
 0xfc9   :  { %v3983_v29 = vpop.eup %3982 }
 0xfca   :  { %v3985_v2 = vpop.eup %3984  ;;  %v3071_v58 = vmul.f32 %v3983_v29, %v3975_v39 }
 0xfcb   :  { %v3987_v57 = vpop.eup %3986  ;;  %v3072_v20 = vmul.f32 %v3985_v2, %v3977_v33 }
 0xfcc   :  { %v3989_v27 = vpop.eup %3988  ;;  %v3069_v63 = vmul.f32 %v3987_v57, %v3065_v54 }
 0xfcd   :  { %v3070_v30 = vmul.f32 %v3989_v27, %v3066_v56 }
 0xfce   :  { %v3073_v24 = vadd.f32 %v3071_v58, %v3069_v63 }
 0xfcf   :  { %v3074_v59 = vadd.f32 %v3072_v20, %v3070_v30  ;;  %v3991_v22 = vpop.eup %3990 }
 0xfd0   :  { %3994 = vtanh.f32 %v3073_v24  ;;  %v3096_v15 = vrot.slane %v3073_v24, 6  ;;  %v3993_v48 = vpop.eup %3992 }
 0xfd1   :  { %3996 = vtanh.f32 %v3074_v59  ;;  %v3097_v8 = vrot.slane %v3074_v59, 5 }
 0xfd3   :  { %v3098_v51 = vsel %vm424_vm8, %v3097_v8, %v3096_v15 }
 0xfd4   :  { %v5733_v32 = vsel %vm3086_vm0, %v3098_v51, %v5645_v62 }
 0xfd5   :  { %v3251_v30 = vrot.slane %v5733_v32, 1  ;;  %v3252_v15 = vrot.slane %v5733_v32, 2 }
 0xfda   :  { %v3995_v41 = vpop.eup %3994 }
 0xfdb   :  { %v3997_v18 = vpop.eup %3996  ;;  %v3077_v31 = vmul.f32 %v3995_v41, %v3991_v22 }
 0xfdc   :  { %v3078_v17 = vmul.f32 %v3997_v18, %v3993_v48 }
 0xfdd   :  { %v3089_v25 = vrot.slane %v3077_v31, 6  ;;  %v3271_v31 = vpop.permute.xlu1 %3270 }
 0xfde   :  { %v3090_v23 = vrot.slane %v3078_v17, 5  ;;  %vm3272_vm1 = vcmp.eq.s32.totalorder %v3271_v31, 1 }
 0xfe0   :  { %v3091_v4 = vsel %vm424_vm8, %v3090_v23, %v3089_v25 }
 0xfe1   :  { %v5737_v21 = vsel %vm3086_vm0, %v3091_v4, %v5649_v6 }
 0xfe2   :  { %v3101_v34 = vpack.c.bf16 %v5737_v21, %v5737_v21 }
 0xfe4   :  { %3135 = vmatmul.mubr.bf16.vlgmr.msra.gmra.mrb[60].mxu0 %v3101_v34  ;;  %3176 = vmatmul.mubr.bf16.vlgmr.msra.gmra.mrb[60].mxu1 %v3101_v34 }
0x10b7   :  { %v3136_v62 = vpop.f32.mrb[60].mxu0  ;;  %v3177_v1 = vpop.f32.mrb[60].mxu1 }
0x10b8   :  { %v3188_v43 = vrot.slane %v3136_v62, 1  ;;  %v3192_v44 = vrot.slane %v3136_v62, 2  ;;  %v3138_v35 = vpop.f32.mrb[61].mxu0  ;;  %v3179_v10 = vpop.f32.mrb[61].mxu1  ;;  %v3194_v29 = vrot.slane %v3177_v1, 2 }
0x10b9   :  { %v3189_v61 = vrot.slane %v3138_v35, 1  ;;  %v3193_v46 = vrot.slane %v3138_v35, 2  ;;  %v3140_v14 = vpop.f32.mrb[62].mxu0  ;;  %v3181_v16 = vpop.f32.mrb[62].mxu1  ;;  %v3191_v49 = vrot.slane %v3179_v10, 1  ;;  %v3195_v19 = vrot.slane %v3179_v10, 2 }
0x10ba   :  { %v3204_v53 = vadd.f32 %v3188_v43, %v2907_v26  ;;  %v3208_v6 = vadd.f32 %v3192_v44, %v2911_v9  ;;  %v3141_v3 = vpop.f32.mrb[63].mxu0  ;;  %v3182_v28 = vpop.f32.mrb[63].mxu1  ;;  %v3190_v26 = vrot.slane %v3177_v1, 1 }
0x10bb   :  { %v3205_v55 = vadd.f32 %v3189_v61, %v2908_v42  ;;  %v3209_v52 = vadd.f32 %v3193_v46, %v2912_v45  ;;  %v3207_v9 = vadd.f32 %v3191_v49, %v2910_v13  ;;  %v3211_v0 = vadd.f32 %v3195_v19, %v2914_v11 }
0x10bc   :  { %v3455_v37 = vmul.f32 -1.442695, %v3204_v53  ;;  %v3456_v38 = vmul.f32 -1.442695, %v3208_v6  ;;  %v3206_v5 = vadd.f32 %v3190_v26, %v2909_v12  ;;  %v3210_v42 = vadd.f32 %v3194_v29, %v2913_v36 }
0x10bd   :  { %v3457_v39 = vmul.f32 -1.442695, %v3205_v55  ;;  %v3458_v33 = vmul.f32 -1.442695, %v3209_v52  ;;  %v3459_v45 = vmul.f32 -1.442695, %v3207_v9 }
0x10be   :  { %3998 = vpow2.f32 %v3455_v37  ;;  %v3460_v2 = vmul.f32 -1.442695, %v3211_v0 }
0x10bf   :  { %4000 = vpow2.f32 %v3456_v38 }
0x10c0   :  { %4002 = vpow2.f32 %v3457_v39 }
0x10c1   :  { %4004 = vpow2.f32 %v3458_v33 }
0x10c2   :  { %4006 = vtanh.f32 %v3206_v5 }
0x10c3   :  { %4008 = vtanh.f32 %v3210_v42 }
0x10c4   :  { %4010 = vpow2.f32 %v3459_v45 }
0x10c5   :  { %4012 = vpow2.f32 %v3460_v2 }
0x10c8   :  { %v3999_v58 = vpop.eup %3998 }
0x10c9   :  { %v4001_v54 = vpop.eup %4000  ;;  %v3218_v7 = vadd.f32 1.0, %v3999_v58 }
0x10ca   :  { %v4003_v57 = vpop.eup %4002  ;;  %v3219_v20 = vadd.f32 1.0, %v4001_v54 }
0x10cb   :  { %v4005_v13 = vpop.eup %4004  ;;  %4014 = vrcp.f32 %v3218_v7  ;;  %v3230_v11 = vadd.f32 1.0, %v4003_v57 }
0x10cc   :  { %4016 = vrcp.f32 %v3219_v20  ;;  %v3231_v47 = vadd.f32 1.0, %v4005_v13  ;;  %v4007_v40 = vpop.eup %4006 }
0x10cd   :  { %4018 = vrcp.f32 %v3230_v11  ;;  %v4009_v12 = vpop.eup %4008 }
0x10ce   :  { %4020 = vrcp.f32 %v3231_v47  ;;  %v4011_v36 = vpop.eup %4010 }
0x10cf   :  { %v4013_v56 = vpop.eup %4012  ;;  %v3244_v24 = vadd.f32 1.0, %v4011_v36 }
0x10d0   :  { %v3245_v8 = vadd.f32 1.0, %v4013_v56 }
0x10d1   :  { %4022 = vrcp.f32 %v3244_v24 }
0x10d2   :  { %4024 = vrcp.f32 %v3245_v8 }
0x10d5   :  { %v4015_v50 = vpop.eup %4014 }
0x10d6   :  { %v4017_v27 = vpop.eup %4016  ;;  %v3257_v63 = vmul.f32 %v4015_v50, %v4007_v40 }
0x10d7   :  { %v4019_v59 = vpop.eup %4018  ;;  %v3258_v60 = vmul.f32 %v4017_v27, %v4009_v12 }
0x10d8   :  { %v4021_v51 = vpop.eup %4020  ;;  %v3255_v22 = vmul.f32 %v4019_v59, %v3251_v30 }
0x10d9   :  { %v3256_v48 = vmul.f32 %v4021_v51, %v3252_v15 }
0x10da   :  { %v3259_v41 = vadd.f32 %v3257_v63, %v3255_v22 }
0x10db   :  { %v3260_v18 = vadd.f32 %v3258_v60, %v3256_v48 }
0x10dc   :  { %4026 = vtanh.f32 %v3259_v41  ;;  %v3282_v17 = vrot.slane %v3259_v41, 7 }
0x10dd   :  { %4028 = vtanh.f32 %v3260_v18  ;;  %v3283_v25 = vrot.slane %v3260_v18, 6 }
0x10df   :  { %v3284_v23 = vsel %vm424_vm8, %v3283_v25, %v3282_v17 }
0x10e0   :  { %v3286_v4 = vsel %vm3272_vm1, %v3284_v23, %v5733_v32 }
0x10e1   :  { %3288 = vst [vmem:[#allocation6] sm:$0x3] %v3286_v4 }
0x10e2   :  { %4159 = shalt.err (!%p4156_p12)
}
0x10e3   :  { %s4160_s25 = scalar_lea.hbm %s5795_s6, 32 }
0x10e4   :  { %p4161_p13 = scmp.ne.s32.totalorder %s5795_s6, %s4160_s25  ;;  %p4164_p0 = scmp.lt.u32.totalorder %s4160_s25, %s5795_s6 }
0x10e6   :  { %p4166_p1 = pnand %p4164_p0, %p4161_p13 }
0x10e8   :  { %4169 = shalt.err (!%p4166_p1)
}
0x10e9   :  { %3308 = dma.vmem_to_hbm [thread:$0]  %s3306_s21, 32, %s5795_s6, [#allocation7]   ;;  %v4023_v32 = vpop.eup %4022 }
0x10ea   :  { %v4025_v34 = vpop.eup %4024  ;;  %s4203_s8 = smov [#allocation5]  }
0x10eb   :  { %v4027_v62 = vpop.eup %4026  ;;  %s3295_s9 = sshll.u32 %s4203_s8, 4  ;;  %s3296_s9 = int_to_ptr.vmem [resolvable:$true] %s3295_s9 }
0x10ec   :  { %v4029_v1 = vpop.eup %4028  ;;  %v3263_v43 = vmul.f32 %v4027_v62, %v4023_v32  ;;  %s4170_s10 = scalar_lea.vmem %s3296_s9, 32  ;;  %p4175_p3 = scmp.lt.s32.totalorder %s3296_s9, %s3296_s9 }
0x10ed   :  { %v3264_v44 = vmul.f32 %v4029_v1, %v4025_v34  ;;  %p4171_p2 = scmp.ne.s32.totalorder %s3296_s9, %s4170_s10  ;;  %p4176_p4 = scmp.lt.s32.totalorder %s4170_s10, %s4170_s10 }
0x10ee   :  { %v3275_v35 = vrot.slane %v3263_v43, 7 }
0x10ef   :  { %v3276_v10 = vrot.slane %v3264_v44, 6  ;;  %p4177_p5 = por %p4176_p4, %p4175_p3 }
0x10f1   :  { %v3277_v61 = vsel %vm424_vm8, %v3276_v10, %v3275_v35  ;;  %p4178_p6 = pnand %p4177_p5, %p4171_p2 }
0x10f2   :  { %v3279_v46 = vsel %vm3272_vm1, %v3277_v61, %v5737_v21 }
0x10f3   :  { %3287 = vst [vmem:[#allocation5] sm:$0x3] %v3279_v46 }
0x10f4   :  { %4181 = shalt.err (!%p4178_p6)
}
0x10f5   :  { %s4182_s11 = scalar_lea.hbm %s5794_s5, 32 }
0x10f6   :  { %p4183_p7 = scmp.ne.s32.totalorder %s5794_s5, %s4182_s11  ;;  %p4186_p8 = scmp.lt.u32.totalorder %s4182_s11, %s5794_s5 }
0x10f8   :  { %p4188_p9 = pnand %p4186_p8, %p4183_p7 }
0x10fa   :  { %4191 = shalt.err (!%p4188_p9)
}
0x10fb   :  { %3298 = dma.vmem_to_hbm [thread:$0]  %s3296_s9, 32, %s5794_s5, [#allocation4]  }
0x10fc   :  { %4194 = dma.done.wait [#allocation4], 32  }
0x10fd   :  { %4195 = vsyncadd [#allocation4], 4294967264 }
0x10fe   :  { %4196 = dma.done.wait [#allocation7], 32  }
0x10ff   :  { %4197 = vsyncadd [#allocation7], 4294967264 }
0x1100   :  { %3315 = vsyncpa [#allocation3], 1 }
0x1101   :  { %3316 = vsyncpa [#allocation4], 1 }
0x1102   :  { %3317 = vsyncpa [#allocation7], 1 }

</bundles_post_ra>
